<compile_context>
chip_gen: v5e
topology: v5e:2x2
jax: 0.10.0
libtpu: 0.0.40
codegen_flags: <defaults>
</compile_context>

<pallas_src>
import functools

import jax
import jax.numpy as jnp
from jax.experimental import pallas as pl
from jax.experimental.pallas import tpu as pltpu

_EPS = 1e-5  # PyTorch BatchNorm2d default eps


# ---------------------------------------------------------------------------
# Fused Pallas kernel (one batch element per grid step)
# ---------------------------------------------------------------------------
def _yolo_head_kernel(patch_ref, cmask_ref, w1_ref, s1_ref, b1_ref,
                      w2_ref, s2_ref, b2_ref, sew1_ref, sew2_ref,
                      w3_ref, b3_ref, o_ref, p2_ref,
                      *, hwp, wp, margin, inv_hw):
    """conv1+BN+ReLU -> conv2+BN+ReLU -> SE gate -> 1x1 out conv, all in VMEM."""
    c1 = w1_ref.shape[1]                      # 64
    cmask = cmask_ref[...]                    # (hwp, 1) f32, 0 on border cols

    # ---- stage 1: one (hwp, 9*Cin) @ (9*Cin, 64) MXU matmul + BN + ReLU -----
    acc1 = jnp.dot(patch_ref[0], w1_ref[...], preferred_element_type=jnp.float32)
    y1 = jnp.maximum(acc1 * s1_ref[...] + b1_ref[...], 0.0) * cmask   # (hwp,64)

    # ---- scatter y1 into the 9 shifted im2col stripes of the VMEM scratch ---
    # Stripe k holds y1 shifted by -(dy*wp+dx) rows so that reading rows
    # [margin, margin+hwp) yields the (hwp, 576) conv2 patch matrix.  The few
    # window rows a stripe does not cover are zeroed every step (vertical zero
    # padding; self-contained per step, so safe under megacore sharding).
    k = 0
    for dy in (-1, 0, 1):
        for dx in (-1, 0, 1):
            d = dy * wp + dx
            lo = k * c1
            p2_ref[pl.ds(margin - d, hwp), pl.ds(lo, c1)] = y1
            if d < 0:
                p2_ref[pl.ds(margin, -d), pl.ds(lo, c1)] = (
                    jnp.zeros((-d, c1), jnp.float32))
            elif d > 0:
                p2_ref[pl.ds(margin + hwp - d, d), pl.ds(lo, c1)] = (
                    jnp.zeros((d, c1), jnp.float32))
            k += 1

    # ---- stage 2: one (hwp, 576) @ (576, 128) bf16 MXU matmul + BN + ReLU ---
    patch2 = p2_ref[pl.ds(margin, hwp), :].astype(jnp.bfloat16)
    acc2 = jnp.dot(patch2, w2_ref[...], preferred_element_type=jnp.float32)
    y2 = jnp.maximum(acc2 * s2_ref[...] + b2_ref[...], 0.0)          # (hwp,128)

    # ---- SE block: masked global avg pool -> fc -> ReLU -> fc -> sigmoid ----
    # Tiny FCs as broadcast-multiply + reduce (VPU/XLU), not 1-row MXU matmuls.
    pooled = jnp.sum(y2 * cmask, axis=0, keepdims=True) * inv_hw      # (1, 128)
    hid = jnp.maximum(
        jnp.sum(pooled * sew1_ref[...], axis=1, keepdims=True), 0.0)  # (2, 1)
    gate = jax.nn.sigmoid(
        jnp.sum(hid * sew2_ref[...], axis=0, keepdims=True))          # (1, 128)
    y2 = y2 * gate

    # ---- 1x1 out conv, channels-on-sublane (coutp, hwp): small writeback ----
    out_t = jax.lax.dot_general(w3_ref[...], y2, (((1,), (1,)), ((), ())),
                                preferred_element_type=jnp.float32)   # (8, hwp)
    o_ref[0] = (out_t + b3_ref[...]).astype(o_ref.dtype)


# ---------------------------------------------------------------------------
# Wrapper: layout plumbing + parameter folding in plain JAX, then pallas_call
# ---------------------------------------------------------------------------
def yolo_head_forward(x_nchw, p):
    n, cin, h, w = x_nchw.shape
    wp = w + 2                                # width-padded compute grid
    hwp = h * wp
    assert hwp % 8 == 0, "h*(w+2) must be a multiple of 8"
    margin = -(-(wp + 1) // 16) * 16          # >= wp+1, 16-aligned read window
    rows = hwp + 2 * margin
    c1 = p["w1"].shape[0]                     # 64
    c2 = p["w2"].shape[0]                     # 32
    num_outputs = p["w3"].shape[0]
    c2p = 128                                 # lane-dense stage-2 width
    coutp = -(-num_outputs // 8) * 8          # sublane-padded output channels
    inv_hw = 1.0 / float(h * w)

    # Stage-1 im2col patch over the (h, w+2) grid, bf16 (pure layout plumbing).
    x_nhwc = jnp.transpose(x_nchw, (0, 2, 3, 1))
    xpp = jnp.pad(x_nhwc, ((0, 0), (1, 1), (2, 2), (0, 0)))
    taps = [xpp[:, 1 + dy:1 + dy + h, 1 + dx:1 + dx + wp, :]
            for dy in (-1, 0, 1) for dx in (-1, 0, 1)]
    patch = jnp.concatenate(taps, axis=-1).reshape(n, hwp, 9 * cin)
    patch = patch.astype(jnp.bfloat16)

    # Column-validity mask over the compute grid (border columns -> 0).
    colv = ((jnp.arange(wp) >= 1) & (jnp.arange(wp) <= w)).astype(jnp.float32)
    cmask = jnp.tile(colv, (h,)).reshape(hwp, 1)

    # conv1 + BN1 folded; im2col weight layout (9*Cin, 64), bf16.
    s1 = p["g1"] / jnp.sqrt(p["v1"] + _EPS)
    bias1 = p["be1"] + s1 * (p["b1"] - p["m1"])
    w1m = jnp.transpose(p["w1"], (2, 3, 1, 0)).reshape(9 * cin, c1)
    w1m = w1m.astype(jnp.bfloat16)

    # conv2 + BN2 folded; (576, 32) zero-padded to (576, 128), bf16.
    s2 = p["g2"] / jnp.sqrt(p["v2"] + _EPS)
    bias2 = p["be2"] + s2 * (p["b2"] - p["m2"])
    w2m = jnp.transpose(p["w2"], (2, 3, 1, 0)).reshape(9 * c1, c2)
    w2m = jnp.pad(w2m, ((0, 0), (0, c2p - c2))).astype(jnp.bfloat16)
    s2p = jnp.pad(s2, (0, c2p - c2)).reshape(1, c2p)
    b2p = jnp.pad(bias2, (0, c2p - c2)).reshape(1, c2p)

    # SE weights in broadcast-reduce form, channel-padded to 128 (f32).
    sew1 = jnp.pad(p["se_w1"], ((0, 0), (0, c2p - c2)))               # (2, 128)
    sew2 = jnp.pad(p["se_w2"].T, ((0, 0), (0, c2p - c2)))             # (2, 128)

    # 1x1 out conv kept channels-first for the channels-on-sublane store.
    w3ct = jnp.pad(p["w3"][:, :, 0, 0],
                   ((0, coutp - num_outputs), (0, c2p - c2)))         # (8, 128)
    b3p = jnp.pad(p["b3"], (0, coutp - num_outputs)).reshape(coutp, 1)

    kernel = functools.partial(_yolo_head_kernel, hwp=hwp, wp=wp,
                               margin=margin, inv_hw=inv_hw)

    out = pl.pallas_call(
        kernel,
        out_shape=jax.ShapeDtypeStruct((n, coutp, hwp), jnp.float32),
        grid_spec=pltpu.PrefetchScalarGridSpec(
            num_scalar_prefetch=0,
            grid=(n,),
            in_specs=[
                pl.BlockSpec((1, hwp, 9 * cin), lambda b: (b, 0, 0)),
                pl.BlockSpec((hwp, 1), lambda b: (0, 0)),
                pl.BlockSpec((9 * cin, c1), lambda b: (0, 0)),
                pl.BlockSpec((1, c1), lambda b: (0, 0)),
                pl.BlockSpec((1, c1), lambda b: (0, 0)),
                pl.BlockSpec((9 * c1, c2p), lambda b: (0, 0)),
                pl.BlockSpec((1, c2p), lambda b: (0, 0)),
                pl.BlockSpec((1, c2p), lambda b: (0, 0)),
                pl.BlockSpec((2, c2p), lambda b: (0, 0)),
                pl.BlockSpec((2, c2p), lambda b: (0, 0)),
                pl.BlockSpec((coutp, c2p), lambda b: (0, 0)),
                pl.BlockSpec((coutp, 1), lambda b: (0, 0)),
            ],
            out_specs=pl.BlockSpec((1, coutp, hwp), lambda b: (b, 0, 0)),
            scratch_shapes=[pltpu.VMEM((rows, 9 * c1), jnp.float32)],
        ),
        compiler_params=pltpu.CompilerParams(dimension_semantics=("parallel",)),
    )(patch, cmask, w1m, s1.reshape(1, c1), bias1.reshape(1, c1),
      w2m, s2p, b2p, sew1, sew2, w3ct, b3p)

    # (N, coutp, h*wp) -> (N, num_outputs, H, W): drop pad channels/border cols.
    out = out[:, :num_outputs, :].reshape(n, num_outputs, h, wp)
    return out[:, :, :, 1:w + 1]


# ---------------------------------------------------------------------------
# Deterministic parameter init (shapes follow the PyTorch module __init__)
# ---------------------------------------------------------------------------
def init_params(key, in_channels, num_outputs):
    ks = jax.random.split(key, 16)
    p = {}
    p["w1"] = 0.2 * jax.random.normal(ks[0], (64, in_channels, 3, 3), jnp.float32)
    p["b1"] = 0.1 * jax.random.normal(ks[1], (64,), jnp.float32)
    p["g1"] = jax.random.uniform(ks[2], (64,), jnp.float32, 0.8, 1.2)
    p["be1"] = 0.1 * jax.random.normal(ks[3], (64,), jnp.float32)
    p["m1"] = 0.1 * jax.random.normal(ks[4], (64,), jnp.float32)
    p["v1"] = jax.random.uniform(ks[5], (64,), jnp.float32, 0.5, 1.5)
    p["w2"] = 0.1 * jax.random.normal(ks[6], (32, 64, 3, 3), jnp.float32)
    p["b2"] = 0.1 * jax.random.normal(ks[7], (32,), jnp.float32)
    p["g2"] = jax.random.uniform(ks[8], (32,), jnp.float32, 0.8, 1.2)
    p["be2"] = 0.1 * jax.random.normal(ks[9], (32,), jnp.float32)
    p["m2"] = 0.1 * jax.random.normal(ks[10], (32,), jnp.float32)
    p["v2"] = jax.random.uniform(ks[11], (32,), jnp.float32, 0.5, 1.5)
    p["se_w1"] = 0.3 * jax.random.normal(ks[12], (32 // 16, 32), jnp.float32)  # Linear(32,2,bias=False)
    p["se_w2"] = 0.3 * jax.random.normal(ks[13], (32, 32 // 16), jnp.float32)  # Linear(2,32,bias=False)
    p["w3"] = 0.2 * jax.random.normal(ks[14], (num_outputs, 32, 1, 1), jnp.float32)
    p["b3"] = 0.1 * jax.random.normal(ks[15], (num_outputs,), jnp.float32)
    return p


# ---------------------------------------------------------------------------
# Pure-JAX reference (NCHW, lax.conv) for correctness check
# ---------------------------------------------------------------------------
def reference_forward(x, p):
    def conv2d(x, w, b, pad):
        y = jax.lax.conv_general_dilated(
            x, w, window_strides=(1, 1), padding=((pad, pad), (pad, pad)),
            dimension_numbers=("NCHW", "OIHW", "NCHW"))
        return y + b[None, :, None, None]

    def bn(x, g, be, m, v):
        inv = g / jnp.sqrt(v + _EPS)
        return inv[None, :, None, None] * (x - m[None, :, None, None]) + be[None, :, None, None]

    y = jax.nn.relu(bn(conv2d(x, p["w1"], p["b1"], 1), p["g1"], p["be1"], p["m1"], p["v1"]))
    y = jax.nn.relu(bn(conv2d(y, p["w2"], p["b2"], 1), p["g2"], p["be2"], p["m2"], p["v2"]))
    pooled = jnp.mean(y, axis=(2, 3))                    # (N, 32)
    hdn = jax.nn.relu(pooled @ p["se_w1"].T)             # (N, 2)
    gate = jax.nn.sigmoid(hdn @ p["se_w2"].T)            # (N, 32)
    y = y * gate[:, :, None, None]
    return conv2d(y, p["w3"], p["b3"], 0)


if __name__ == "__main__":
    N, Cin, H, W = 2, 4, 16, 16
    num_outputs = 5

    key = jax.random.PRNGKey(0)
    kx, kp = jax.random.split(key)
    x_nchw = jax.random.normal(kx, (N, Cin, H, W), jnp.float32)
    params = init_params(kp, Cin, num_outputs)

    out = jax.block_until_ready(yolo_head_forward(x_nchw, params))

    assert out.shape == (N, num_outputs, H, W), out.shape
    ref = reference_forward(x_nchw, params)
    # Tolerance reflects bf16 MXU inputs (f32 accumulation, f32 epilogue).
    assert jnp.allclose(out, ref, rtol=5e-2, atol=5e-2), (
        float(jnp.max(jnp.abs(out - ref))))

    print("KERNEL_OK")
</pallas_src>

<mosaic_0001>
module attributes {stable_mosaic.version = 11 : i64} {
  func.func @_yolo_head_kernel(%arg0: i32, %arg1: memref<1x288x36xbf16, #tpu.memory_space<vmem>>, %arg2: memref<288x1xf32, #tpu.memory_space<vmem>>, %arg3: memref<36x64xbf16, #tpu.memory_space<vmem>>, %arg4: memref<1x64xf32, #tpu.memory_space<vmem>>, %arg5: memref<1x64xf32, #tpu.memory_space<vmem>>, %arg6: memref<576x128xbf16, #tpu.memory_space<vmem>>, %arg7: memref<1x128xf32, #tpu.memory_space<vmem>>, %arg8: memref<1x128xf32, #tpu.memory_space<vmem>>, %arg9: memref<2x128xf32, #tpu.memory_space<vmem>>, %arg10: memref<2x128xf32, #tpu.memory_space<vmem>>, %arg11: memref<8x128xf32, #tpu.memory_space<vmem>>, %arg12: memref<8x1xf32, #tpu.memory_space<vmem>>, %arg13: memref<1x8x288xf32, #tpu.memory_space<vmem>>, %arg14: memref<352x576xf32, #tpu.memory_space<vmem>>) attributes {dimension_semantics = [#tpu.dimension_semantics<parallel>], iteration_bounds = array<i64: 2>, scalar_prefetch = 0 : i64, scratch_operands = 1 : i64, tpu.core_type = #tpu.core_type<tc>, window_params = [{transform_indices = @transform_0, window_bounds = array<i64: 1, 288, 36>}, {pipeline_mode = #tpu.pipeline_mode<synchronous>, transform_indices = @transform_1, window_bounds = array<i64: 288, 1>}, {pipeline_mode = #tpu.pipeline_mode<synchronous>, transform_indices = @transform_2, window_bounds = array<i64: 36, 64>}, {pipeline_mode = #tpu.pipeline_mode<synchronous>, transform_indices = @transform_3, window_bounds = array<i64: 1, 64>}, {pipeline_mode = #tpu.pipeline_mode<synchronous>, transform_indices = @transform_4, window_bounds = array<i64: 1, 64>}, {pipeline_mode = #tpu.pipeline_mode<synchronous>, transform_indices = @transform_5, window_bounds = array<i64: 576, 128>}, {pipeline_mode = #tpu.pipeline_mode<synchronous>, transform_indices = @transform_6, window_bounds = array<i64: 1, 128>}, {pipeline_mode = #tpu.pipeline_mode<synchronous>, transform_indices = @transform_7, window_bounds = array<i64: 1, 128>}, {pipeline_mode = #tpu.pipeline_mode<synchronous>, transform_indices = @transform_8, window_bounds = array<i64: 2, 128>}, {pipeline_mode = #tpu.pipeline_mode<synchronous>, transform_indices = @transform_9, window_bounds = array<i64: 2, 128>}, {pipeline_mode = #tpu.pipeline_mode<synchronous>, transform_indices = @transform_10, window_bounds = array<i64: 8, 128>}, {pipeline_mode = #tpu.pipeline_mode<synchronous>, transform_indices = @transform_11, window_bounds = array<i64: 8, 1>}, {transform_indices = @transform_12, window_bounds = array<i64: 1, 8, 288>}]} {
    %c0 = arith.constant 0 : index
    %c0_0 = arith.constant 0 : index
    %0 = vector.load %arg2[%c0, %c0_0] : memref<288x1xf32, #tpu.memory_space<vmem>>, vector<288x1xf32>
    %c0_1 = arith.constant 0 : index
    %c0_2 = arith.constant 0 : index
    %c0_3 = arith.constant 0 : index
    %1 = vector.load %arg1[%c0_1, %c0_2, %c0_3] : memref<1x288x36xbf16, #tpu.memory_space<vmem>>, vector<1x288x36xbf16>
    %2 = vector.shape_cast %1 : vector<1x288x36xbf16> to vector<288x36xbf16>
    %c0_4 = arith.constant 0 : index
    %c0_5 = arith.constant 0 : index
    %3 = vector.load %arg3[%c0_4, %c0_5] : memref<36x64xbf16, #tpu.memory_space<vmem>>, vector<36x64xbf16>
    %cst = arith.constant dense<0.000000e+00> : vector<288x64xf32>
    %4 = tpu.matmul %2, %3, %cst {dimension_numbers = #tpu.dot_dimension_numbers<[1], [0], [0], [1], [0, 0, 1, 1], [], []>} : vector<288x36xbf16>, vector<36x64xbf16>, vector<288x64xf32> -> vector<288x64xf32>
    %c0_6 = arith.constant 0 : index
    %c0_7 = arith.constant 0 : index
    %5 = vector.load %arg4[%c0_6, %c0_7] : memref<1x64xf32, #tpu.memory_space<vmem>>, vector<1x64xf32>
    %6 = vector.broadcast %5 : vector<1x64xf32> to vector<288x64xf32>
    %7 = arith.mulf %4, %6 : vector<288x64xf32>
    %c0_8 = arith.constant 0 : index
    %c0_9 = arith.constant 0 : index
    %8 = vector.load %arg5[%c0_8, %c0_9] : memref<1x64xf32, #tpu.memory_space<vmem>>, vector<1x64xf32>
    %9 = vector.broadcast %8 : vector<1x64xf32> to vector<288x64xf32>
    %10 = arith.addf %7, %9 : vector<288x64xf32>
    %cst_10 = arith.constant 0.000000e+00 : f32
    %11 = vector.broadcast %cst_10 : f32 to vector<288x64xf32>
    %12 = arith.maximumf %10, %11 : vector<288x64xf32>
    %13 = vector.broadcast %0 : vector<288x1xf32> to vector<288x64xf32>
    %14 = arith.mulf %12, %13 : vector<288x64xf32>
    %c51 = arith.constant 51 : index
    %c0_11 = arith.constant 0 : index
    %15 = vector.load %arg14[%c51, %c0_11] : memref<352x576xf32, #tpu.memory_space<vmem>>, vector<288x64xf32>
    tpu.vector_store %arg14[%c51, %c0_11], %14 {strides = array<i32>} : memref<352x576xf32, #tpu.memory_space<vmem>>, vector<288x64xf32>,
    %cst_12 = arith.constant 0.000000e+00 : f32
    %16 = vector.broadcast %cst_12 : f32 to vector<19x64xf32>
    %c32 = arith.constant 32 : index
    %c0_13 = arith.constant 0 : index
    %17 = vector.load %arg14[%c32, %c0_13] : memref<352x576xf32, #tpu.memory_space<vmem>>, vector<19x64xf32>
    tpu.vector_store %arg14[%c32, %c0_13], %16 {strides = array<i32>} : memref<352x576xf32, #tpu.memory_space<vmem>>, vector<19x64xf32>,
    %c50 = arith.constant 50 : index
    %c64 = arith.constant 64 : index
    %18 = vector.load %arg14[%c50, %c64] : memref<352x576xf32, #tpu.memory_space<vmem>>, vector<288x64xf32>
    tpu.vector_store %arg14[%c50, %c64], %14 {strides = array<i32>} : memref<352x576xf32, #tpu.memory_space<vmem>>, vector<288x64xf32>,
    %cst_14 = arith.constant 0.000000e+00 : f32
    %19 = vector.broadcast %cst_14 : f32 to vector<18x64xf32>
    %c32_15 = arith.constant 32 : index
    %c64_16 = arith.constant 64 : index
    %20 = vector.load %arg14[%c32_15, %c64_16] : memref<352x576xf32, #tpu.memory_space<vmem>>, vector<18x64xf32>
    tpu.vector_store %arg14[%c32_15, %c64_16], %19 {strides = array<i32>} : memref<352x576xf32, #tpu.memory_space<vmem>>, vector<18x64xf32>,
    %c49 = arith.constant 49 : index
    %c128 = arith.constant 128 : index
    %21 = vector.load %arg14[%c49, %c128] : memref<352x576xf32, #tpu.memory_space<vmem>>, vector<288x64xf32>
    tpu.vector_store %arg14[%c49, %c128], %14 {strides = array<i32>} : memref<352x576xf32, #tpu.memory_space<vmem>>, vector<288x64xf32>,
    %cst_17 = arith.constant 0.000000e+00 : f32
    %22 = vector.broadcast %cst_17 : f32 to vector<17x64xf32>
    %c32_18 = arith.constant 32 : index
    %c128_19 = arith.constant 128 : index
    %23 = vector.load %arg14[%c32_18, %c128_19] : memref<352x576xf32, #tpu.memory_space<vmem>>, vector<17x64xf32>
    tpu.vector_store %arg14[%c32_18, %c128_19], %22 {strides = array<i32>} : memref<352x576xf32, #tpu.memory_space<vmem>>, vector<17x64xf32>,
    %c33 = arith.constant 33 : index
    %c192 = arith.constant 192 : index
    %24 = vector.load %arg14[%c33, %c192] : memref<352x576xf32, #tpu.memory_space<vmem>>, vector<288x64xf32>
    tpu.vector_store %arg14[%c33, %c192], %14 {strides = array<i32>} : memref<352x576xf32, #tpu.memory_space<vmem>>, vector<288x64xf32>,
    %cst_20 = arith.constant 0.000000e+00 : f32
    %25 = vector.broadcast %cst_20 : f32 to vector<1x64xf32>
    %c32_21 = arith.constant 32 : index
    %c192_22 = arith.constant 192 : index
    %26 = vector.load %arg14[%c32_21, %c192_22] : memref<352x576xf32, #tpu.memory_space<vmem>>, vector<1x64xf32>
    tpu.vector_store %arg14[%c32_21, %c192_22], %25 {strides = array<i32>} : memref<352x576xf32, #tpu.memory_space<vmem>>, vector<1x64xf32>,
    %c32_23 = arith.constant 32 : index
    %c256 = arith.constant 256 : index
    %27 = vector.load %arg14[%c32_23, %c256] : memref<352x576xf32, #tpu.memory_space<vmem>>, vector<288x64xf32>
    tpu.vector_store %arg14[%c32_23, %c256], %14 {strides = array<i32>} : memref<352x576xf32, #tpu.memory_space<vmem>>, vector<288x64xf32>,
    %c31 = arith.constant 31 : index
    %c320 = arith.constant 320 : index
    %28 = vector.load %arg14[%c31, %c320] : memref<352x576xf32, #tpu.memory_space<vmem>>, vector<288x64xf32>
    tpu.vector_store %arg14[%c31, %c320], %14 {strides = array<i32>} : memref<352x576xf32, #tpu.memory_space<vmem>>, vector<288x64xf32>,
    %cst_24 = arith.constant 0.000000e+00 : f32
    %29 = vector.broadcast %cst_24 : f32 to vector<1x64xf32>
    %c319 = arith.constant 319 : index
    %c320_25 = arith.constant 320 : index
    %30 = vector.load %arg14[%c319, %c320_25] : memref<352x576xf32, #tpu.memory_space<vmem>>, vector<1x64xf32>
    tpu.vector_store %arg14[%c319, %c320_25], %29 {strides = array<i32>} : memref<352x576xf32, #tpu.memory_space<vmem>>, vector<1x64xf32>,
    %c15 = arith.constant 15 : index
    %c384 = arith.constant 384 : index
    %31 = vector.load %arg14[%c15, %c384] : memref<352x576xf32, #tpu.memory_space<vmem>>, vector<288x64xf32>
    tpu.vector_store %arg14[%c15, %c384], %14 {strides = array<i32>} : memref<352x576xf32, #tpu.memory_space<vmem>>, vector<288x64xf32>,
    %cst_26 = arith.constant 0.000000e+00 : f32
    %32 = vector.broadcast %cst_26 : f32 to vector<17x64xf32>
    %c303 = arith.constant 303 : index
    %c384_27 = arith.constant 384 : index
    %33 = vector.load %arg14[%c303, %c384_27] : memref<352x576xf32, #tpu.memory_space<vmem>>, vector<17x64xf32>
    tpu.vector_store %arg14[%c303, %c384_27], %32 {strides = array<i32>} : memref<352x576xf32, #tpu.memory_space<vmem>>, vector<17x64xf32>,
    %c14 = arith.constant 14 : index
    %c448 = arith.constant 448 : index
    %34 = vector.load %arg14[%c14, %c448] : memref<352x576xf32, #tpu.memory_space<vmem>>, vector<288x64xf32>
    tpu.vector_store %arg14[%c14, %c448], %14 {strides = array<i32>} : memref<352x576xf32, #tpu.memory_space<vmem>>, vector<288x64xf32>,
    %cst_28 = arith.constant 0.000000e+00 : f32
    %35 = vector.broadcast %cst_28 : f32 to vector<18x64xf32>
    %c302 = arith.constant 302 : index
    %c448_29 = arith.constant 448 : index
    %36 = vector.load %arg14[%c302, %c448_29] : memref<352x576xf32, #tpu.memory_space<vmem>>, vector<18x64xf32>
    tpu.vector_store %arg14[%c302, %c448_29], %35 {strides = array<i32>} : memref<352x576xf32, #tpu.memory_space<vmem>>, vector<18x64xf32>,
    %c13 = arith.constant 13 : index
    %c512 = arith.constant 512 : index
    %37 = vector.load %arg14[%c13, %c512] : memref<352x576xf32, #tpu.memory_space<vmem>>, vector<288x64xf32>
    tpu.vector_store %arg14[%c13, %c512], %14 {strides = array<i32>} : memref<352x576xf32, #tpu.memory_space<vmem>>, vector<288x64xf32>,
    %cst_30 = arith.constant 0.000000e+00 : f32
    %38 = vector.broadcast %cst_30 : f32 to vector<19x64xf32>
    %c301 = arith.constant 301 : index
    %c512_31 = arith.constant 512 : index
    %39 = vector.load %arg14[%c301, %c512_31] : memref<352x576xf32, #tpu.memory_space<vmem>>, vector<19x64xf32>
    tpu.vector_store %arg14[%c301, %c512_31], %38 {strides = array<i32>} : memref<352x576xf32, #tpu.memory_space<vmem>>, vector<19x64xf32>,
    %c32_32 = arith.constant 32 : index
    %c0_33 = arith.constant 0 : index
    %40 = vector.load %arg14[%c32_32, %c0_33] : memref<352x576xf32, #tpu.memory_space<vmem>>, vector<288x576xf32>
    %41 = arith.truncf %40 : vector<288x576xf32> to vector<288x576xbf16>
    %c0_34 = arith.constant 0 : index
    %c0_35 = arith.constant 0 : index
    %42 = vector.load %arg6[%c0_34, %c0_35] : memref<576x128xbf16, #tpu.memory_space<vmem>>, vector<576x128xbf16>
    %cst_36 = arith.constant dense<0.000000e+00> : vector<288x128xf32>
    %43 = tpu.matmul %41, %42, %cst_36 {dimension_numbers = #tpu.dot_dimension_numbers<[1], [0], [0], [1], [0, 0, 1, 1], [], []>} : vector<288x576xbf16>, vector<576x128xbf16>, vector<288x128xf32> -> vector<288x128xf32>
    %c0_37 = arith.constant 0 : index
    %c0_38 = arith.constant 0 : index
    %44 = vector.load %arg7[%c0_37, %c0_38] : memref<1x128xf32, #tpu.memory_space<vmem>>, vector<1x128xf32>
    %45 = vector.broadcast %44 : vector<1x128xf32> to vector<288x128xf32>
    %46 = arith.mulf %43, %45 : vector<288x128xf32>
    %c0_39 = arith.constant 0 : index
    %c0_40 = arith.constant 0 : index
    %47 = vector.load %arg8[%c0_39, %c0_40] : memref<1x128xf32, #tpu.memory_space<vmem>>, vector<1x128xf32>
    %48 = vector.broadcast %47 : vector<1x128xf32> to vector<288x128xf32>
    %49 = arith.addf %46, %48 : vector<288x128xf32>
    %cst_41 = arith.constant 0.000000e+00 : f32
    %50 = vector.broadcast %cst_41 : f32 to vector<288x128xf32>
    %51 = arith.maximumf %49, %50 : vector<288x128xf32>
    %52 = vector.broadcast %0 : vector<288x1xf32> to vector<288x128xf32>
    %53 = arith.mulf %51, %52 : vector<288x128xf32>
    %cst_42 = arith.constant dense<0.000000e+00> : vector<128xf32>
    %54 = vector.multi_reduction <add>, %53, %cst_42 [0] : vector<288x128xf32> to vector<128xf32>
    %55 = vector.shape_cast %54 : vector<128xf32> to vector<1x128xf32>
    %cst_43 = arith.constant 3.906250e-03 : f32
    %56 = vector.broadcast %cst_43 : f32 to vector<1x128xf32>
    %57 = arith.mulf %55, %56 : vector<1x128xf32>
    %c0_44 = arith.constant 0 : index
    %c0_45 = arith.constant 0 : index
    %58 = vector.load %arg9[%c0_44, %c0_45] : memref<2x128xf32, #tpu.memory_space<vmem>>, vector<2x128xf32>
    %59 = vector.broadcast %57 : vector<1x128xf32> to vector<2x128xf32>
    %60 = arith.mulf %59, %58 : vector<2x128xf32>
    %cst_46 = arith.constant dense<0.000000e+00> : vector<2xf32>
    %61 = vector.multi_reduction <add>, %60, %cst_46 [1] : vector<2x128xf32> to vector<2xf32>
    %62 = vector.shape_cast %61 : vector<2xf32> to vector<2x1xf32>
    %cst_47 = arith.constant 0.000000e+00 : f32
    %63 = vector.broadcast %cst_47 : f32 to vector<2x1xf32>
    %64 = arith.maximumf %62, %63 : vector<2x1xf32>
    %c0_48 = arith.constant 0 : index
    %c0_49 = arith.constant 0 : index
    %65 = vector.load %arg10[%c0_48, %c0_49] : memref<2x128xf32, #tpu.memory_space<vmem>>, vector<2x128xf32>
    %66 = vector.broadcast %64 : vector<2x1xf32> to vector<2x128xf32>
    %67 = arith.mulf %66, %65 : vector<2x128xf32>
    %cst_50 = arith.constant dense<0.000000e+00> : vector<128xf32>
    %68 = vector.multi_reduction <add>, %67, %cst_50 [0] : vector<2x128xf32> to vector<128xf32>
    %69 = vector.shape_cast %68 : vector<128xf32> to vector<1x128xf32>
    %70 = arith.negf %69 : vector<1x128xf32>
    %71 = math.exp %70 : vector<1x128xf32>
    %cst_51 = arith.constant 1.000000e+00 : f32
    %72 = vector.broadcast %cst_51 : f32 to vector<1x128xf32>
    %73 = arith.addf %72, %71 : vector<1x128xf32>
    %74 = arith.divf %72, %73 : vector<1x128xf32>
    %75 = vector.broadcast %74 : vector<1x128xf32> to vector<288x128xf32>
    %76 = arith.mulf %51, %75 : vector<288x128xf32>
    %c0_52 = arith.constant 0 : index
    %c0_53 = arith.constant 0 : index
    %77 = vector.load %arg11[%c0_52, %c0_53] : memref<8x128xf32, #tpu.memory_space<vmem>>, vector<8x128xf32>
    %cst_54 = arith.constant dense<0.000000e+00> : vector<8x288xf32>
    %78 = tpu.matmul %77, %76, %cst_54 {dimension_numbers = #tpu.dot_dimension_numbers<[1], [1], [0], [0], [0, 0, 1, 0], [], []>} : vector<8x128xf32>, vector<288x128xf32>, vector<8x288xf32> -> vector<8x288xf32>
    %c0_55 = arith.constant 0 : index
    %c0_56 = arith.constant 0 : index
    %79 = vector.load %arg12[%c0_55, %c0_56] : memref<8x1xf32, #tpu.memory_space<vmem>>, vector<8x1xf32>
    %80 = vector.broadcast %79 : vector<8x1xf32> to vector<8x288xf32>
    %81 = arith.addf %78, %80 : vector<8x288xf32>
    %c0_57 = arith.constant 0 : index
    %c0_58 = arith.constant 0 : index
    %c0_59 = arith.constant 0 : index
    %82 = vector.load %arg13[%c0_57, %c0_58, %c0_59] : memref<1x8x288xf32, #tpu.memory_space<vmem>>, vector<1x8x288xf32>
    %83 = vector.shape_cast %82 : vector<1x8x288xf32> to vector<8x288xf32>
    %84 = vector.shape_cast %81 : vector<8x288xf32> to vector<1x8x288xf32>
    tpu.vector_store %arg13[%c0_57, %c0_58, %c0_59], %84 {strides = array<i32>} : memref<1x8x288xf32, #tpu.memory_space<vmem>>, vector<1x8x288xf32>,
    return
  }
  func.func @transform_0(%arg0: i32) -> (i32, i32, i32) {
    %c0_i32 = arith.constant 0 : i32
    %c0_i32_0 = arith.constant 0 : i32
    %c0_i32_1 = arith.constant 0 : i32
    return %arg0, %c0_i32, %c0_i32_0 : i32, i32, i32
  }
  func.func @transform_1(%arg0: i32) -> (i32, i32) {
    %c0_i32 = arith.constant 0 : i32
    %c0_i32_0 = arith.constant 0 : i32
    %c0_i32_1 = arith.constant 0 : i32
    return %c0_i32, %c0_i32_0 : i32, i32
  }
  func.func @transform_2(%arg0: i32) -> (i32, i32) {
    %c0_i32 = arith.constant 0 : i32
    %c0_i32_0 = arith.constant 0 : i32
    %c0_i32_1 = arith.constant 0 : i32
    return %c0_i32, %c0_i32_0 : i32, i32
  }
  func.func @transform_3(%arg0: i32) -> (i32, i32) {
    %c0_i32 = arith.constant 0 : i32
    %c0_i32_0 = arith.constant 0 : i32
    %c0_i32_1 = arith.constant 0 : i32
    return %c0_i32, %c0_i32_0 : i32, i32
  }
  func.func @transform_4(%arg0: i32) -> (i32, i32) {
    %c0_i32 = arith.constant 0 : i32
    %c0_i32_0 = arith.constant 0 : i32
    %c0_i32_1 = arith.constant 0 : i32
    return %c0_i32, %c0_i32_0 : i32, i32
  }
  func.func @transform_5(%arg0: i32) -> (i32, i32) {
    %c0_i32 = arith.constant 0 : i32
    %c0_i32_0 = arith.constant 0 : i32
    %c0_i32_1 = arith.constant 0 : i32
    return %c0_i32, %c0_i32_0 : i32, i32
  }
  func.func @transform_6(%arg0: i32) -> (i32, i32) {
    %c0_i32 = arith.constant 0 : i32
    %c0_i32_0 = arith.constant 0 : i32
    %c0_i32_1 = arith.constant 0 : i32
    return %c0_i32, %c0_i32_0 : i32, i32
  }
  func.func @transform_7(%arg0: i32) -> (i32, i32) {
    %c0_i32 = arith.constant 0 : i32
    %c0_i32_0 = arith.constant 0 : i32
    %c0_i32_1 = arith.constant 0 : i32
    return %c0_i32, %c0_i32_0 : i32, i32
  }
  func.func @transform_8(%arg0: i32) -> (i32, i32) {
    %c0_i32 = arith.constant 0 : i32
    %c0_i32_0 = arith.constant 0 : i32
    %c0_i32_1 = arith.constant 0 : i32
    return %c0_i32, %c0_i32_0 : i32, i32
  }
  func.func @transform_9(%arg0: i32) -> (i32, i32) {
    %c0_i32 = arith.constant 0 : i32
    %c0_i32_0 = arith.constant 0 : i32
    %c0_i32_1 = arith.constant 0 : i32
    return %c0_i32, %c0_i32_0 : i32, i32
  }
  func.func @transform_10(%arg0: i32) -> (i32, i32) {
    %c0_i32 = arith.constant 0 : i32
    %c0_i32_0 = arith.constant 0 : i32
    %c0_i32_1 = arith.constant 0 : i32
    return %c0_i32, %c0_i32_0 : i32, i32
  }
  func.func @transform_11(%arg0: i32) -> (i32, i32) {
    %c0_i32 = arith.constant 0 : i32
    %c0_i32_0 = arith.constant 0 : i32
    %c0_i32_1 = arith.constant 0 : i32
    return %c0_i32, %c0_i32_0 : i32, i32
  }
  func.func @transform_12(%arg0: i32) -> (i32, i32, i32) {
    %c0_i32 = arith.constant 0 : i32
    %c0_i32_0 = arith.constant 0 : i32
    %c0_i32_1 = arith.constant 0 : i32
    return %arg0, %c0_i32, %c0_i32_0 : i32, i32, i32
  }
}

</mosaic_0001>

<bundles_post_ra>
// kernel: tpu_custom_call.1
= control target key start
LH: loop header
LB: loop body
LE: loop exit
PB: predicated region body
PF: predicated region fallthrough
CT: control target
= control target key end

     0   :  { %17 = vsyncpa [#allocation4], 0  ;;  %s7506_s0 = inlined_call_operand.vmem [shape: bf16[2,288,36], index: 0, kind: input, shape index: {}]   ;;  %s7507_s1 = inlined_call_operand.vmem [shape: f32[288,1], index: 1, kind: input, shape index: {}]   ;;  %s7508_s2 = inlined_call_operand.vmem [shape: bf16[36,64], index: 2, kind: input, shape index: {}]   ;;  %s7509_s3 = inlined_call_operand.vmem [shape: f32[1,64], index: 3, kind: input, shape index: {}]   ;;  %s7510_s4 = inlined_call_operand.vmem [shape: f32[1,64], index: 4, kind: input, shape index: {}]   ;;  %s7511_s5 = inlined_call_operand.vmem [shape: bf16[576,128], index: 5, kind: input, shape index: {}]   ;;  %s7512_s6 = inlined_call_operand.vmem [shape: f32[1,128], index: 6, kind: input, shape index: {}]   ;;  %s7513_s7 = inlined_call_operand.vmem [shape: f32[1,128], index: 7, kind: input, shape index: {}]   ;;  %s7514_s8 = inlined_call_operand.vmem [shape: f32[2,128], index: 8, kind: input, shape index: {}]   ;;  %s7515_s9 = inlined_call_operand.vmem [shape: f32[2,128], index: 9, kind: input, shape index: {}]   ;;  %s7516_s10 = inlined_call_operand.vmem [shape: f32[8,128], index: 10, kind: input, shape index: {}]   ;;  %s7517_s11 = inlined_call_operand.vmem [shape: f32[8,1], index: 11, kind: input, shape index: {}]   ;;  %s7518_s12 = inlined_call_operand.hbm [shape: f32[2,8,288], index: 12, kind: output, shape index: {}]  }
   0x1   :  { %19 = vsyncpa [#allocation4 + $0x1], 0  ;;  %s4560_s21 = smov 0   ;;  %s4562_s22 = smov 0  }
   0x2   :  { %s4564_s23 = smov 0   ;;  %s4566_s24 = smov 0  }
   0x3 LB: > { %7655 = sst [smem:[#allocation6_spill]] %s4486_s23  ;;  %s4581_s25 = sadd.s32 4294967295, %s4490_s24   ;;  %s4490_s24 = sphi %s4566_s24, %s8001_s24   ;;  %s4486_s23 = sphi %s4564_s23, %s7998_s23   ;;  %s4482_s22 = sphi %s4562_s22, %s8000_s22   ;;  %s4478_s21 = sphi %s4560_s21, %s7999_s21  }
   0x4   : > { %s4032_s26 = sadd.s32 4294967294, %s4490_s24   ;;  %s4585_s27 = sadd.s32 1, %s4490_s24  }
   0x5   : > { %s289_s28 = sadd.s32 1, %s4486_s23  ;;  %s286_s29 = ssub.s32 %s4490_s24, %s4585_s27 }
   0x6   : > { %p299_p0 = scmp.ne.s32.totalorder %s4486_s23, %s4482_s22  ;;  %p287_p1 = scmp.eq.s32.totalorder %s286_s29, 0 }
   0x7   : > { %p300_p2 = scmp.eq.s32.totalorder %s4581_s25, 1  ;;  %p305_p3 = scmp.ne.s32.totalorder %s4482_s22, %s4478_s21 }
   0x8   : > { %p306_p4 = scmp.eq.s32.totalorder %s4032_s26, 1  ;;  %p4035_p7 = scmp.ge.s32.totalorder %s4490_s24, 1 }
   0x9   : > { %s4596_s30 = scalar_select %p287_p1, %s4486_s23, %s289_s28  }
   0xa   : > { %p4598_p5 = por %p300_p2, %p299_p0  ;;  %p4602_p6 = por %p306_p4, %p305_p3 }
   0xb   : > { %7656 = sst [smem:[#allocation7_spill]] %s4596_s30  ;;  %p365_p8 = scmp.lt.s32.totalorder %s4490_s24, 3 }
   0xd   : > { %p366_p9 = pnand %p4035_p7, %p365_p8 }
   0xf   : > { %369 = sbr.rel (%p366_p9) target bundleno = 1567 (0x61f), region = 68 }
  0x14   : > { %v489_v0 = vld [vmem:[%s7508_s2 + $0x10] sm:$0x3]  ;;  %p407_p10 = scmp.lt.s32.totalorder %s4581_s25, 1  ;;  %v413_v2 = vld [vmem:[%s7507_s1] sm:$0xff]  ;;  %vm650_vm0 = vcmask 1041408   ;;  %v4492_v3 = vmov 0  }
  0x15   : > { %v589_v1 = vunpack.c.l.b16 %v489_v0  ;;  %4413 = vset.pattern.permute.xlu0 %v4492_v3  ;;  %4414 = vset.pattern.permute.xlu1 %v4492_v3  ;;  %v4320_v6 = vld [vmem:[%s7508_s2 + $0x8] sm:$0xff]  ;;  %v4319_v8 = vld [vmem:[%s7508_s2] sm:$0xff]  ;;  %vm595_vm1 = vcmask 293888   ;;  %v416_v11 = vld [vmem:[%s7507_s1 + $0x18] sm:$0xff]  ;;  %vm2472_vm2 = vcmask 523269   ;;  %v7525_v37 = vmov 0.0  }
  0x16   : > { %s408_s19 = scalar_select %p407_p10, %s4581_s25, 1  ;;  %871 = vperm.xlu0 %4413, %v413_v2   ;;  %4415 = vset.pattern.permute.xlu2 %v4492_v3  ;;  %v414_v7 = vld [vmem:[%s7507_s1 + $0x8] sm:$0xff]  ;;  %v431_v12 = vld [vmem:[%s7507_s1 + $0x90] sm:$0xff]  ;;  %v432_v14 = vld [vmem:[%s7507_s1 + $0x98] sm:$0xff]  ;;  %2511 = vst.msk [vmem:[#allocation2 + $0x5e8] sm:$0xe0] %vm2472_vm2, %v7525_v37 }
  0x17   : > { %v592_v4 = vpack.c.b16 %v589_v1, %v589_v1  ;;  %v430_v10 = vld [vmem:[%s7507_s1 + $0x88] sm:$0xff]  ;;  %v433_v15 = vld [vmem:[%s7507_s1 + $0xa0] sm:$0xff]  ;;  %966 = vperm.xlu2 %4415, %v432_v14   ;;  %v415_v18 = vld [vmem:[%s7507_s1 + $0x10] sm:$0xff]  ;;  %vm1232_vm3 = vcmask 523264   ;;  %vm2096_vm4 = vcmask 523271   ;;  %vm1230_vm5 = vcmask 523267  }
  0x18   : > { %s4369_s28 = smul.u32 144, %s408_s19  ;;  %956 = vperm.xlu1 %4414, %v430_v10   ;;  %v417_v16 = vld [vmem:[%s7507_s1 + $0x20] sm:$0xff]  ;;  %v418_v17 = vld [vmem:[%s7507_s1 + $0x28] sm:$0xff]  ;;  %v436_v19 = vld [vmem:[%s7507_s1 + $0xb8] sm:$0xff]  ;;  %1270 = vst.msk [vmem:[#allocation2 + $0xa0] sm:$0xff] %vm1232_vm3, %v7525_v37  ;;  %vm1607_vm6 = vcmask 523265  }
  0x19   : > { %v652_v5 = vsel %vm650_vm0, %v592_v4, 0  ;;  %v419_v21 = vld [vmem:[%s7507_s1 + $0x30] sm:$0xff]  ;;  %v420_v22 = vld [vmem:[%s7507_s1 + $0x38] sm:$0xff]  ;;  %v434_v24 = vld [vmem:[%s7507_s1 + $0xa8] sm:$0xff]  ;;  %1271 = vst.msk [vmem:[#allocation2 + $0xc8] sm:$0xff] %vm1232_vm3, %v7525_v37  ;;  %s4494_s26 = smov 64  }
  0x1a   : > { %659 = vmatpush.bf16.msra.mxu0 %v652_v5  ;;  %4357 = vmatpush.bf16.msra.mxu2 %v652_v5  ;;  %s4629_s23 = scalar_lea.vmem %s7506_s0, %s4369_s28  ;;  %v422_v26 = vld [vmem:[%s7507_s1 + $0x48] sm:$0xff]  ;;  %v435_v27 = vld [vmem:[%s7507_s1 + $0xb0] sm:$0xff]  ;;  %v421_v31 = vld [vmem:[%s7507_s1 + $0x40] sm:$0xff]  ;;  %1646 = vst.msk [vmem:[#allocation2 + $0xa8] sm:$0xff] %vm1232_vm3, %v7525_v37  ;;  %vm2363_vm7 = vcmask 1044480   ;;  %vm1121_vm8 = vcmask 1042432  }
  0x1b   : > { %v4301_v9 = vld [vmem:[%s4629_s23] sm:$0xff]  ;;  %v4302_v13 = vld [vmem:[%s4629_s23 + $0x8] sm:$0xff]  ;;  %v4303_v20 = vld [vmem:[%s4629_s23 + $0x10] sm:$0xff]  ;;  %1647 = vst.msk [vmem:[#allocation2 + $0xd0] sm:$0xff] %vm1232_vm3, %v7525_v37  ;;  %vm1836_vm9 = vcmask 1046528   ;;  %vm1498_vm10 = vcmask 1040384  }
  0x1c   : > { %v4304_v23 = vld [vmem:[%s4629_s23 + $0x18] sm:$0xff]  ;;  %v4305_v28 = vld [vmem:[%s4629_s23 + $0x20] sm:$0xff]  ;;  %v438_v29 = vld [vmem:[%s7507_s1 + $0xc8] sm:$0xff]  ;;  %2136 = vst.msk [vmem:[#allocation2 + $0x608] sm:$0xff] %vm1232_vm3, %v7525_v37  ;;  %vm2138_vm11 = vcmask 1045504   ;;  %vm1457_vm12 = vcmask 1048064  }
  0x1d   : > { %v4312_v25 = vld [vmem:[%s4629_s23 + $0x58] sm:$0xff]  ;;  %v4313_v30 = vld [vmem:[%s4629_s23 + $0x60] sm:$0xff]  ;;  %v4306_v32 = vld [vmem:[%s4629_s23 + $0x28] sm:$0xff]  ;;  %2137 = vst.msk [vmem:[#allocation2 + $0x630] sm:$0xff] %vm1232_vm3, %v7525_v37  ;;  %vm1268_vm13 = vcmask 518144   ;;  %vm1493_vm14 = vcmask 1041920  }
  0x1e   : > { %660 = vmatpush.bf16.msra.mxu0 %v4320_v6  ;;  %4358 = vmatpush.bf16.msra.mxu2 %v4320_v6  ;;  %v4314_v33 = vld [vmem:[%s4629_s23 + $0x68] sm:$0xff]  ;;  %v437_v34 = vld [vmem:[%s7507_s1 + $0xc0] sm:$0xff]  ;;  %v4307_v35 = vld [vmem:[%s4629_s23 + $0x30] sm:$0xff]  ;;  %2512 = vst.msk [vmem:[#allocation2 + $0x610] sm:$0xff] %vm1232_vm3, %v7525_v37  ;;  %vm1455_vm15 = vcmask 1048066   ;;  %vm1797_vm2 = vcmask 1040896  }
  0x1f   : > { %876 = vperm.xlu0 %4413, %v414_v7   ;;  %881 = vperm.xlu2 %4415, %v415_v18   ;;  %v440_v36 = vld [vmem:[%s7507_s1 + $0xd8] sm:$0xff]  ;;  %2513 = vst.msk [vmem:[#allocation2 + $0x638] sm:$0xff] %vm1232_vm3, %v7525_v37  ;;  %v439_v39 = vld [vmem:[%s7507_s1 + $0xd0] sm:$0xff]  ;;  %v4730_v40 = vld [vmem:[%s7509_s3] ss:$0 sm:$0xff]  ;;  %s404_s20 = sand.u32 1, %s4482_s22  }
  0x20   : > { %961 = vperm.xlu1 %4414, %v431_v12   ;;  %v4308_v38 = vld [vmem:[%s4629_s23 + $0x38] sm:$0xff]  ;;  %v4735_v41 = vld [vmem:[%s7510_s4] ss:$0 sm:$0xff]  ;;  %2135 = vst.msk [vmem:[#allocation2 + $0x5e0] sm:$0x80] %vm2096_vm4, %v7525_v37  ;;  %v4310_v61 = vld [vmem:[%s4629_s23 + $0x48] sm:$0xff] }
  0x21   : > { %v4309_v42 = vld [vmem:[%s4629_s23 + $0x40] sm:$0xff]  ;;  %vm1644_vm4 = vcmask 516096   ;;  %s4370_s29 = smul.u32 24, %s4581_s25  ;;  %s3957_s18 = scalar_lea.sflag [#allocation4], %s404_s20 }
  0x22   : > { %661 = vmatpush.bf16.msra.mxu0 %v4319_v8  ;;  %4359 = vmatpush.bf16.msra.mxu2 %v4319_v8 }
  0x23   : > { %s3968_s15 = scalar_lea.hbm %s7518_s12, %s4370_s29  ;;  %s4448_s29 = scalar_lea.hbm %s7518_s12, 48 }
  0x24   : > { %s3972_s17 = sshll.u32 %s3968_s15, 4  ;;  %s3973_s17 = int_to_ptr.hbm [resolvable:$true] %s3972_s17 }
  0x25   : > { %4117 = vmatmul.msk.bf16.vlgmr.msra.gmra.mxu0 %vm595_vm1, %v4301_v9  ;;  %4128 = vmatmul.msk.bf16.vlgmr.msra.gmra.mxu2 %vm595_vm1, %v4312_v25  ;;  %s4442_s19 = sshra.s32 %s3973_s17, 4  ;;  %s4443_s19 = int_to_ptr.hbm [resolvable:$true] %s4442_s19 }
  0x26   : > { %p4449_p0 = scmp.lt.s32.totalorder %s4443_s19, %s7518_s12 }
  0x27   : > { %886 = vperm.xlu0 %4413, %v416_v11   ;;  %976 = vperm.xlu2 %4415, %v434_v24  }
  0x28   : > { %971 = vperm.xlu1 %4414, %v433_v15  }
  0x2f   : > { %891 = vperm.xlu0 %4413, %v417_v16   ;;  %981 = vperm.xlu2 %4415, %v435_v27  }
  0x30   : > { %896 = vperm.xlu1 %4414, %v418_v17  }
  0x35   : > { %4118 = vmatmul.msk.bf16.gmra.mxu0 %vm595_vm1, %v4302_v13  ;;  %4129 = vmatmul.msk.bf16.gmra.mxu2 %vm595_vm1, %v4313_v30 }
  0x37   : > { %986 = vperm.xlu0 %4413, %v436_v19   ;;  %996 = vperm.xlu2 %4415, %v438_v29  }
  0x38   : > { %906 = vperm.xlu1 %4414, %v420_v22  }
  0x3f   : > { %901 = vperm.xlu0 %4413, %v419_v21   ;;  %911 = vperm.xlu2 %4415, %v421_v31  }
  0x40   : > { %991 = vperm.xlu1 %4414, %v437_v34  }
  0x45   : > { %4119 = vmatmul.msk.bf16.gmra.mxu0 %vm595_vm1, %v4303_v20  ;;  %4130 = vmatmul.msk.bf16.gmra.mxu2 %vm595_vm1, %v4314_v33  ;;  %v4311_v33 = vld [vmem:[%s4629_s23 + $0x50] sm:$0xff] }
  0x47   : > { %916 = vperm.xlu0 %4413, %v422_v26  }
  0x48   : > { %1006 = vperm.xlu1 %4414, %v440_v36  }
  0x4f   : > { %1001 = vperm.xlu0 %4413, %v439_v39  }
  0x55   : > { %4120 = vmatmul.msk.bf16.gmra.mxu0 %vm595_vm1, %v4304_v23 }
  0x65   : > { %4121 = vmatmul.msk.bf16.gmra.mxu0 %vm595_vm1, %v4305_v28 }
  0x71   : > { %v4752_v53 = vpop.permute.xlu2 %966 }
  0x72   : > { %7661 = vst [vmem:[#allocation10_spill] sm:$0xff] %v4752_v53 }
  0x75   : > { %4122 = vmatmul.msk.bf16.gmra.mxu0 %vm595_vm1, %v4306_v32 }
  0x79   : > { %v4775_v9 = vpop.permute.xlu2 %881 }
  0x7a   : > { %7664 = vst [vmem:[#allocation13_spill] sm:$0xff] %v4775_v9 }
  0x85   : > { %4123 = vmatmul.msk.bf16.gmra.mxu0 %vm595_vm1, %v4307_v35 }
  0x88   : > { %v4740_v45 = vpop.permute.xlu0 %871 }
  0x89   : > { %7659 = vst [vmem:[#allocation8_spill] sm:$0xff] %v4740_v45 }
  0x8a   : > { %v4763_v59 = vpop.permute.xlu1 %956 }
  0x8b   : > { %7663 = vst [vmem:[#allocation12_spill] sm:$0xff] %v4763_v59 }
  0x91   : > { %v4760_v57 = vpop.permute.xlu0 %876 }
  0x92   : > { %7662 = vst [vmem:[#allocation11_spill] sm:$0xff] %v4760_v57  ;;  %v4797_v17 = vpop.permute.xlu1 %961 }
  0x93   : > { %7667 = vst [vmem:[#allocation16_spill] sm:$0xff] %v4797_v17 }
  0x95   : > { %4124 = vmatmul.msk.bf16.gmra.mxu0 %vm595_vm1, %v4308_v38 }
  0x99   : > { %v4792_v14 = vpop.permute.xlu0 %886 }
  0x9a   : > { %7666 = vst [vmem:[#allocation15_spill] sm:$0xff] %v4792_v14 }
  0xa1   : > { %v4819_v35 = vpop.permute.xlu0 %891 }
  0xa2   : > { %v663_v43 = vpop.f32.mrf.mxu0  ;;  %7669 = vst [vmem:[#allocation18_spill] sm:$0xff] %v4819_v35 }
  0xa3   : > { %v757_v44 = vmul.f32 %v4730_v40, %v663_v43  ;;  %v4823_v43 = vpop.permute.xlu1 %971 }
  0xa4   : > { %7670 = vst [vmem:[#allocation19_spill] sm:$0xff] %v4823_v43 }
  0xa5   : > { %v797_v46 = vadd.f32 %v4735_v41, %v757_v44  ;;  %4125 = vmatmul.msk.bf16.gmra.mxu0 %vm595_vm1, %v4309_v42 }
  0xa7   : > { %v833_v47 = vmax.f32 %v797_v46, 0.0 }
  0xa9   : > { %v4745_v48 = vmul.f32 %v4740_v45, %v833_v47 }
  0xaa   : > { %v665_v49 = vpop.f32.mrf.mxu0 }
  0xab   : > { %7660 = vst [vmem:[#allocation9_spill] sm:$0xff] %v4745_v48  ;;  %v758_v50 = vmul.f32 %v4730_v40, %v665_v49  ;;  %v1273_v51 = vrot.slane %v4745_v48, 6  ;;  %v1122_v52 = vrot.slane %v4745_v48, 5  ;;  %v4755_v54 = vrot.slane %v4745_v48, 7 }
  0xac   : > { %1800 = vst.msk [vmem:[#allocation2 + $0xb0] sm:$0xff] %vm1232_vm3, %v4745_v48  ;;  %v7521_v55 = vrot.slane %v4745_v48, 1  ;;  %v7520_v4 = vrot.slane %v4745_v48, 2 }
  0xad   : > { %v798_v56 = vadd.f32 %v4735_v41, %v758_v50  ;;  %1344 = vrot.lane.b32.xlu1 %v1273_v51, %s4494_s26  ;;  %1231 = vst.msk [vmem:[#allocation2 + $0xf0] sm:$0xf8] %vm1230_vm5, %v1122_v52  ;;  %vm1760_vm5 = vcmask 1048065  }
  0xae   : > { %1608 = vst.msk [vmem:[#allocation2 + $0xf8] sm:$0xfe] %vm1607_vm6, %v4755_v54  ;;  %vm2133_vm6 = vcmask 522240  }
  0xaf   : > { %v834_v58 = vmax.f32 %v798_v56, 0.0 }
  0xb1   : > { %v1050_v60 = vmul.f32 %v4760_v57, %v834_v58  ;;  %v4315_v57 = vld [vmem:[%s4629_s23 + $0x70] sm:$0xff] }
  0xb2   : > { %v668_v62 = vpop.f32.mrf.mxu0  ;;  %4131 = vmatmul.msk.bf16.gmra.mxu2 %vm595_vm1, %v4315_v57 }
  0xb3   : > { %1801 = vst.msk [vmem:[#allocation2 + $0xd8] sm:$0xff] %vm1232_vm3, %v1050_v60  ;;  %v759_v63 = vmul.f32 %v4730_v40, %v668_v62  ;;  %v1274_v0 = vrot.slane %v1050_v60, 6  ;;  %v1123_v1 = vrot.slane %v1050_v60, 5  ;;  %v1838_v2 = vrot.slane %v1050_v60, 1  ;;  %v4842_v62 = vpop.permute.xlu2 %976 }
  0xb4   : > { %v1500_v3 = vrot.slane %v1050_v60, 7  ;;  %v2140_v5 = vrot.slane %v1050_v60, 2  ;;  %7671 = vst [vmem:[#allocation20_spill] sm:$0xff] %v4842_v62 }
  0xb5   : > { %v799_v6 = vadd.f32 %v4735_v41, %v759_v63  ;;  %4126 = vmatmul.msk.bf16.gmra.mxu0 %vm595_vm1, %v4310_v61  ;;  %v1275_v7 = vsel %vm650_vm0, %v1273_v51, %v1274_v0  ;;  %v1124_v8 = vsel %vm1121_vm8, %v1122_v52, %v1123_v1  ;;  %v4780_v10 = vsel %vm1836_vm9, %v7521_v55, %v1838_v2 }
  0xb6   : > { %1346 = vrot.lane.b32.xlu2 %v1275_v7, %s4494_s26  ;;  %v4784_v11 = vsel %vm1498_vm10, %v4755_v54, %v1500_v3  ;;  %v4789_v12 = vsel %vm2138_vm11, %v7520_v4, %v2140_v5  ;;  %1233 = vst.msk [vmem:[#allocation2 + $0x118] sm:$0xff] %vm1232_vm3, %v1124_v8  ;;  %v4854_v7 = vpop.permute.xlu0 %986 }
  0xb7   : > { %7665 = vst [vmem:[#allocation14_spill] sm:$0xff] %v4789_v12  ;;  %v835_v13 = vmax.f32 %v799_v6, 0.0 }
  0xb8   : > { %1609 = vst.msk [vmem:[#allocation2 + $0x120] sm:$0xff] %vm1232_vm3, %v4784_v11 }
  0xb9   : > { %v1051_v15 = vmul.f32 %v4775_v9, %v835_v13  ;;  %7672 = vst [vmem:[#allocation21_spill] sm:$0xff] %v4854_v7 }
  0xba   : > { %v670_v16 = vpop.f32.mrf.mxu0 }
  0xbb   : > { %v2367_v18 = vrot.slane %v1051_v15, 3  ;;  %1802 = vst.msk [vmem:[#allocation2 + $0x100] sm:$0xff] %vm1232_vm3, %v1051_v15  ;;  %v760_v19 = vmul.f32 %v4730_v40, %v670_v16  ;;  %v1276_v20 = vrot.slane %v1051_v15, 6  ;;  %v1125_v21 = vrot.slane %v1051_v15, 5 }
  0xbc   : > { %v1840_v22 = vrot.slane %v1051_v15, 1  ;;  %v2142_v23 = vrot.slane %v1051_v15, 2  ;;  %v1502_v24 = vrot.slane %v1051_v15, 7 }
  0xbd   : > { %v800_v25 = vadd.f32 %v4735_v41, %v760_v19  ;;  %v1277_v26 = vsel %vm650_vm0, %v1274_v0, %v1276_v20  ;;  %v1126_v27 = vsel %vm1121_vm8, %v1123_v1, %v1125_v21 }
  0xbe   : > { %1348 = vrot.lane.b32.xlu0 %v1277_v26, %s4494_s26  ;;  %v4806_v28 = vsel %vm1836_vm9, %v1838_v2, %v1840_v22  ;;  %v4809_v29 = vsel %vm1498_vm10, %v1500_v3, %v1502_v24  ;;  %v4812_v30 = vsel %vm2138_vm11, %v2140_v5, %v2142_v23  ;;  %1234 = vst.msk [vmem:[#allocation2 + $0x140] sm:$0xff] %vm1232_vm3, %v1126_v27  ;;  %v423_v3 = vld [vmem:[%s7507_s1 + $0x50] sm:$0xff] }
  0xbf   : > { %7668 = vst [vmem:[#allocation17_spill] sm:$0xff] %v4812_v30  ;;  %v836_v31 = vmax.f32 %v800_v25, 0.0 }
  0xc0   : > { %1610 = vst.msk [vmem:[#allocation2 + $0x148] sm:$0xff] %vm1232_vm3, %v4809_v29 }
  0xc1   : > { %v1052_v32 = vmul.f32 %v4792_v14, %v836_v31  ;;  %v4879_v31 = vpop.permute.xlu2 %981 }
  0xc2   : > { %v673_v34 = vpop.f32.mrf.mxu0  ;;  %7674 = vst [vmem:[#allocation23_spill] sm:$0xff] %v4879_v31 }
  0xc3   : > { %v2369_v36 = vrot.slane %v1052_v32, 3  ;;  %1803 = vst.msk [vmem:[#allocation2 + $0x128] sm:$0xff] %vm1232_vm3, %v1052_v32  ;;  %v761_v38 = vmul.f32 %v4730_v40, %v673_v34  ;;  %v1278_v39 = vrot.slane %v1052_v32, 6  ;;  %v1127_v42 = vrot.slane %v1052_v32, 5 }
  0xc4   : > { %v2144_v44 = vrot.slane %v1052_v32, 2  ;;  %v1842_v46 = vrot.slane %v1052_v32, 1  ;;  %v1504_v47 = vrot.slane %v1052_v32, 7 }
  0xc5   : > { %v2370_v49 = vsel %vm2363_vm7, %v2367_v18, %v2369_v36  ;;  %v801_v50 = vadd.f32 %v4735_v41, %v761_v38  ;;  %4127 = vmatmul.msk.bf16.gmra.mxu0 %vm595_vm1, %v4311_v33  ;;  %v1279_v51 = vsel %vm650_vm0, %v1276_v20, %v1278_v39  ;;  %v1128_v52 = vsel %vm1121_vm8, %v1125_v21, %v1127_v42  ;;  %v4862_v21 = vpop.permute.xlu1 %896 }
  0xc6   : > { %2476 = vst.msk [vmem:[#allocation2 + $0xc0] sm:$0xff] %vm1232_vm3, %v2370_v49  ;;  %1350 = vrot.lane.b32.xlu1 %v1279_v51, %s4494_s26  ;;  %v4833_v56 = vsel %vm2138_vm11, %v2142_v23, %v2144_v44  ;;  %v4836_v58 = vsel %vm1836_vm9, %v1840_v22, %v1842_v46  ;;  %v4839_v60 = vsel %vm1498_vm10, %v1502_v24, %v1504_v47 }
  0xc7   : > { %v837_v61 = vmax.f32 %v801_v50, 0.0  ;;  %1235 = vst.msk [vmem:[#allocation2 + $0x168] sm:$0xff] %vm1232_vm3, %v1128_v52  ;;  %v4890_v50 = vpop.permute.xlu0 %901 }
  0xc8   : > { %2100 = vst.msk [vmem:[#allocation2 + $0xb8] sm:$0xff] %vm1232_vm3, %v4836_v58 }
  0xc9   : > { %v1053_v63 = vmul.f32 %v4819_v35, %v837_v61  ;;  %1611 = vst.msk [vmem:[#allocation2 + $0x170] sm:$0xff] %vm1232_vm3, %v4839_v60 }
  0xca   : > { %v675_v0 = vpop.f32.mrf.mxu0  ;;  %7673 = vst [vmem:[#allocation22_spill] sm:$0xff] %v4862_v21 }
  0xcb   : > { %v2371_v1 = vrot.slane %v1053_v63, 3  ;;  %1804 = vst.msk [vmem:[#allocation2 + $0x150] sm:$0xff] %vm1232_vm3, %v1053_v63  ;;  %v762_v2 = vmul.f32 %v4730_v40, %v675_v0  ;;  %v1280_v5 = vrot.slane %v1053_v63, 6  ;;  %v1129_v6 = vrot.slane %v1053_v63, 5 }
  0xcc   : > { %v2146_v8 = vrot.slane %v1053_v63, 2  ;;  %v1844_v13 = vrot.slane %v1053_v63, 1  ;;  %v1506_v15 = vrot.slane %v1053_v63, 7  ;;  %7675 = vst [vmem:[#allocation24_spill] sm:$0xff] %v4890_v50 }
  0xcd   : > { %v2372_v16 = vsel %vm2363_vm7, %v2369_v36, %v2371_v1  ;;  %v802_v18 = vadd.f32 %v4735_v41, %v762_v2  ;;  %v1281_v19 = vsel %vm650_vm0, %v1278_v39, %v1280_v5  ;;  %v1130_v20 = vsel %vm1121_vm8, %v1127_v42, %v1129_v6 }
  0xce   : > { %2477 = vst.msk [vmem:[#allocation2 + $0xe8] sm:$0xff] %vm1232_vm3, %v2372_v16  ;;  %921 = vperm.xlu1 %4414, %v423_v3   ;;  %1352 = vrot.lane.b32.xlu2 %v1281_v19, %s4494_s26  ;;  %v4865_v22 = vsel %vm2138_vm11, %v2144_v44, %v2146_v8  ;;  %v4868_v23 = vsel %vm1836_vm9, %v1842_v46, %v1844_v13  ;;  %v718_v3 = vpop.f32.mrf.mxu2 }
  0xcf   : > { %v4871_v24 = vsel %vm1498_vm10, %v1504_v47, %v1506_v15  ;;  %v838_v25 = vmax.f32 %v802_v18, 0.0  ;;  %1236 = vst.msk [vmem:[#allocation2 + $0x190] sm:$0xff] %vm1232_vm3, %v1130_v20 }
  0xd0   : > { %2101 = vst.msk [vmem:[#allocation2 + $0xe0] sm:$0xff] %vm1232_vm3, %v4868_v23 }
  0xd1   : > { %v1054_v26 = vmul.f32 %v4862_v21, %v838_v25  ;;  %1612 = vst.msk [vmem:[#allocation2 + $0x198] sm:$0xff] %vm1232_vm3, %v4871_v24 }
  0xd2   : > { %v678_v27 = vpop.f32.mrf.mxu0 }
  0xd3   : > { %v2373_v32 = vrot.slane %v1054_v26, 3  ;;  %1805 = vst.msk [vmem:[#allocation2 + $0x178] sm:$0xff] %vm1232_vm3, %v1054_v26  ;;  %v763_v33 = vmul.f32 %v4730_v40, %v678_v27  ;;  %v1282_v34 = vrot.slane %v1054_v26, 6  ;;  %v1131_v36 = vrot.slane %v1054_v26, 5 }
  0xd4   : > { %v2148_v38 = vrot.slane %v1054_v26, 2  ;;  %v1846_v39 = vrot.slane %v1054_v26, 1  ;;  %v1508_v42 = vrot.slane %v1054_v26, 7  ;;  %v4327_v26 = vld [vmem:[%s7511_s5 + $0x30] sm:$0xff] }
  0xd5   : > { %v2374_v44 = vsel %vm2363_vm7, %v2371_v1, %v2373_v32  ;;  %v803_v46 = vadd.f32 %v4735_v41, %v763_v33  ;;  %v4886_v47 = vsel %vm650_vm0, %v1280_v5, %v1282_v34  ;;  %v1132_v49 = vsel %vm1121_vm8, %v1129_v6, %v1131_v36  ;;  %v4328_v1 = vld [vmem:[%s7511_s5 + $0x38] sm:$0xff] }
  0xd6   : > { %2478 = vst.msk [vmem:[#allocation2 + $0x110] sm:$0xff] %vm1232_vm3, %v2374_v44  ;;  %v4893_v51 = vsel %vm2138_vm11, %v2146_v8, %v2148_v38  ;;  %v4896_v52 = vsel %vm1836_vm9, %v1844_v13, %v1846_v39  ;;  %v4899_v61 = vsel %vm1498_vm10, %v1506_v15, %v1508_v42  ;;  %3126 = vmatpush.bf16.msra.mxu1 %v4328_v1  ;;  %v4918_v15 = vpop.permute.xlu2 %996  ;;  %v4933_v44 = vpop.permute.xlu1 %906 }
  0xd7   : > { %v839_v63 = vmax.f32 %v803_v46, 0.0  ;;  %1237 = vst.msk [vmem:[#allocation2 + $0x1b8] sm:$0xff] %vm1232_vm3, %v1132_v49  ;;  %4360 = vmatpush.bf16.msra.mxu3 %v4328_v1 }
  0xd8   : > { %2102 = vst.msk [vmem:[#allocation2 + $0x108] sm:$0xff] %vm1232_vm3, %v4896_v52 }
  0xd9   : > { %v4905_v0 = vmul.f32 %v4890_v50, %v839_v63  ;;  %1613 = vst.msk [vmem:[#allocation2 + $0x1c0] sm:$0xff] %vm1232_vm3, %v4899_v61 }
  0xda   : > { %v680_v2 = vpop.f32.mrf.mxu0  ;;  %7676 = vst [vmem:[#allocation25_spill] sm:$0xff] %v4918_v15  ;;  %3127 = vmatpush.bf16.msra.mxu1 %v4327_v26 }
  0xdb   : > { %v2375_v5 = vrot.slane %v4905_v0, 3  ;;  %1806 = vst.msk [vmem:[#allocation2 + $0x1a0] sm:$0xff] %vm1232_vm3, %v4905_v0  ;;  %v764_v6 = vmul.f32 %v4730_v40, %v680_v2  ;;  %v1284_v8 = vrot.slane %v4905_v0, 6  ;;  %v1133_v13 = vrot.slane %v4905_v0, 5  ;;  %4361 = vmatpush.bf16.msra.mxu3 %v4327_v26 }
  0xdc   : > { %v2150_v16 = vrot.slane %v4905_v0, 2  ;;  %v1848_v18 = vrot.slane %v4905_v0, 1  ;;  %v1510_v19 = vrot.slane %v4905_v0, 7  ;;  %7677 = vst [vmem:[#allocation26_spill] sm:$0xff] %v4933_v44  ;;  %v779_v0 = vmul.f32 %v4730_v40, %v718_v3 }
  0xdd   : > { %v2376_v20 = vsel %vm2363_vm7, %v2373_v32, %v2375_v5  ;;  %v804_v25 = vadd.f32 %v4735_v41, %v764_v6  ;;  %v4929_v27 = vsel %vm650_vm0, %v1282_v34, %v1284_v8  ;;  %v1134_v33 = vsel %vm1121_vm8, %v1131_v36, %v1133_v13 }
  0xde   : > { %2479 = vst.msk [vmem:[#allocation2 + $0x138] sm:$0xff] %vm1232_vm3, %v2376_v20  ;;  %v4936_v46 = vsel %vm2138_vm11, %v2148_v38, %v2150_v16  ;;  %v4939_v32 = vsel %vm1836_vm9, %v1846_v39, %v1848_v18  ;;  %v4942_v49 = vsel %vm1498_vm10, %v1508_v42, %v1510_v19  ;;  %v819_v36 = vadd.f32 %v4735_v41, %v779_v0  ;;  %v4326_v38 = vld [vmem:[%s7511_s5 + $0x28] sm:$0xff]  ;;  %v720_v42 = vpop.f32.mrf.mxu2 }
  0xdf   : > { %7678 = vst [vmem:[#allocation27_spill] sm:$0xff] %v4942_v49  ;;  %v840_v63 = vmax.f32 %v804_v25, 0.0  ;;  %3128 = vmatpush.bf16.msra.mxu1 %v4326_v38  ;;  %4362 = vmatpush.bf16.msra.mxu3 %v4326_v38 }
  0xe0   : > { %1238 = vst.msk [vmem:[#allocation2 + $0x1e0] sm:$0xff] %vm1232_vm3, %v1134_v33  ;;  %v855_v3 = vmax.f32 %v819_v36, 0.0  ;;  %v4325_v36 = vld [vmem:[%s7511_s5 + $0x20] sm:$0xff] }
  0xe1   : > { %2103 = vst.msk [vmem:[#allocation2 + $0x130] sm:$0xff] %vm1232_vm3, %v4939_v32  ;;  %v4949_v34 = vmul.f32 %v4933_v44, %v840_v63 }
  0xe2   : > { %1614 = vst.msk [vmem:[#allocation2 + $0x1e8] sm:$0xff] %vm1232_vm3, %v4942_v49  ;;  %v683_v39 = vpop.f32.mrf.mxu0  ;;  %v4969_v4 = vmul.f32 %v4879_v31, %v855_v3 }
  0xe3   : > { %v2377_v1 = vrot.slane %v4949_v34, 3  ;;  %1807 = vst.msk [vmem:[#allocation2 + $0x1c8] sm:$0xff] %vm1232_vm3, %v4949_v34  ;;  %v765_v2 = vmul.f32 %v4730_v40, %v683_v39  ;;  %v1286_v6 = vrot.slane %v4949_v34, 6  ;;  %v7524_v20 = vrot.slane %v4949_v34, 5  ;;  %v4978_v39 = vpop.permute.xlu2 %911  ;;  %3129 = vmatpush.bf16.msra.mxu1 %v4325_v36  ;;  %4363 = vmatpush.bf16.msra.mxu3 %v4325_v36 }
  0xe4   : > { %v2152_v25 = vrot.slane %v4949_v34, 2  ;;  %v7523_v26 = vrot.slane %v4949_v34, 1  ;;  %v7522_v33 = vrot.slane %v4949_v34, 7  ;;  %7679 = vst [vmem:[#allocation28_spill] sm:$0xff] %v4978_v39 }
  0xe5   : > { %v2378_v63 = vsel %vm2363_vm7, %v2375_v5, %v2377_v1  ;;  %v805_v0 = vadd.f32 %v4735_v41, %v765_v2  ;;  %v4975_v38 = vsel %vm650_vm0, %v1284_v8, %v1286_v6  ;;  %v1136_v5 = vsel %vm1121_vm8, %v1133_v13, %v7524_v20  ;;  %1822 = vst.msk [vmem:[#allocation2 + $0x420] sm:$0xff] %vm1232_vm3, %v4969_v4 }
  0xe6   : > { %2480 = vst.msk [vmem:[#allocation2 + $0x160] sm:$0xff] %vm1232_vm3, %v2378_v63  ;;  %v4984_v2 = vsel %vm2138_vm11, %v2150_v16, %v2152_v25  ;;  %v4989_v3 = vsel %vm1836_vm9, %v1848_v18, %v7523_v26  ;;  %v780_v8 = vmul.f32 %v4730_v40, %v720_v42  ;;  %v4997_v13 = vsel %vm1498_vm10, %v1510_v19, %v7522_v33  ;;  %v4324_v63 = vld [vmem:[%s7511_s5 + $0x18] sm:$0xff] }
  0xe7   : > { %7680 = vst [vmem:[#allocation29_spill] sm:$0xff] %v4989_v3  ;;  %v841_v55 = vmax.f32 %v805_v0, 0.0  ;;  %v723_v0 = vpop.f32.mrf.mxu2  ;;  %3130 = vmatpush.bf16.msra.mxu1 %v4324_v63  ;;  %4364 = vmatpush.bf16.msra.mxu3 %v4324_v63  ;;  %v5030_v63 = vpop.permute.xlu0 %916 }
  0xe8   : > { %7681 = vst [vmem:[#allocation30_spill] sm:$0xff] %v4997_v13  ;;  %v820_v18 = vadd.f32 %v4735_v41, %v780_v8 }
  0xe9   : > { %1239 = vst.msk [vmem:[#allocation2 + $0x208] sm:$0xff] %vm1232_vm3, %v1136_v5  ;;  %v5001_v16 = vmul.f32 %v4978_v39, %v841_v55  ;;  %v5061_v39 = vpop.permute.xlu1 %991 }
  0xea   : > { %2104 = vst.msk [vmem:[#allocation2 + $0x158] sm:$0xff] %vm1232_vm3, %v4989_v3  ;;  %v685_v42 = vpop.f32.mrf.mxu0  ;;  %v856_v36 = vmax.f32 %v820_v18, 0.0 }
  0xeb   : > { %1615 = vst.msk [vmem:[#allocation2 + $0x210] sm:$0xff] %vm1232_vm3, %v4997_v13  ;;  %v2379_v19 = vrot.slane %v5001_v16, 3  ;;  %v766_v55 = vmul.f32 %v4730_v40, %v685_v42  ;;  %v1288_v5 = vrot.slane %v5001_v16, 6  ;;  %v2154_v33 = vrot.slane %v5001_v16, 2  ;;  %v4323_v42 = vld [vmem:[%s7511_s5 + $0x10] sm:$0xff] }
  0xec   : > { %1808 = vst.msk [vmem:[#allocation2 + $0x1f0] sm:$0xff] %vm1232_vm3, %v5001_v16  ;;  %v5021_v37 = vmul.f32 %v4854_v7, %v856_v36  ;;  %v781_v36 = vmul.f32 %v4730_v40, %v723_v0  ;;  %3131 = vmatpush.bf16.msra.mxu1 %v4323_v42  ;;  %4365 = vmatpush.bf16.msra.mxu3 %v4323_v42  ;;  %v4322_v0 = vld [vmem:[%s7511_s5 + $0x8] sm:$0xff]  ;;  %v1137_v42 = vrot.slane %v5001_v16, 5  ;;  %v1852_v44 = vrot.slane %v5001_v16, 1 }
  0xed   : > { %v2380_v26 = vsel %vm2363_vm7, %v2377_v1, %v2379_v19  ;;  %v806_v20 = vadd.f32 %v4735_v41, %v766_v55  ;;  %v5027_v18 = vsel %vm650_vm0, %v1286_v6, %v1288_v5  ;;  %7682 = vst [vmem:[#allocation31_spill] sm:$0xff] %v5030_v63  ;;  %v5033_v8 = vsel %vm2138_vm11, %v2152_v25, %v2154_v33 }
  0xee   : > { %2481 = vst.msk [vmem:[#allocation2 + $0x188] sm:$0xff] %vm1232_vm3, %v2380_v26  ;;  %v2409_v55 = vrot.slane %v5021_v37, 3  ;;  %v7683_v6 = vmov 0.0   ;;  %v7684_v25 = vrot.slane %v4969_v4, 3  ;;  %v821_v7 = vadd.f32 %v4735_v41, %v781_v36 }
  0xef   : > { %v842_v1 = vmax.f32 %v806_v20, 0.0  ;;  %1823 = vst.msk [vmem:[#allocation2 + $0x448] sm:$0xff] %vm1232_vm3, %v5021_v37  ;;  %v725_v36 = vpop.f32.mrf.mxu2 }
  0xf0   : > { %1495 = vst.msk [vmem:[#allocation2 + $0xa0] sm:$0xff] %vm1457_vm12, %v7683_v6  ;;  %v2410_v20 = vsel %vm2363_vm7, %v7684_v25, %v2409_v55  ;;  %v857_v25 = vmax.f32 %v821_v7, 0.0  ;;  %3132 = vmatpush.bf16.msra.mxu1 %v4322_v0  ;;  %4366 = vmatpush.bf16.msra.mxu3 %v4322_v0 }
  0xf1   : > { %v5042_v26 = vmul.f32 %v5030_v63, %v842_v1  ;;  %1496 = vst.msk [vmem:[#allocation2 + $0xc8] sm:$0xff] %vm1457_vm12, %v7683_v6  ;;  %v4321_v1 = vld [vmem:[%s7511_s5] sm:$0xff] }
  0xf2   : > { %v5050_v31 = vpop.f32.mrf.mxu0  ;;  %2496 = vst.msk [vmem:[#allocation2 + $0x3e0] sm:$0xff] %vm1232_vm3, %v2410_v20  ;;  %v5072_v21 = vmul.f32 %v5061_v39, %v857_v25  ;;  %v1514_v20 = vrot.slane %v5001_v16, 7  ;;  %v7688_v25 = vrot.slane %v4949_v34, 5 }
  0xf3   : > { %1809 = vst.msk [vmem:[#allocation2 + $0x218] sm:$0xff] %vm1232_vm3, %v5042_v26  ;;  %v7536_v63 = vrot.slane %v5042_v26, 6  ;;  %v7686_v50 = vrot.slane %v5042_v26, 3  ;;  %v7689_v35 = vrot.slane %v5042_v26, 2 }
  0xf4   : > { %7685 = vst [vmem:[#allocation32_spill] sm:$0xff] %v5061_v39  ;;  %v1138_v39 = vsel %vm1121_vm8, %v7688_v25, %v1137_v42  ;;  %3133 = vmatpush.bf16.msra.mxu1 %v4321_v1  ;;  %4367 = vmatpush.bf16.msra.mxu3 %v4321_v1 }
  0xf5   : > { %2361 = vst.msk [vmem:[#allocation2 + $0x608] sm:$0xff] %vm1457_vm12, %v7683_v6  ;;  %v2382_v7 = vsel %vm2363_vm7, %v2379_v19, %v7686_v50  ;;  %v5079_v0 = vsel %vm650_vm0, %v1288_v5, %v7536_v63  ;;  %v7687_v50 = vrot.slane %v5042_v26, 5  ;;  %v5095_v5 = vsel %vm2138_vm11, %v2154_v33, %v7689_v35 }
  0xf6   : > { %2362 = vst.msk [vmem:[#allocation2 + $0x630] sm:$0xff] %vm1457_vm12, %v7683_v6  ;;  %v782_v63 = vmul.f32 %v4730_v40, %v725_v36  ;;  %v7693_v36 = vrot.slane %v4949_v34, 7 }
  0xf7   : > { %2482 = vst.msk [vmem:[#allocation2 + $0x1b0] sm:$0xff] %vm1232_vm3, %v2382_v7  ;;  %v1140_v19 = vsel %vm1121_vm8, %v1137_v42, %v7687_v50  ;;  %v2411_v7 = vrot.slane %v5072_v21, 3  ;;  %v2514_v50 = vld [vmem:[#allocation2 + $0xa0] sm:$0xff]  ;;  %v7691_v42 = vrot.slane %v4949_v34, 1 }
  0xf8   : > { %7690 = vst [vmem:[#allocation33_spill] sm:$0xff] %v5095_v5  ;;  %v2519_v14 = vld [vmem:[#allocation2 + $0xc8] sm:$0xff]  ;;  %v822_v25 = vadd.f32 %v4735_v41, %v782_v63  ;;  %v5114_v9 = vsel %vm1498_vm10, %v7693_v36, %v1514_v20  ;;  %v4316_v5 = vld [vmem:[%s4629_s23 + $0x78] sm:$0xff] }
  0xf9   : > { %1824 = vst.msk [vmem:[#allocation2 + $0x470] sm:$0xff] %vm1232_vm3, %v5072_v21  ;;  %v5106_v35 = vsel %vm1836_vm9, %v7691_v42, %v1852_v44  ;;  %v2412_v33 = vsel %vm2363_vm7, %v2409_v55, %v2411_v7  ;;  %v2694_v16 = vpack.c.bf16 %v2519_v14, %v2514_v50  ;;  %v7539_v55 = vrot.slane %v5042_v26, 7  ;;  %v728_v14 = vpop.f32.mrf.mxu2  ;;  %4132 = vmatmul.msk.bf16.gmra.mxu2 %vm595_vm1, %v4316_v5 }
  0xfa   : > { %1241 = vst.msk [vmem:[#allocation2 + $0x258] sm:$0xff] %vm1232_vm3, %v1140_v19  ;;  %v5116_v1 = vpop.f32.mrf.mxu0  ;;  %v7695_v19 = vrot.slane %v5042_v26, 1  ;;  %v858_v63 = vmax.f32 %v822_v25, 0.0 }
  0xfb   : > { %7692 = vst [vmem:[#allocation34_spill] sm:$0xff] %v5106_v35  ;;  %3134 = vmatmul.bf16.vlgmr.msra.gmra.mxu1 %v2694_v16 }
  0xfc   : > { %1240 = vst.msk [vmem:[#allocation2 + $0x230] sm:$0xff] %vm1232_vm3, %v1138_v39  ;;  %v5122_v42 = vsel %vm1836_vm9, %v1852_v44, %v7695_v19  ;;  %v5130_v34 = vmul.f32 %v4918_v15, %v858_v63  ;;  %v783_v39 = vmul.f32 %v4730_v40, %v728_v14  ;;  %v5139_v44 = vsel %vm1498_vm10, %v1514_v20, %v7539_v55  ;;  %v5154_v55 = vpop.permute.xlu0 %1001  ;;  %v5156_v15 = vpop.permute.xlu1 %1006 }
  0xfd   : > { %7694 = vst [vmem:[#allocation35_spill] sm:$0xff] %v5114_v9 }
  0xfe   : > { %2497 = vst.msk [vmem:[#allocation2 + $0x408] sm:$0xff] %vm1232_vm3, %v2412_v33  ;;  %v2413_v16 = vrot.slane %v5130_v34, 3  ;;  %v823_v33 = vadd.f32 %v4735_v41, %v783_v39 }
  0xff   : > { %7696 = vst [vmem:[#allocation36_spill] sm:$0xff] %v5122_v42 }
 0x100   : > { %2105 = vst.msk [vmem:[#allocation2 + $0x180] sm:$0xff] %vm1232_vm3, %v5106_v35  ;;  %v2414_v50 = vsel %vm2363_vm7, %v2411_v7, %v2413_v16  ;;  %v859_v19 = vmax.f32 %v823_v33, 0.0  ;;  %v7704_v35 = vrot.slane %v4969_v4, 7 }
 0x101   : > { %1616 = vst.msk [vmem:[#allocation2 + $0x238] sm:$0xff] %vm1232_vm3, %v5114_v9  ;;  %v730_v20 = vpop.f32.mrf.mxu2 }
 0x102   : > { %2106 = vst.msk [vmem:[#allocation2 + $0x1a8] sm:$0xff] %vm1232_vm3, %v5122_v42  ;;  %v5149_v25 = vpop.f32.mrf.mxu0  ;;  %v784_v36 = vmul.f32 %v4730_v40, %v730_v20  ;;  %v5159_v7 = vmul.f32 %v5154_v55, %v859_v19  ;;  %v7548_v20 = vrot.slane %v4969_v4, 6  ;;  %v1320_v19 = vrot.slane %v5072_v21, 6 }
 0x103   : > { %1272 = vst.msk [vmem:[#allocation2 + $0xf0] sm:$0x7] %vm1268_vm13, %v7683_v6 }
 0x104   : > { %7697 = vst [vmem:[#allocation37_spill] sm:$0xff] %v5139_v44  ;;  %v824_v63 = vadd.f32 %v4735_v41, %v784_v36  ;;  %v1318_v36 = vrot.slane %v5021_v37, 6  ;;  %v1888_v13 = vrot.slane %v5159_v7, 1 }
 0x105   : > { %1825 = vst.msk [vmem:[#allocation2 + $0x498] sm:$0xff] %vm1232_vm3, %v5130_v34 }
 0x106   : > { %1497 = vst.msk [vmem:[#allocation2 + $0xf0] sm:$0x3] %vm1493_vm14, %v7683_v6  ;;  %v860_v14 = vmax.f32 %v824_v63, 0.0  ;;  %v5186_v30 = vsel %vm650_vm0, %v7548_v20, %v1318_v36  ;;  %v5189_v12 = vsel %vm650_vm0, %v1318_v36, %v1320_v19  ;;  %v1169_v36 = vrot.slane %v5072_v21, 5 }
 0x107   : > { %1617 = vst.msk [vmem:[#allocation2 + $0x260] sm:$0xff] %vm1232_vm3, %v5139_v44  ;;  %v1173_v44 = vrot.slane %v5159_v7, 5 }
 0x108   : > { %2498 = vst.msk [vmem:[#allocation2 + $0x430] sm:$0xff] %vm1232_vm3, %v2414_v50  ;;  %v5164_v45 = vmul.f32 %v5156_v15, %v860_v14  ;;  %v2415_v50 = vrot.slane %v5159_v7, 3  ;;  %v1322_v14 = vrot.slane %v5130_v34, 6 }
 0x109   : > { %7698 = vst [vmem:[#allocation38_spill] sm:$0xff] %v5154_v55 }
 0x10a   : > { %7699 = vst [vmem:[#allocation39_spill] sm:$0xff] %v5156_v15  ;;  %v5161_v39 = vpop.f32.mrf.mxu0  ;;  %v7547_v33 = vrot.slane %v5164_v45, 3  ;;  %v2416_v63 = vsel %vm2363_vm7, %v2413_v16, %v2415_v50  ;;  %v1324_v15 = vrot.slane %v5159_v7, 6  ;;  %v7552_v16 = vrot.slane %v5164_v45, 6 }
 0x10b   : > { %1826 = vst.msk [vmem:[#allocation2 + $0x4c0] sm:$0xff] %vm1232_vm3, %v5159_v7  ;;  %v7554_v42 = vrot.slane %v5164_v45, 5 }
 0x10c   : > { %1827 = vst.msk [vmem:[#allocation2 + $0x4e8] sm:$0xff] %vm1232_vm3, %v5164_v45  ;;  %v2418_v55 = vsel %vm2363_vm7, %v2415_v50, %v7547_v33  ;;  %v5194_v48 = vsel %vm650_vm0, %v1322_v14, %v1324_v15  ;;  %v7553_v50 = vrot.slane %v4969_v4, 5  ;;  %v5202_v20 = vsel %vm650_vm0, %v1324_v15, %v7552_v16 }
 0x10d   : > { %2499 = vst.msk [vmem:[#allocation2 + $0x458] sm:$0xff] %vm1232_vm3, %v2416_v63  ;;  %v1167_v63 = vrot.slane %v5021_v37, 5  ;;  %v1176_v15 = vsel %vm1121_vm8, %v1173_v44, %v7554_v42  ;;  %v5222_v16 = vsel %vm650_vm0, %v1320_v19, %v1322_v14  ;;  %v2186_v19 = vrot.slane %v5072_v21, 2 }
 0x10e   : > { %2500 = vst.msk [vmem:[#allocation2 + $0x480] sm:$0xff] %vm1232_vm3, %v2418_v55  ;;  %v2188_v42 = vrot.slane %v5130_v34, 2  ;;  %v7702_v14 = vrot.slane %v4969_v4, 1 }
 0x10f   : > { %v1168_v55 = vsel %vm1121_vm8, %v7553_v50, %v1167_v63  ;;  %v1170_v57 = vsel %vm1121_vm8, %v1167_v63, %v1169_v36  ;;  %1259 = vst.msk [vmem:[#allocation2 + $0x528] sm:$0xff] %vm1232_vm3, %v1176_v15  ;;  %v2184_v15 = vrot.slane %v5021_v37, 2 }
 0x110   : > { %v1347_v33 = vpop.permute.xlu2 %1346  ;;  %1255 = vst.msk [vmem:[#allocation2 + $0x488] sm:$0xff] %vm1232_vm3, %v1168_v55 }
 0x111   : > { %1458 = vst.msk [vmem:[#allocation2 + $0x118] sm:$0xff] %vm1457_vm12, %v1347_v33  ;;  %v1171_v33 = vrot.slane %v5130_v34, 5  ;;  %v5247_v6 = vsel %vm2138_vm11, %v2184_v15, %v2186_v19 }
 0x112   : > { %v5211_v9 = vpop.f32.mrf.mxu0  ;;  %1256 = vst.msk [vmem:[#allocation2 + $0x4b0] sm:$0xff] %vm1232_vm3, %v1170_v57  ;;  %v7557_v57 = vrot.slane %v4969_v4, 2 }
 0x113   : > { %v1172_v50 = vsel %vm1121_vm8, %v1169_v36, %v1171_v33  ;;  %v1174_v55 = vsel %vm1121_vm8, %v1171_v33, %v1173_v44  ;;  %v1882_v44 = vrot.slane %v5021_v37, 1  ;;  %7701 = vst [vmem:[#allocation41_spill] sm:$0xff] %v5247_v6 }
 0x114   : > { %1257 = vst.msk [vmem:[#allocation2 + $0x4d8] sm:$0xff] %vm1232_vm3, %v1172_v50  ;;  %v1544_v50 = vrot.slane %v5021_v37, 7  ;;  %v5241_v33 = vsel %vm2138_vm11, %v7557_v57, %v2184_v15  ;;  %v1546_v15 = vrot.slane %v5072_v21, 7 }
 0x115   : > { %1258 = vst.msk [vmem:[#allocation2 + $0x500] sm:$0xff] %vm1232_vm3, %v1174_v55  ;;  %v1884_v55 = vrot.slane %v5072_v21, 1  ;;  %v5252_v37 = vsel %vm1836_vm9, %v7702_v14, %v1882_v44  ;;  %v1548_v14 = vrot.slane %v5130_v34, 7 }
 0x116   : > { %7700 = vst [vmem:[#allocation40_spill] sm:$0xff] %v5241_v33  ;;  %v5257_v57 = vsel %vm1498_vm10, %v7704_v35, %v1544_v50  ;;  %v2190_v33 = vrot.slane %v5159_v7, 2  ;;  %v5281_v21 = vsel %vm1498_vm10, %v1544_v50, %v1546_v15 }
 0x117   : > { %7703 = vst [vmem:[#allocation42_spill] sm:$0xff] %v5252_v37  ;;  %v5263_v5 = vsel %vm1836_vm9, %v1882_v44, %v1884_v55  ;;  %v1550_v44 = vrot.slane %v5159_v7, 7 }
 0x118   : > { %7705 = vst [vmem:[#allocation43_spill] sm:$0xff] %v5257_v57  ;;  %v5273_v35 = vsel %vm2138_vm11, %v2188_v42, %v2190_v33  ;;  %v2529_v3 = vld [vmem:[#allocation2 + $0x118] sm:$0xff] }
 0x119   : > { %2120 = vst.msk [vmem:[#allocation2 + $0x3d8] sm:$0xff] %vm1232_vm3, %v5252_v37  ;;  %v7564_v37 = vrot.slane %v5164_v45, 2  ;;  %v5295_v7 = vsel %vm1498_vm10, %v1548_v14, %v1550_v44 }
 0x11a   : > { %v5227_v63 = vpop.f32.mrf.mxu0  ;;  %7706 = vst [vmem:[#allocation44_spill] sm:$0xff] %v5263_v5 }
 0x11b   : > { %1631 = vst.msk [vmem:[#allocation2 + $0x490] sm:$0xff] %vm1232_vm3, %v5257_v57 }
 0x11c   : > { %7707 = vst [vmem:[#allocation45_spill] sm:$0xff] %v5273_v35  ;;  %v5292_v35 = vsel %vm2138_vm11, %v2190_v33, %v7564_v37  ;;  %v5308_v33 = vsel %vm2138_vm11, %v2186_v19, %v2188_v42 }
 0x11d   : > { %2121 = vst.msk [vmem:[#allocation2 + $0x400] sm:$0xff] %vm1232_vm3, %v5263_v5  ;;  %v5314_v5 = vsel %vm1498_vm10, %v1546_v15, %v1548_v14 }
 0x11e   : > { %7708 = vst [vmem:[#allocation46_spill] sm:$0xff] %v5281_v21 }
 0x11f   : > { %v1345_v36 = vpop.permute.xlu1 %1344  ;;  %1632 = vst.msk [vmem:[#allocation2 + $0x4b8] sm:$0xff] %vm1232_vm3, %v5281_v21 }
 0x120   : > { %1456 = vst.msk [vmem:[#allocation2 + $0xf0] sm:$0xfc] %vm1455_vm15, %v1345_v36  ;;  %v1886_v36 = vrot.slane %v5130_v34, 1  ;;  %v7565_v34 = vrot.slane %v5164_v45, 7 }
 0x121   : > { %7710 = vst [vmem:[#allocation48_spill] sm:$0xff] %v5292_v35 }
 0x122   : > { %v5268_v6 = vpop.f32.mrf.mxu0  ;;  %v5287_v57 = vsel %vm1836_vm9, %v1886_v36, %v1888_v13  ;;  %7711 = vst [vmem:[#allocation49_spill] sm:$0xff] %v5295_v7  ;;  %v5303_v50 = vsel %vm1498_vm10, %v1550_v44, %v7565_v34  ;;  %v5311_v37 = vsel %vm1836_vm9, %v1884_v55, %v1886_v36  ;;  %v7716_v34 = vrot.slane %v5164_v45, 1 }
 0x123   : > { %7709 = vst [vmem:[#allocation47_spill] sm:$0xff] %v5287_v57 }
 0x124   : > { %2123 = vst.msk [vmem:[#allocation2 + $0x450] sm:$0xff] %vm1232_vm3, %v5287_v57 }
 0x125   : > { %7712 = vst [vmem:[#allocation50_spill] sm:$0xff] %v5303_v50 }
 0x126   : > { %1635 = vst.msk [vmem:[#allocation2 + $0x530] sm:$0xff] %vm1232_vm3, %v5303_v50  ;;  %v5323_v50 = vsel %vm1836_vm9, %v1888_v13, %v7716_v34 }
 0x127   : > { %v2524_v21 = vld [vmem:[#allocation2 + $0xf0] sm:$0xff]  ;;  %7713 = vst [vmem:[#allocation51_spill] sm:$0xff] %v5308_v33 }
 0x128   : > { %7714 = vst [vmem:[#allocation52_spill] sm:$0xff] %v5311_v37  ;;  %v1353_v35 = vpop.permute.xlu2 %1352  ;;  %v2699_v44 = vpack.c.bf16 %v2529_v3, %v2524_v21 }
 0x129   : > { %7715 = vst [vmem:[#allocation53_spill] sm:$0xff] %v5314_v5 }
 0x12a   : > { %1634 = vst.msk [vmem:[#allocation2 + $0x508] sm:$0xff] %vm1232_vm3, %v5295_v7  ;;  %v705_v42 = vpop.f32.mrf.mxu0  ;;  %3139 = vmatmul.bf16.gmra.mxu1 %v2699_v44 }
 0x12b   : > { %2122 = vst.msk [vmem:[#allocation2 + $0x428] sm:$0xff] %vm1232_vm3, %v5311_v37  ;;  %v774_v19 = vmul.f32 %v4730_v40, %v705_v42 }
 0x12c   : > { %7717 = vst [vmem:[#allocation54_spill] sm:$0xff] %v5323_v50 }
 0x12d   : > { %1461 = vst.msk [vmem:[#allocation2 + $0x190] sm:$0xff] %vm1457_vm12, %v1353_v35  ;;  %v814_v3 = vadd.f32 %v4735_v41, %v774_v19  ;;  %v767_v35 = vmul.f32 %v4730_v40, %v5050_v31 }
 0x12e   : > { %1633 = vst.msk [vmem:[#allocation2 + $0x4e0] sm:$0xff] %vm1232_vm3, %v5314_v5 }
 0x12f   : > { %2124 = vst.msk [vmem:[#allocation2 + $0x478] sm:$0xff] %vm1232_vm3, %v5323_v50  ;;  %v850_v55 = vmax.f32 %v814_v3, 0.0  ;;  %v807_v42 = vadd.f32 %v4735_v41, %v767_v35 }
 0x130   : > { %v1349_v15 = vpop.permute.xlu0 %1348 }
 0x131   : > { %v5333_v36 = vmul.f32 %v4763_v59, %v850_v55  ;;  %1459 = vst.msk [vmem:[#allocation2 + $0x140] sm:$0xff] %vm1457_vm12, %v1349_v15  ;;  %v843_v57 = vmax.f32 %v807_v42, 0.0 }
 0x132   : > { %v708_v13 = vpop.f32.mrf.mxu0 }
 0x133   : > { %1817 = vst.msk [vmem:[#allocation2 + $0x358] sm:$0xff] %vm1232_vm3, %v5333_v36  ;;  %v775_v14 = vmul.f32 %v4730_v40, %v708_v13  ;;  %v7720_v7 = vrot.slane %v5333_v36, 5  ;;  %v7722_v31 = vrot.slane %v5333_v36, 2 }
 0x135   : > { %v815_v21 = vadd.f32 %v4735_v41, %v775_v14  ;;  %v7718_v14 = vrot.slane %v5333_v36, 3 }
 0x137   : > { %v851_v34 = vmax.f32 %v815_v21, 0.0 }
 0x138   : > { %v1351_v44 = vpop.permute.xlu1 %1350 }
 0x139   : > { %v5345_v3 = vmul.f32 %v4797_v17, %v851_v34  ;;  %1460 = vst.msk [vmem:[#allocation2 + $0x168] sm:$0xff] %vm1457_vm12, %v1351_v44 }
 0x13a   : > { %v710_v55 = vpop.f32.mrf.mxu0 }
 0x13b   : > { %v2399_v21 = vrot.slane %v5345_v3, 3  ;;  %1818 = vst.msk [vmem:[#allocation2 + $0x380] sm:$0xff] %vm1232_vm3, %v5345_v3  ;;  %v776_v35 = vmul.f32 %v4730_v40, %v710_v55  ;;  %v1308_v34 = vrot.slane %v5345_v3, 6  ;;  %v1157_v44 = vrot.slane %v5345_v3, 5 }
 0x13c   : > { %v7574_v13 = vrot.slane %v5345_v3, 1  ;;  %v7719_v55 = vrot.slane %v5333_v36, 6  ;;  %v7721_v15 = vrot.slane %v5345_v3, 2 }
 0x13d   : > { %v2400_v17 = vsel %vm2363_vm7, %v7718_v14, %v2399_v21  ;;  %v816_v59 = vadd.f32 %v4735_v41, %v776_v35  ;;  %v1158_v19 = vsel %vm1121_vm8, %v7720_v7, %v1157_v44  ;;  %v7724_v35 = vrot.slane %v5333_v36, 1 }
 0x13e   : > { %v1309_v50 = vsel %vm650_vm0, %v7719_v55, %v1308_v34  ;;  %2491 = vst.msk [vmem:[#allocation2 + $0x318] sm:$0xff] %vm1232_vm3, %v2400_v17  ;;  %v5379_v14 = vsel %vm2138_vm11, %v7722_v31, %v7721_v15  ;;  %v7726_v7 = vrot.slane %v5345_v3, 7  ;;  %v7727_v17 = vrot.slane %v5333_v36, 7  ;;  %v2534_v31 = vld [vmem:[#allocation2 + $0x140] sm:$0xff] }
 0x13f   : > { %1380 = vrot.lane.b32.xlu2 %v1309_v50, %s4494_s26  ;;  %7723 = vst [vmem:[#allocation55_spill] sm:$0xff] %v5379_v14  ;;  %v5386_v55 = vsel %vm1836_vm9, %v7724_v35, %v7574_v13  ;;  %v852_v5 = vmax.f32 %v816_v59, 0.0 }
 0x140   : > { %7725 = vst [vmem:[#allocation56_spill] sm:$0xff] %v5386_v55  ;;  %v5393_v50 = vsel %vm1498_vm10, %v7727_v17, %v7726_v7  ;;  %v5396_v15 = vpop.permute.xlu1 %921  ;;  %v2539_v37 = vld [vmem:[#allocation2 + $0x168] sm:$0xff] }
 0x141   : > { %7728 = vst [vmem:[#allocation57_spill] sm:$0xff] %v5393_v50  ;;  %v5401_v35 = vmul.f32 %v4752_v53, %v852_v5  ;;  %v5404_v13 = vmul.f32 %v5396_v15, %v843_v57  ;;  %v2704_v33 = vpack.c.bf16 %v2539_v37, %v2534_v31  ;;  %v424_v57 = vld [vmem:[%s7507_s1 + $0x58] sm:$0xff]  ;;  %v4317_v31 = vld [vmem:[%s4629_s23 + $0x80] sm:$0xff] }
 0x142   : > { %1250 = vst.msk [vmem:[#allocation2 + $0x3c0] sm:$0xff] %vm1232_vm3, %v1158_v19  ;;  %v713_v59 = vpop.f32.mrf.mxu0  ;;  %4133 = vmatmul.msk.bf16.gmra.mxu2 %vm595_vm1, %v4317_v31 }
 0x143   : > { %7729 = vst [vmem:[#allocation58_spill] sm:$0xff] %v5396_v15  ;;  %v2401_v42 = vrot.slane %v5401_v35, 3  ;;  %v777_v7 = vmul.f32 %v4730_v40, %v713_v59  ;;  %3144 = vmatmul.bf16.gmra.mxu1 %v2704_v33  ;;  %v1310_v37 = vrot.slane %v5401_v35, 6  ;;  %v7581_v5 = vrot.slane %v5404_v13, 6 }
 0x144   : > { %2115 = vst.msk [vmem:[#allocation2 + $0x310] sm:$0xff] %vm1232_vm3, %v5386_v55  ;;  %v1159_v17 = vrot.slane %v5401_v35, 5  ;;  %v7730_v33 = vrot.slane %v5404_v13, 3  ;;  %v7731_v59 = vrot.slane %v5042_v26, 3 }
 0x145   : > { %1626 = vst.msk [vmem:[#allocation2 + $0x3c8] sm:$0xff] %vm1232_vm3, %v5393_v50  ;;  %v2402_v40 = vsel %vm2363_vm7, %v2399_v21, %v2401_v42  ;;  %v817_v15 = vadd.f32 %v4735_v41, %v777_v7  ;;  %v1311_v50 = vsel %vm650_vm0, %v1308_v34, %v1310_v37  ;;  %v7732_v21 = vrot.slane %v5042_v26, 6 }
 0x146   : > { %1819 = vst.msk [vmem:[#allocation2 + $0x3a8] sm:$0xff] %vm1232_vm3, %v5401_v35  ;;  %v2384_v53 = vsel %vm2363_vm7, %v7731_v59, %v7730_v33  ;;  %1382 = vrot.lane.b32.xlu0 %v1311_v50, %s4494_s26  ;;  %v1160_v55 = vsel %vm1121_vm8, %v1157_v44, %v1159_v17  ;;  %v7733_v33 = vrot.slane %v5404_v13, 5  ;;  %v7734_v41 = vrot.slane %v5042_v26, 5 }
 0x147   : > { %1810 = vst.msk [vmem:[#allocation2 + $0x240] sm:$0xff] %vm1232_vm3, %v5404_v13  ;;  %926 = vperm.xlu2 %4415, %v424_v57   ;;  %v5439_v19 = vsel %vm650_vm0, %v7732_v21, %v7581_v5  ;;  %v853_v7 = vmax.f32 %v817_v15, 0.0  ;;  %v7735_v50 = vrot.slane %v5404_v13, 2  ;;  %v7736_v57 = vrot.slane %v5042_v26, 2 }
 0x148   : > { %2492 = vst.msk [vmem:[#allocation2 + $0x340] sm:$0xff] %vm1232_vm3, %v2402_v40  ;;  %v1142_v34 = vsel %vm1121_vm8, %v7734_v41, %v7733_v33  ;;  %v7579_v59 = vrot.slane %v5404_v13, 1  ;;  %v7580_v44 = vrot.slane %v5404_v13, 7  ;;  %v2176_v21 = vrot.slane %v5401_v35, 2 }
 0x149   : > { %2483 = vst.msk [vmem:[#allocation2 + $0x1d8] sm:$0xff] %vm1232_vm3, %v2384_v53  ;;  %v5453_v40 = vsel %vm2138_vm11, %v7736_v57, %v7735_v50  ;;  %v1874_v53 = vrot.slane %v5401_v35, 1  ;;  %v1536_v15 = vrot.slane %v5401_v35, 7  ;;  %v1069_v33 = vmul.f32 %v4823_v43, %v853_v7 }
 0x14a   : > { %7737 = vst [vmem:[#allocation59_spill] sm:$0xff] %v5453_v40  ;;  %v7738_v41 = vrot.slane %v5042_v26, 1  ;;  %v715_v57 = vpop.f32.mrf.mxu0  ;;  %v7742_v35 = vrot.slane %v5345_v3, 2  ;;  %v7744_v7 = vrot.slane %v5345_v3, 1  ;;  %v7745_v43 = vrot.slane %v5345_v3, 7 }
 0x14b   : > { %1251 = vst.msk [vmem:[#allocation2 + $0x3e8] sm:$0xff] %vm1232_vm3, %v1160_v55  ;;  %v7740_v55 = vrot.slane %v5042_v26, 7  ;;  %v5494_v26 = vld [vmem:[%s7509_s3] ss:$0 sm:$0xff]  ;;  %v1161_v5 = vrot.slane %v1069_v33, 5  ;;  %v1538_v14 = vrot.slane %v1069_v33, 7 }
 0x14c   : > { %1242 = vst.msk [vmem:[#allocation2 + $0x280] sm:$0xff] %vm1232_vm3, %v1142_v34  ;;  %v5469_v50 = vsel %vm1836_vm9, %v7738_v41, %v7579_v59  ;;  %v5483_v34 = vsel %vm2138_vm11, %v7742_v35, %v2176_v21  ;;  %v5488_v41 = vsel %vm1836_vm9, %v7744_v7, %v1874_v53  ;;  %v2403_v59 = vrot.slane %v1069_v33, 3  ;;  %v5508_v40 = vld [vmem:[%s7510_s4] ss:$0 sm:$0xff] }
 0x14d   : > { %7739 = vst [vmem:[#allocation60_spill] sm:$0xff] %v5469_v50  ;;  %v5476_v31 = vsel %vm1498_vm10, %v7740_v55, %v7580_v44  ;;  %v778_v55 = vmul.f32 %v5494_v26, %v715_v57  ;;  %v1312_v44 = vrot.slane %v1069_v33, 6  ;;  %v2178_v35 = vrot.slane %v1069_v33, 2 }
 0x14e   : > { %7741 = vst [vmem:[#allocation61_spill] sm:$0xff] %v5476_v31  ;;  %v5502_v7 = vsel %vm1498_vm10, %v7745_v43, %v1536_v15  ;;  %1354 = vrot.lane.b32.xlu0 %v4886_v47, %s4494_s26 }
 0x14f   : > { %2107 = vst.msk [vmem:[#allocation2 + $0x1d0] sm:$0xff] %vm1232_vm3, %v5469_v50  ;;  %v2404_v50 = vsel %vm2363_vm7, %v2401_v42, %v2403_v59  ;;  %v818_v57 = vadd.f32 %v5508_v40, %v778_v55  ;;  %v1313_v49 = vsel %vm650_vm0, %v1310_v37, %v1312_v44  ;;  %v5520_v43 = vsel %vm2138_vm11, %v2176_v21, %v2178_v35 }
 0x150   : > { %7743 = vst [vmem:[#allocation62_spill] sm:$0xff] %v5483_v34  ;;  %v1876_v34 = vrot.slane %v1069_v33, 1  ;;  %1384 = vrot.lane.b32.xlu1 %v1313_v49, %s4494_s26  ;;  %v5527_v37 = vsel %vm1498_vm10, %v1536_v15, %v1538_v14  ;;  %v442_v49 = vld [vmem:[%s7507_s1 + $0xe8] sm:$0xff]  ;;  %v7748_v55 = vrot.slane %v4969_v4, 3 }
 0x151   : > { %1820 = vst.msk [vmem:[#allocation2 + $0x3d0] sm:$0xff] %vm1232_vm3, %v1069_v33  ;;  %v854_v42 = vmax.f32 %v818_v57, 0.0 }
 0x152   : > { %1618 = vst.msk [vmem:[#allocation2 + $0x288] sm:$0xff] %vm1232_vm3, %v5476_v31  ;;  %v1162_v31 = vsel %vm1121_vm8, %v1159_v17, %v1161_v5  ;;  %v5523_v3 = vsel %vm1836_vm9, %v1874_v53, %v1876_v34 }
 0x153   : > { %2116 = vst.msk [vmem:[#allocation2 + $0x338] sm:$0xff] %vm1232_vm3, %v5488_v41  ;;  %v1070_v17 = vmul.f32 %v4842_v62, %v854_v42 }
 0x154   : > { %2493 = vst.msk [vmem:[#allocation2 + $0x368] sm:$0xff] %vm1232_vm3, %v2404_v50 }
 0x155   : > { %7746 = vst [vmem:[#allocation63_spill] sm:$0xff] %v5523_v3  ;;  %v2405_v47 = vrot.slane %v1070_v17, 3  ;;  %v1314_v21 = vrot.slane %v1070_v17, 6  ;;  %v1163_v53 = vrot.slane %v1070_v17, 5  ;;  %v2180_v15 = vrot.slane %v1070_v17, 2 }
 0x156   : > { %1252 = vst.msk [vmem:[#allocation2 + $0x410] sm:$0xff] %vm1232_vm3, %v1162_v31  ;;  %v1878_v33 = vrot.slane %v1070_v17, 1  ;;  %v1540_v50 = vrot.slane %v1070_v17, 7  ;;  %1016 = vperm.xlu0 %4413, %v442_v49   ;;  %v426_v49 = vld [vmem:[%s7507_s1 + $0x68] sm:$0xff] }
 0x157   : > { %7747 = vst [vmem:[#allocation64_spill] sm:$0xff] %v5527_v37  ;;  %v2406_v31 = vsel %vm2363_vm7, %v2403_v59, %v2405_v47  ;;  %v2408_v57 = vsel %vm2363_vm7, %v2405_v47, %v7748_v55  ;;  %v1315_v42 = vsel %vm650_vm0, %v1312_v44, %v1314_v21  ;;  %v1164_v62 = vsel %vm1121_vm8, %v1161_v5, %v1163_v53 }
 0x158   : > { %1627 = vst.msk [vmem:[#allocation2 + $0x3f0] sm:$0xff] %vm1232_vm3, %v5502_v7  ;;  %1390 = vrot.lane.b32.xlu1 %v5186_v30, %s4494_s26  ;;  %v7750_v59 = vrot.slane %v4969_v4, 2  ;;  %1386 = vrot.lane.b32.xlu2 %v1315_v42, %s4494_s26  ;;  %v5560_v44 = vsel %vm2138_vm11, %v2178_v35, %v2180_v15  ;;  %v5563_v30 = vsel %vm1836_vm9, %v1876_v34, %v1878_v33  ;;  %v7754_v35 = vrot.slane %v4969_v4, 7 }
 0x159   : > { %2117 = vst.msk [vmem:[#allocation2 + $0x360] sm:$0xff] %vm1232_vm3, %v5523_v3  ;;  %v5567_v5 = vsel %vm1498_vm10, %v1538_v14, %v1540_v50  ;;  %v441_v14 = vld [vmem:[%s7507_s1 + $0xe0] sm:$0xff] }
 0x15a   : > { %1628 = vst.msk [vmem:[#allocation2 + $0x418] sm:$0xff] %vm1232_vm3, %v5527_v37  ;;  %v7749_v37 = vrot.slane %v4969_v4, 5  ;;  %v5555_v3 = vsel %vm2138_vm11, %v2180_v15, %v7750_v59  ;;  %v5580_v34 = vsel %vm1498_vm10, %v1540_v50, %v7754_v35  ;;  %v7758_v59 = vrot.slane %v5404_v13, 3 }
 0x15b   : > { %1821 = vst.msk [vmem:[#allocation2 + $0x3f8] sm:$0xff] %vm1232_vm3, %v1070_v17  ;;  %v7759_v35 = vrot.slane %v5404_v13, 6 }
 0x15c   : > { %2494 = vst.msk [vmem:[#allocation2 + $0x390] sm:$0xff] %vm1232_vm3, %v2406_v31  ;;  %v1166_v17 = vsel %vm1121_vm8, %v1163_v53, %v7749_v37  ;;  %v7752_v37 = vrot.slane %v4969_v4, 1  ;;  %v7756_v53 = vrot.slane %v4969_v4, 6  ;;  %v444_v4 = vld [vmem:[%s7507_s1 + $0xf8] sm:$0xff] }
 0x15d   : > { %2495 = vst.msk [vmem:[#allocation2 + $0x3b8] sm:$0xff] %vm1232_vm3, %v2408_v57 }
 0x15e   : > { %1253 = vst.msk [vmem:[#allocation2 + $0x438] sm:$0xff] %vm1232_vm3, %v1164_v62  ;;  %v5573_v47 = vsel %vm1836_vm9, %v1878_v33, %v7752_v37  ;;  %v425_v62 = vld [vmem:[%s7507_s1 + $0x60] sm:$0xff]  ;;  %v1317_v15 = vsel %vm650_vm0, %v1314_v21, %v7756_v53  ;;  %v443_v33 = vld [vmem:[%s7507_s1 + $0xf0] sm:$0xff] }
 0x15f   : > { %7751 = vst [vmem:[#allocation65_spill] sm:$0xff] %v5567_v5  ;;  %931 = vperm.xlu0 %4413, %v425_v62  }
 0x160   : > { %1254 = vst.msk [vmem:[#allocation2 + $0x460] sm:$0xff] %vm1232_vm3, %v1166_v17  ;;  %1356 = vrot.lane.b32.xlu1 %v4929_v27, %s4494_s26  ;;  %1011 = vperm.xlu2 %4415, %v441_v14   ;;  %v428_v27 = vld [vmem:[%s7507_s1 + $0x78] sm:$0xff]  ;;  %v733_v14 = vpop.f32.mrf.mxu2 }
 0x161   : > { %7753 = vst [vmem:[#allocation66_spill] sm:$0xff] %v5573_v47 }
 0x162   : > { %2118 = vst.msk [vmem:[#allocation2 + $0x388] sm:$0xff] %vm1232_vm3, %v5563_v30 }
 0x163   : > { %7755 = vst [vmem:[#allocation67_spill] sm:$0xff] %v5580_v34 }
 0x164   : > { %1629 = vst.msk [vmem:[#allocation2 + $0x440] sm:$0xff] %vm1232_vm3, %v5567_v5 }
 0x165   : > { %2119 = vst.msk [vmem:[#allocation2 + $0x3b0] sm:$0xff] %vm1232_vm3, %v5573_v47 }
 0x166   : > { %1630 = vst.msk [vmem:[#allocation2 + $0x468] sm:$0xff] %vm1232_vm3, %v5580_v34 }
 0x167   : > { %1388 = vrot.lane.b32.xlu0 %v1317_v15, %s4494_s26  ;;  %v7761_v15 = vrot.slane %v5404_v13, 2 }
 0x168   : > { %936 = vperm.xlu1 %4414, %v426_v49   ;;  %1358 = vrot.lane.b32.xlu2 %v4975_v38, %s4494_s26  ;;  %v427_v38 = vld [vmem:[%s7507_s1 + $0x70] sm:$0xff]  ;;  %v7760_v49 = vrot.slane %v5404_v13, 5 }
 0x16f   : > { %1394 = vrot.lane.b32.xlu0 %v5222_v16, %s4494_s26 }
 0x170   : > { %1021 = vperm.xlu1 %4414, %v443_v33   ;;  %1392 = vrot.lane.b32.xlu2 %v5189_v12, %s4494_s26  ;;  %v446_v12 = vld [vmem:[%s7507_s1 + $0x108] sm:$0xff] }
 0x177   : > { %1360 = vrot.lane.b32.xlu0 %v5027_v18, %s4494_s26  ;;  %v445_v18 = vld [vmem:[%s7507_s1 + $0x100] sm:$0xff] }
 0x178   : > { %1362 = vrot.lane.b32.xlu1 %v5079_v0, %s4494_s26  ;;  %1026 = vperm.xlu2 %4415, %v444_v4   ;;  %v429_v0 = vld [vmem:[%s7507_s1 + $0x80] sm:$0xff]  ;;  %v7762_v4 = vrot.slane %v5404_v13, 1 }
 0x17f   : > { %946 = vperm.xlu0 %4413, %v428_v27  }
 0x180   : > { %1396 = vrot.lane.b32.xlu1 %v5194_v48, %s4494_s26  ;;  %941 = vperm.xlu2 %4415, %v427_v38   ;;  %v768_v48 = vmul.f32 %v5494_v26, %v5116_v1  ;;  %v7763_v38 = vrot.slane %v5404_v13, 7 }
 0x182   : > { %v808_v21 = vadd.f32 %v5508_v40, %v768_v48 }
 0x184   : > { %v844_v50 = vmax.f32 %v808_v21, 0.0 }
 0x187   : > { %1031 = vperm.xlu0 %4413, %v445_v18   ;;  %v785_v18 = vmul.f32 %v5494_v26, %v733_v14 }
 0x188   : > { %1036 = vperm.xlu1 %4414, %v446_v12   ;;  %1398 = vrot.lane.b32.xlu2 %v5202_v20, %s4494_s26 }
 0x190   : > { %951 = vperm.xlu1 %4414, %v429_v0   ;;  %1364 = vrot.lane.b32.xlu2 %v5439_v19, %s4494_s26  ;;  %v735_v0 = vpop.f32.mrf.mxu2 }
 0x199   : > { %v1381_v16 = vpop.permute.xlu2 %1380 }
 0x19a   : > { %1475 = vst.msk [vmem:[#allocation2 + $0x3c0] sm:$0xff] %vm1457_vm12, %v1381_v16  ;;  %v825_v16 = vadd.f32 %v5508_v40, %v785_v18 }
 0x19c   : > { %v861_v13 = vmax.f32 %v825_v16, 0.0 }
 0x1a1   : > { %v5644_v31 = vpop.permute.xlu2 %926 }
 0x1a2   : > { %7757 = vst [vmem:[#allocation68_spill] sm:$0xff] %v5644_v31  ;;  %v5647_v20 = vmul.f32 %v5644_v31, %v844_v50 }
 0x1a4   : > { %v7594_v55 = vrot.slane %v5647_v20, 3  ;;  %1811 = vst.msk [vmem:[#allocation2 + $0x268] sm:$0xff] %vm1232_vm3, %v5647_v20  ;;  %v7593_v19 = vrot.slane %v5647_v20, 6  ;;  %v7592_v1 = vrot.slane %v5647_v20, 5  ;;  %v7591_v57 = vrot.slane %v5647_v20, 2 }
 0x1a5   : > { %v7590_v42 = vrot.slane %v5647_v20, 1  ;;  %v7589_v17 = vrot.slane %v5647_v20, 7 }
 0x1a6   : > { %v2386_v37 = vsel %vm2363_vm7, %v7758_v59, %v7594_v55  ;;  %v1295_v62 = vsel %vm650_vm0, %v7759_v35, %v7593_v19  ;;  %v1144_v53 = vsel %vm1121_vm8, %v7760_v49, %v7592_v1  ;;  %v5679_v33 = vsel %vm2138_vm11, %v7761_v15, %v7591_v57  ;;  %v5706_v59 = vpop.f32.mrf.mxu2 }
 0x1a7   : > { %2484 = vst.msk [vmem:[#allocation2 + $0x200] sm:$0xff] %vm1232_vm3, %v2386_v37  ;;  %1366 = vrot.lane.b32.xlu0 %v1295_v62, %s4494_s26  ;;  %v5686_v27 = vsel %vm1836_vm9, %v7762_v4, %v7590_v42  ;;  %v5693_v12 = vsel %vm1498_vm10, %v7763_v38, %v7589_v17  ;;  %v7765_v38 = vrot.slane %v5164_v45, 3  ;;  %v7768_v17 = vrot.slane %v5164_v45, 2  ;;  %v2614_v42 = vld [vmem:[#allocation2 + $0x3c0] sm:$0xff] }
 0x1a8   : > { %1243 = vst.msk [vmem:[#allocation2 + $0x2a8] sm:$0xff] %vm1232_vm3, %v1144_v53  ;;  %v786_v53 = vmul.f32 %v5494_v26, %v735_v0  ;;  %v7770_v19 = vrot.slane %v5164_v45, 1 }
 0x1a9   : > { %2108 = vst.msk [vmem:[#allocation2 + $0x1f8] sm:$0xff] %vm1232_vm3, %v5686_v27 }
 0x1aa   : > { %1619 = vst.msk [vmem:[#allocation2 + $0x2b0] sm:$0xff] %vm1232_vm3, %v5693_v12 }
 0x1b2   : > { %v1387_v48 = vpop.permute.xlu2 %1386 }
 0x1b3   : > { %1478 = vst.msk [vmem:[#allocation2 + $0x438] sm:$0xff] %vm1457_vm12, %v1387_v48  ;;  %v7766_v48 = vrot.slane %v5164_v45, 6 }
 0x1b8   : > { %v1383_v21 = vpop.permute.xlu0 %1382 }
 0x1b9   : > { %1476 = vst.msk [vmem:[#allocation2 + $0x3e8] sm:$0xff] %vm1457_vm12, %v1383_v21 }
 0x1ba   : > { %v5704_v50 = vpop.permute.xlu2 %1011 }
 0x1bb   : > { %7764 = vst [vmem:[#allocation69_spill] sm:$0xff] %v5704_v50  ;;  %v5709_v37 = vmul.f32 %v5704_v50, %v861_v13  ;;  %v7767_v13 = vrot.slane %v5164_v45, 5  ;;  %v7785_v50 = vrot.slane %v5647_v20, 1 }
 0x1bd   : > { %v2419_v35 = vrot.slane %v5709_v37, 3  ;;  %1828 = vst.msk [vmem:[#allocation2 + $0x510] sm:$0xff] %vm1232_vm3, %v5709_v37  ;;  %v1328_v62 = vrot.slane %v5709_v37, 6  ;;  %v1177_v14 = vrot.slane %v5709_v37, 5  ;;  %v2194_v49 = vrot.slane %v5709_v37, 2 }
 0x1be   : > { %v1892_v15 = vrot.slane %v5709_v37, 1  ;;  %v1554_v4 = vrot.slane %v5709_v37, 7 }
 0x1bf   : > { %v2420_v18 = vsel %vm2363_vm7, %v7765_v38, %v2419_v35  ;;  %v1329_v16 = vsel %vm650_vm0, %v7766_v48, %v1328_v62  ;;  %v1178_v21 = vsel %vm1121_vm8, %v7767_v13, %v1177_v14  ;;  %v5732_v0 = vsel %vm2138_vm11, %v7768_v17, %v2194_v49 }
 0x1c0   : > { %7769 = vst [vmem:[#allocation70_spill] sm:$0xff] %v5732_v0  ;;  %1400 = vrot.lane.b32.xlu2 %v1329_v16, %s4494_s26  ;;  %v1355_v37 = vpop.permute.xlu0 %1354  ;;  %v2619_v38 = vld [vmem:[#allocation2 + $0x3e8] sm:$0xff]  ;;  %v826_v48 = vadd.f32 %v5508_v40, %v786_v53  ;;  %v5742_v17 = vsel %vm1836_vm9, %v7770_v19, %v1892_v15  ;;  %v740_v53 = vpop.f32.mrf.mxu2  ;;  %v769_v19 = vmul.f32 %v5494_v26, %v5149_v25 }
 0x1c1   : > { %2501 = vst.msk [vmem:[#allocation2 + $0x4a8] sm:$0xff] %vm1232_vm3, %v2420_v18  ;;  %v2744_v1 = vpack.c.bf16 %v2619_v38, %v2614_v42  ;;  %v7772_v18 = vrot.slane %v5164_v45, 7 }
 0x1c2   : > { %1260 = vst.msk [vmem:[#allocation2 + $0x550] sm:$0xff] %vm1232_vm3, %v1178_v21  ;;  %v1385_v57 = vpop.permute.xlu1 %1384  ;;  %v1359_v13 = vpop.permute.xlu2 %1358  ;;  %v862_v42 = vmax.f32 %v826_v48, 0.0  ;;  %v2544_v21 = vld [vmem:[#allocation2 + $0x190] sm:$0xff]  ;;  %v809_v48 = vadd.f32 %v5508_v40, %v769_v19 }
 0x1c3   : > { %1462 = vst.msk [vmem:[#allocation2 + $0x1b8] sm:$0xff] %vm1457_vm12, %v1355_v37  ;;  %v5748_v16 = vsel %vm1498_vm10, %v7772_v18, %v1554_v4  ;;  %3184 = vmatmul.bf16.vlgmr.msra.gmra.mxu3 %v2744_v1 }
 0x1c4   : > { %7771 = vst [vmem:[#allocation71_spill] sm:$0xff] %v5742_v17 }
 0x1c5   : > { %1477 = vst.msk [vmem:[#allocation2 + $0x410] sm:$0xff] %vm1457_vm12, %v1385_v57  ;;  %v788_v57 = vmul.f32 %v5494_v26, %v740_v53 }
 0x1c6   : > { %7773 = vst [vmem:[#allocation72_spill] sm:$0xff] %v5748_v16 }
 0x1c7   : > { %1464 = vst.msk [vmem:[#allocation2 + $0x208] sm:$0xff] %vm1457_vm12, %v1359_v13  ;;  %v828_v55 = vadd.f32 %v5508_v40, %v788_v57 }
 0x1c8   : > { %2125 = vst.msk [vmem:[#allocation2 + $0x4a0] sm:$0xff] %vm1232_vm3, %v5742_v17  ;;  %v5758_v45 = vpop.permute.xlu0 %1016 }
 0x1c9   : > { %1636 = vst.msk [vmem:[#allocation2 + $0x558] sm:$0xff] %vm1232_vm3, %v5748_v16  ;;  %v5761_v38 = vmul.f32 %v5758_v45, %v862_v42 }
 0x1ca   : > { %7774 = vst [vmem:[#allocation73_spill] sm:$0xff] %v5758_v45  ;;  %v2549_v37 = vld [vmem:[#allocation2 + $0x1b8] sm:$0xff]  ;;  %v1391_v1 = vpop.permute.xlu1 %1390  ;;  %v1393_v13 = vpop.permute.xlu2 %1392 }
 0x1cb   : > { %v2709_v18 = vpack.c.bf16 %v2549_v37, %v2544_v21  ;;  %1480 = vst.msk [vmem:[#allocation2 + $0x488] sm:$0xff] %vm1457_vm12, %v1391_v1  ;;  %v7600_v25 = vrot.slane %v5761_v38, 3  ;;  %v7599_v53 = vrot.slane %v5761_v38, 6  ;;  %v7596_v42 = vrot.slane %v5761_v38, 5 }
 0x1cc   : > { %1829 = vst.msk [vmem:[#allocation2 + $0x538] sm:$0xff] %vm1232_vm3, %v5761_v38  ;;  %v7598_v45 = vrot.slane %v5761_v38, 2  ;;  %v7597_v19 = vrot.slane %v5761_v38, 7  ;;  %v2624_v21 = vld [vmem:[#allocation2 + $0x410] sm:$0xff] }
 0x1cd   : > { %3149 = vmatmul.bf16.gmra.mxu1 %v2709_v18  ;;  %1481 = vst.msk [vmem:[#allocation2 + $0x4b0] sm:$0xff] %vm1457_vm12, %v1393_v13  ;;  %v2422_v57 = vsel %vm2363_vm7, %v2419_v35, %v7600_v25  ;;  %v1331_v37 = vsel %vm650_vm0, %v1328_v62, %v7599_v53  ;;  %v1180_v1 = vsel %vm1121_vm8, %v1177_v14, %v7596_v42  ;;  %v864_v18 = vmax.f32 %v828_v55, 0.0 }
 0x1ce   : > { %v5787_v13 = vsel %vm2138_vm11, %v2194_v49, %v7598_v45  ;;  %2502 = vst.msk [vmem:[#allocation2 + $0x4d0] sm:$0xff] %vm1232_vm3, %v2422_v57  ;;  %1402 = vrot.lane.b32.xlu0 %v1331_v37, %s4494_s26  ;;  %v5794_v35 = vsel %vm1498_vm10, %v1554_v4, %v7597_v19  ;;  %v7777_v62 = vrot.slane %v5761_v38, 1  ;;  %v845_v42 = vmax.f32 %v809_v48, 0.0  ;;  %v2629_v37 = vld [vmem:[#allocation2 + $0x438] sm:$0xff] }
 0x1cf   : > { %7775 = vst [vmem:[#allocation74_spill] sm:$0xff] %v5787_v13  ;;  %v770_v49 = vmul.f32 %v5494_v26, %v5161_v39  ;;  %v771_v55 = vmul.f32 %v5494_v26, %v5211_v9  ;;  %v2749_v48 = vpack.c.bf16 %v2629_v37, %v2624_v21  ;;  %v7782_v53 = vrot.slane %v5647_v20, 6 }
 0x1d0   : > { %7776 = vst [vmem:[#allocation75_spill] sm:$0xff] %v5794_v35  ;;  %v5799_v14 = vsel %vm1836_vm9, %v1892_v15, %v7777_v62 }
 0x1d1   : > { %7778 = vst [vmem:[#allocation76_spill] sm:$0xff] %v5799_v14  ;;  %v5806_v57 = vpop.permute.xlu0 %931  ;;  %v810_v37 = vadd.f32 %v5508_v40, %v770_v49  ;;  %v811_v19 = vadd.f32 %v5508_v40, %v771_v55  ;;  %v7783_v49 = vrot.slane %v5647_v20, 5 }
 0x1d2   : > { %1261 = vst.msk [vmem:[#allocation2 + $0x578] sm:$0xff] %vm1232_vm3, %v1180_v1  ;;  %v5811_v4 = vmul.f32 %v5806_v57, %v845_v42  ;;  %v1357_v15 = vpop.permute.xlu1 %1356  ;;  %v5813_v62 = vpop.permute.xlu2 %1026 }
 0x1d3   : > { %7779 = vst [vmem:[#allocation77_spill] sm:$0xff] %v5806_v57  ;;  %v5819_v9 = vmul.f32 %v5813_v62, %v864_v18  ;;  %3189 = vmatmul.bf16.gmra.mxu3 %v2749_v48  ;;  %v787_v18 = vmul.f32 %v5494_v26, %v5706_v59  ;;  %v7781_v48 = vrot.slane %v5647_v20, 3  ;;  %v846_v57 = vmax.f32 %v810_v37, 0.0  ;;  %v2559_v37 = vld [vmem:[#allocation2 + $0x208] sm:$0xff] }
 0x1d4   : > { %1637 = vst.msk [vmem:[#allocation2 + $0x580] sm:$0xff] %vm1232_vm3, %v5794_v35  ;;  %v2387_v39 = vrot.slane %v5811_v4, 3  ;;  %v1296_v42 = vrot.slane %v5811_v4, 6  ;;  %v1145_v1 = vrot.slane %v5811_v4, 5  ;;  %v2162_v21 = vrot.slane %v5811_v4, 2 }
 0x1d5   : > { %7780 = vst [vmem:[#allocation78_spill] sm:$0xff] %v5813_v62  ;;  %v7784_v62 = vrot.slane %v5647_v20, 2 }
 0x1d6   : > { %2126 = vst.msk [vmem:[#allocation2 + $0x4c8] sm:$0xff] %vm1232_vm3, %v5799_v14  ;;  %v2388_v45 = vsel %vm2363_vm7, %v7781_v48, %v2387_v39  ;;  %v1297_v25 = vsel %vm650_vm0, %v7782_v53, %v1296_v42  ;;  %v1146_v55 = vsel %vm1121_vm8, %v7783_v49, %v1145_v1  ;;  %v7607_v53 = vrot.slane %v5811_v4, 7 }
 0x1d7   : > { %1463 = vst.msk [vmem:[#allocation2 + $0x1e0] sm:$0xff] %vm1457_vm12, %v1357_v15  ;;  %v1860_v15 = vrot.slane %v5811_v4, 1  ;;  %v5846_v59 = vsel %vm2138_vm11, %v7784_v62, %v2162_v21  ;;  %1368 = vrot.lane.b32.xlu1 %v1297_v25, %s4494_s26  ;;  %v847_v49 = vmax.f32 %v811_v19, 0.0 }
 0x1d8   : > { %1812 = vst.msk [vmem:[#allocation2 + $0x290] sm:$0xff] %vm1232_vm3, %v5811_v4 }
 0x1d9   : > { %1831 = vst.msk [vmem:[#allocation2 + $0x588] sm:$0xff] %vm1232_vm3, %v5819_v9  ;;  %v5853_v48 = vsel %vm1836_vm9, %v7785_v50, %v1860_v15  ;;  %v1389_v31 = vpop.permute.xlu0 %1388  ;;  %v827_v50 = vadd.f32 %v5508_v40, %v787_v18 }
 0x1da   : > { %2485 = vst.msk [vmem:[#allocation2 + $0x228] sm:$0xff] %vm1232_vm3, %v2388_v45  ;;  %v7786_v45 = vrot.slane %v5647_v20, 7  ;;  %v5867_v62 = vpop.permute.xlu1 %936 }
 0x1db   : > { %1244 = vst.msk [vmem:[#allocation2 + $0x2d0] sm:$0xff] %vm1232_vm3, %v1146_v55  ;;  %v5870_v55 = vpop.permute.xlu2 %941  ;;  %v5873_v14 = vmul.f32 %v5867_v62, %v846_v57 }
 0x1dc   : > { %2109 = vst.msk [vmem:[#allocation2 + $0x220] sm:$0xff] %vm1232_vm3, %v5853_v48  ;;  %v5864_v25 = vsel %vm1498_vm10, %v7786_v45, %v7607_v53  ;;  %v5876_v35 = vmul.f32 %v5870_v55, %v847_v49  ;;  %v863_v53 = vmax.f32 %v827_v50, 0.0 }
 0x1dd   : > { %7787 = vst [vmem:[#allocation79_spill] sm:$0xff] %v5867_v62  ;;  %v2389_v18 = vrot.slane %v5873_v14, 3  ;;  %v1298_v45 = vrot.slane %v5873_v14, 6  ;;  %v1147_v57 = vrot.slane %v5873_v14, 5  ;;  %v2164_v49 = vrot.slane %v5873_v14, 2 }
 0x1de   : > { %1479 = vst.msk [vmem:[#allocation2 + $0x460] sm:$0xff] %vm1457_vm12, %v1389_v31  ;;  %v2554_v19 = vld [vmem:[#allocation2 + $0x1e0] sm:$0xff]  ;;  %v7612_v31 = vrot.slane %v5876_v35, 3  ;;  %v1862_v16 = vrot.slane %v5873_v14, 1 }
 0x1df   : > { %7788 = vst [vmem:[#allocation80_spill] sm:$0xff] %v5870_v55  ;;  %v2714_v20 = vpack.c.bf16 %v2559_v37, %v2554_v19  ;;  %v7613_v19 = vrot.slane %v5876_v35, 2  ;;  %v2390_v37 = vsel %vm2363_vm7, %v2387_v39, %v2389_v18  ;;  %v5907_v62 = vsel %vm2138_vm11, %v2162_v21, %v2164_v49 }
 0x1e0   : > { %1620 = vst.msk [vmem:[#allocation2 + $0x2d8] sm:$0xff] %vm1232_vm3, %v5864_v25  ;;  %v2392_v55 = vsel %vm2363_vm7, %v2389_v18, %v7612_v31  ;;  %v2639_v18 = vld [vmem:[#allocation2 + $0x488] sm:$0xff]  ;;  %v743_v31 = vpop.f32.mrf.mxu2  ;;  %v7792_v21 = vrot.slane %v5761_v38, 6 }
 0x1e1   : > { %1813 = vst.msk [vmem:[#allocation2 + $0x2b8] sm:$0xff] %vm1232_vm3, %v5873_v14  ;;  %3154 = vmatmul.bf16.gmra.mxu1 %v2714_v20  ;;  %v1299_v20 = vsel %vm650_vm0, %v1296_v42, %v1298_v45  ;;  %v5901_v50 = vsel %vm2138_vm11, %v2164_v49, %v7613_v19  ;;  %v1395_v39 = vpop.permute.xlu0 %1394  ;;  %v1148_v42 = vsel %vm1121_vm8, %v1145_v1, %v1147_v57  ;;  %v7614_v1 = vrot.slane %v5819_v9, 3 }
 0x1e2   : > { %1814 = vst.msk [vmem:[#allocation2 + $0x2e0] sm:$0xff] %vm1232_vm3, %v5876_v35  ;;  %1370 = vrot.lane.b32.xlu2 %v1299_v20, %s4494_s26  ;;  %v5923_v49 = vsel %vm1836_vm9, %v1860_v15, %v1862_v16 }
 0x1e3   : > { %2486 = vst.msk [vmem:[#allocation2 + $0x250] sm:$0xff] %vm1232_vm3, %v2390_v37  ;;  %v5909_v37 = vpop.permute.xlu1 %1021  ;;  %v1399_v20 = vpop.permute.xlu2 %1398 }
 0x1e4   : > { %2487 = vst.msk [vmem:[#allocation2 + $0x278] sm:$0xff] %vm1232_vm3, %v2392_v55  ;;  %v5913_v13 = vmul.f32 %v5909_v37, %v863_v53  ;;  %v7790_v55 = vrot.slane %v5876_v35, 5 }
 0x1e5   : > { %v2634_v17 = vld [vmem:[#allocation2 + $0x460] sm:$0xff]  ;;  %7789 = vst [vmem:[#allocation81_spill] sm:$0xff] %v5909_v37 }
 0x1e6   : > { %1482 = vst.msk [vmem:[#allocation2 + $0x4d8] sm:$0xff] %vm1457_vm12, %v1395_v39  ;;  %v2754_v19 = vpack.c.bf16 %v2639_v18, %v2634_v17  ;;  %v1150_v0 = vsel %vm1121_vm8, %v1147_v57, %v7790_v55  ;;  %v2423_v17 = vrot.slane %v5913_v13, 3  ;;  %v1332_v53 = vrot.slane %v5913_v13, 6 }
 0x1e7   : > { %1484 = vst.msk [vmem:[#allocation2 + $0x528] sm:$0xff] %vm1457_vm12, %v1399_v20  ;;  %v2198_v57 = vrot.slane %v5913_v13, 2  ;;  %v1181_v18 = vrot.slane %v5913_v13, 5 }
 0x1e8   : > { %3194 = vmatmul.bf16.gmra.mxu3 %v2754_v19  ;;  %1245 = vst.msk [vmem:[#allocation2 + $0x2f8] sm:$0xff] %vm1232_vm3, %v1148_v42  ;;  %v772_v19 = vmul.f32 %v5494_v26, %v5227_v63  ;;  %v7791_v42 = vrot.slane %v5761_v38, 3  ;;  %v2426_v55 = vsel %vm2363_vm7, %v2423_v17, %v7614_v1  ;;  %v1333_v39 = vsel %vm650_vm0, %v7792_v21, %v1332_v53 }
 0x1e9   : > { %1830 = vst.msk [vmem:[#allocation2 + $0x560] sm:$0xff] %vm1232_vm3, %v5913_v13  ;;  %v7793_v63 = vrot.slane %v5819_v9, 6  ;;  %1404 = vrot.lane.b32.xlu0 %v1333_v39, %s4494_s26  ;;  %v1524_v1 = vrot.slane %v5873_v14, 7  ;;  %v7795_v21 = vrot.slane %v5761_v38, 2  ;;  %v7616_v39 = vrot.slane %v5819_v9, 5 }
 0x1ea   : > { %1246 = vst.msk [vmem:[#allocation2 + $0x320] sm:$0xff] %vm1232_vm3, %v1150_v0  ;;  %v2424_v20 = vsel %vm2363_vm7, %v7791_v42, %v2423_v17  ;;  %v7794_v42 = vrot.slane %v5876_v35, 6 }
 0x1eb   : > { %v1335_v0 = vsel %vm650_vm0, %v1332_v53, %v7793_v63  ;;  %2110 = vst.msk [vmem:[#allocation2 + $0x248] sm:$0xff] %vm1232_vm3, %v5923_v49  ;;  %v5960_v15 = vsel %vm2138_vm11, %v7795_v21, %v2198_v57  ;;  %v1361_v53 = vpop.permute.xlu0 %1360  ;;  %v7797_v63 = vrot.slane %v5819_v9, 2  ;;  %v1363_v14 = vpop.permute.xlu1 %1362  ;;  %v1184_v21 = vsel %vm1121_vm8, %v1181_v18, %v7616_v39 }
 0x1ec   : > { %2503 = vst.msk [vmem:[#allocation2 + $0x4f8] sm:$0xff] %vm1232_vm3, %v2424_v20  ;;  %1406 = vrot.lane.b32.xlu1 %v1335_v0, %s4494_s26  ;;  %v1301_v17 = vsel %vm650_vm0, %v1298_v45, %v7794_v42  ;;  %v1365_v0 = vpop.permute.xlu2 %1364  ;;  %v7799_v42 = vrot.slane %v5761_v38, 5  ;;  %v1896_v20 = vrot.slane %v5913_v13, 1 }
 0x1ed   : > { %7796 = vst [vmem:[#allocation82_spill] sm:$0xff] %v5960_v15  ;;  %1372 = vrot.lane.b32.xlu2 %v1301_v17, %s4494_s26  ;;  %v5969_v45 = vsel %vm2138_vm11, %v2198_v57, %v7797_v63  ;;  %v1526_v17 = vrot.slane %v5876_v35, 7  ;;  %v812_v57 = vadd.f32 %v5508_v40, %v772_v19  ;;  %v7800_v63 = vrot.slane %v5811_v4, 7 }
 0x1ee   : > { %2504 = vst.msk [vmem:[#allocation2 + $0x520] sm:$0xff] %vm1232_vm3, %v2426_v55  ;;  %v1182_v55 = vsel %vm1121_vm8, %v7799_v42, %v1181_v18  ;;  %v789_v42 = vmul.f32 %v5494_v26, %v743_v31  ;;  %v7802_v31 = vrot.slane %v5761_v38, 1 }
 0x1ef   : > { %7798 = vst [vmem:[#allocation83_spill] sm:$0xff] %v5969_v45  ;;  %v5986_v37 = vsel %vm1498_vm10, %v7800_v63, %v1524_v1  ;;  %v5997_v19 = vsel %vm1498_vm10, %v1524_v1, %v1526_v17  ;;  %v2649_v63 = vld [vmem:[#allocation2 + $0x4d8] sm:$0xff] }
 0x1f0   : > { %1465 = vst.msk [vmem:[#allocation2 + $0x230] sm:$0xff] %vm1457_vm12, %v1361_v53  ;;  %v745_v53 = vpop.f32.mrf.mxu2  ;;  %v829_v1 = vadd.f32 %v5508_v40, %v789_v42  ;;  %v7805_v42 = vrot.slane %v5761_v38, 7 }
 0x1f1   : > { %1466 = vst.msk [vmem:[#allocation2 + $0x258] sm:$0xff] %vm1457_vm12, %v1363_v14  ;;  %v7801_v14 = vrot.slane %v5876_v35, 1  ;;  %v790_v4 = vmul.f32 %v5494_v26, %v745_v53  ;;  %v7619_v53 = vrot.slane %v5819_v9, 7 }
 0x1f2   : > { %1467 = vst.msk [vmem:[#allocation2 + $0x280] sm:$0xff] %vm1457_vm12, %v1365_v0  ;;  %v1558_v0 = vrot.slane %v5913_v13, 7 }
 0x1f3   : > { %1262 = vst.msk [vmem:[#allocation2 + $0x5a0] sm:$0xff] %vm1232_vm3, %v1182_v55  ;;  %v5993_v18 = vsel %vm1836_vm9, %v1862_v16, %v7801_v14  ;;  %v6006_v55 = vsel %vm1836_vm9, %v7802_v31, %v1896_v20  ;;  %v848_v16 = vmax.f32 %v812_v57, 0.0  ;;  %v2644_v14 = vld [vmem:[#allocation2 + $0x4b0] sm:$0xff]  ;;  %v1397_v39 = vpop.permute.xlu1 %1396  ;;  %v830_v34 = vadd.f32 %v5508_v40, %v790_v4 }
 0x1f4   : > { %1263 = vst.msk [vmem:[#allocation2 + $0x5c8] sm:$0xff] %vm1232_vm3, %v1184_v21  ;;  %v6011_v21 = vpop.permute.xlu0 %946  ;;  %v2759_v57 = vpack.c.bf16 %v2649_v63, %v2644_v14  ;;  %v6024_v15 = vsel %vm1498_vm10, %v7805_v42, %v1558_v0  ;;  %v865_v42 = vmax.f32 %v829_v1, 0.0  ;;  %v7809_v1 = vrot.slane %v5876_v35, 6 }
 0x1f5   : > { %1621 = vst.msk [vmem:[#allocation2 + $0x300] sm:$0xff] %vm1232_vm3, %v5986_v37  ;;  %v6017_v45 = vmul.f32 %v6011_v21, %v848_v16  ;;  %v6031_v16 = vsel %vm1498_vm10, %v1558_v0, %v7619_v53  ;;  %v1898_v0 = vrot.slane %v5819_v9, 1  ;;  %v7810_v53 = vrot.slane %v5876_v35, 5 }
 0x1f6   : > { %7803 = vst [vmem:[#allocation84_spill] sm:$0xff] %v6006_v55  ;;  %v7811_v4 = vrot.slane %v5876_v35, 2 }
 0x1f7   : > { %2111 = vst.msk [vmem:[#allocation2 + $0x270] sm:$0xff] %vm1232_vm3, %v5993_v18  ;;  %v2564_v13 = vld [vmem:[#allocation2 + $0x230] sm:$0xff]  ;;  %v7624_v63 = vrot.slane %v6017_v45, 3  ;;  %v7622_v38 = vrot.slane %v6017_v45, 6  ;;  %v7621_v14 = vrot.slane %v6017_v45, 5 }
 0x1f8   : > { %7804 = vst [vmem:[#allocation85_spill] sm:$0xff] %v6011_v21  ;;  %v2569_v31 = vld [vmem:[#allocation2 + $0x258] sm:$0xff]  ;;  %3199 = vmatmul.bf16.gmra.mxu3 %v2759_v57 }
 0x1f9   : > { %1622 = vst.msk [vmem:[#allocation2 + $0x328] sm:$0xff] %vm1232_vm3, %v5997_v19  ;;  %v2719_v47 = vpack.c.bf16 %v2569_v31, %v2564_v13  ;;  %v7808_v31 = vrot.slane %v5876_v35, 3  ;;  %v1152_v13 = vsel %vm1121_vm8, %v7810_v53, %v7621_v14  ;;  %v7812_v53 = vrot.slane %v6017_v45, 1 }
 0x1fa   : > { %2127 = vst.msk [vmem:[#allocation2 + $0x4f0] sm:$0xff] %vm1232_vm3, %v6006_v55  ;;  %v7813_v14 = vrot.slane %v5876_v35, 1 }
 0x1fb   : > { %7806 = vst [vmem:[#allocation86_spill] sm:$0xff] %v6024_v15  ;;  %3159 = vmatmul.bf16.gmra.mxu1 %v2719_v47  ;;  %v2394_v57 = vsel %vm2363_vm7, %v7808_v31, %v7624_v63  ;;  %v1303_v47 = vsel %vm650_vm0, %v7809_v1, %v7622_v38  ;;  %v773_v31 = vmul.f32 %v5494_v26, %v5268_v6  ;;  %v866_v1 = vmax.f32 %v830_v34, 0.0  ;;  %v6092_v34 = vpop.permute.xlu1 %1036 }
 0x1fc   : > { %1483 = vst.msk [vmem:[#allocation2 + $0x500] sm:$0xff] %vm1457_vm12, %v1397_v39  ;;  %v7623_v39 = vrot.slane %v6017_v45, 2  ;;  %1374 = vrot.lane.b32.xlu0 %v1303_v47, %s4494_s26  ;;  %v6077_v38 = vsel %vm1836_vm9, %v7813_v14, %v7812_v53  ;;  %v6086_v6 = vsel %vm1836_vm9, %v1896_v20, %v1898_v0  ;;  %v6088_v26 = vpop.permute.xlu0 %1031  ;;  %v7819_v63 = vrot.slane %v5819_v9, 6 }
 0x1fd   : > { %7807 = vst [vmem:[#allocation87_spill] sm:$0xff] %v6031_v16  ;;  %v1081_v35 = vmul.f32 %v6088_v26, %v865_v42  ;;  %v6099_v14 = vmul.f32 %v6092_v34, %v866_v1  ;;  %v7818_v1 = vrot.slane %v5819_v9, 3 }
 0x1fe   : > { %1815 = vst.msk [vmem:[#allocation2 + $0x308] sm:$0xff] %vm1232_vm3, %v6017_v45  ;;  %v6064_v21 = vsel %vm2138_vm11, %v7811_v4, %v7623_v39  ;;  %v7814_v4 = vrot.slane %v6017_v45, 7 }
 0x1ff   : > { %1638 = vst.msk [vmem:[#allocation2 + $0x5a8] sm:$0xff] %vm1232_vm3, %v6024_v15  ;;  %v2427_v20 = vrot.slane %v1081_v35, 3  ;;  %v2202_v47 = vrot.slane %v1081_v35, 2  ;;  %v7823_v42 = vrot.slane %v6099_v14, 3  ;;  %v2204_v5 = vrot.slane %v6099_v14, 2 }
 0x200   : > { %1639 = vst.msk [vmem:[#allocation2 + $0x5d0] sm:$0xff] %vm1232_vm3, %v6031_v16  ;;  %v6082_v39 = vsel %vm1498_vm10, %v1526_v17, %v7814_v4  ;;  %v813_v17 = vadd.f32 %v5508_v40, %v773_v31  ;;  %v1187_v40 = vrot.slane %v6099_v14, 5  ;;  %v1900_v31 = vrot.slane %v1081_v35, 1 }
 0x201   : > { %2488 = vst.msk [vmem:[#allocation2 + $0x2a0] sm:$0xff] %vm1232_vm3, %v2394_v57  ;;  %v1185_v57 = vrot.slane %v1081_v35, 5  ;;  %v2428_v4 = vsel %vm2363_vm7, %v7818_v1, %v2427_v20  ;;  %v2430_v15 = vsel %vm2363_vm7, %v2427_v20, %v7823_v42  ;;  %v7824_v1 = vrot.slane %v6099_v14, 6 }
 0x202   : > { %1247 = vst.msk [vmem:[#allocation2 + $0x348] sm:$0xff] %vm1232_vm3, %v1152_v13  ;;  %v1336_v13 = vrot.slane %v1081_v35, 6  ;;  %v1562_v20 = vrot.slane %v1081_v35, 7  ;;  %v7632_v42 = vrot.slane %v6099_v14, 7 }
 0x203   : > { %7815 = vst [vmem:[#allocation88_spill] sm:$0xff] %v6086_v6  ;;  %v2654_v55 = vld [vmem:[#allocation2 + $0x500] sm:$0xff] }
 0x204   : > { %7816 = vst [vmem:[#allocation89_spill] sm:$0xff] %v6088_v26  ;;  %v7820_v26 = vrot.slane %v5819_v9, 5 }
 0x205   : > { %2112 = vst.msk [vmem:[#allocation2 + $0x298] sm:$0xff] %vm1232_vm3, %v6077_v38 }
 0x206   : > { %7817 = vst [vmem:[#allocation90_spill] sm:$0xff] %v6092_v34  ;;  %v1337_v34 = vsel %vm650_vm0, %v7819_v63, %v1336_v13  ;;  %v1186_v53 = vsel %vm1121_vm8, %v7820_v26, %v1185_v57  ;;  %v1339_v63 = vsel %vm650_vm0, %v1336_v13, %v7824_v1  ;;  %v1188_v26 = vsel %vm1121_vm8, %v1185_v57, %v1187_v40 }
 0x207   : > { %1623 = vst.msk [vmem:[#allocation2 + $0x350] sm:$0xff] %vm1232_vm3, %v6082_v39  ;;  %1408 = vrot.lane.b32.xlu1 %v1337_v34, %s4494_s26  ;;  %1410 = vrot.lane.b32.xlu2 %v1339_v63, %s4494_s26  ;;  %v7633_v34 = vrot.slane %v6099_v14, 1  ;;  %v6144_v13 = vsel %vm2138_vm11, %v2202_v47, %v2204_v5 }
 0x208   : > { %2128 = vst.msk [vmem:[#allocation2 + $0x518] sm:$0xff] %vm1232_vm3, %v6086_v6  ;;  %v7821_v6 = vrot.slane %v5819_v9, 2 }
 0x209   : > { %1832 = vst.msk [vmem:[#allocation2 + $0x5b0] sm:$0xff] %vm1232_vm3, %v1081_v35 }
 0x20a   : > { %1833 = vst.msk [vmem:[#allocation2 + $0x5d8] sm:$0xff] %vm1232_vm3, %v6099_v14  ;;  %v6121_v16 = vsel %vm2138_vm11, %v7821_v6, %v2202_v47  ;;  %v6136_v6 = vsel %vm1836_vm9, %v1898_v0, %v1900_v31  ;;  %v7825_v0 = vrot.slane %v5819_v9, 7  ;;  %v6160_v47 = vsel %vm1498_vm10, %v1562_v20, %v7632_v42 }
 0x20b   : > { %7822 = vst [vmem:[#allocation91_spill] sm:$0xff] %v6121_v16  ;;  %v2659_v16 = vld [vmem:[#allocation2 + $0x528] sm:$0xff]  ;;  %v6167_v9 = vsel %vm1836_vm9, %v1900_v31, %v7633_v34  ;;  %v7829_v42 = vrot.slane %v6017_v45, 6 }
 0x20c   : > { %2505 = vst.msk [vmem:[#allocation2 + $0x548] sm:$0xff] %vm1232_vm3, %v2428_v4  ;;  %v849_v4 = vmax.f32 %v813_v17, 0.0  ;;  %v2764_v57 = vpack.c.bf16 %v2659_v16, %v2654_v55  ;;  %v6152_v35 = vsel %vm1498_vm10, %v7825_v0, %v1562_v20 }
 0x20d   : > { %2506 = vst.msk [vmem:[#allocation2 + $0x570] sm:$0xff] %vm1232_vm3, %v2430_v15  ;;  %v6146_v15 = vpop.permute.xlu1 %951 }
 0x20e   : > { %1265 = vst.msk [vmem:[#allocation2 + $0x618] sm:$0xff] %vm1232_vm3, %v1188_v26  ;;  %v1065_v17 = vmul.f32 %v6146_v15, %v849_v4  ;;  %3204 = vmatmul.bf16.gmra.mxu3 %v2764_v57  ;;  %v7826_v26 = vrot.slane %v6017_v45, 3  ;;  %v7827_v4 = vrot.slane %v5333_v36, 3  ;;  %v7828_v57 = vrot.slane %v5333_v36, 6 }
 0x20f   : > { %1264 = vst.msk [vmem:[#allocation2 + $0x5f0] sm:$0xff] %vm1232_vm3, %v1186_v53  ;;  %1649 = vrot.lane.b32.xlu2 %v4755_v54, %s4494_s26  ;;  %v7836_v54 = vrot.slane %v5333_v36, 1 }
 0x210   : > { %2129 = vst.msk [vmem:[#allocation2 + $0x540] sm:$0xff] %vm1232_vm3, %v6136_v6  ;;  %v2395_v55 = vrot.slane %v1065_v17, 3  ;;  %v1304_v16 = vrot.slane %v1065_v17, 6  ;;  %v2170_v53 = vrot.slane %v1065_v17, 2  ;;  %v1153_v40 = vrot.slane %v1065_v17, 5 }
 0x211   : > { %1640 = vst.msk [vmem:[#allocation2 + $0x5f8] sm:$0xff] %vm1232_vm3, %v6152_v35  ;;  %v1868_v1 = vrot.slane %v1065_v17, 1  ;;  %v1530_v63 = vrot.slane %v1065_v17, 7 }
 0x212   : > { %1816 = vst.msk [vmem:[#allocation2 + $0x330] sm:$0xff] %vm1232_vm3, %v1065_v17  ;;  %v2396_v20 = vsel %vm2363_vm7, %v7826_v26, %v2395_v55  ;;  %v2398_v31 = vsel %vm2363_vm7, %v2395_v55, %v7827_v4  ;;  %v1307_v0 = vsel %vm650_vm0, %v1304_v16, %v7828_v57  ;;  %v1305_v34 = vsel %vm650_vm0, %v7829_v42, %v1304_v16 }
 0x213   : > { %1641 = vst.msk [vmem:[#allocation2 + $0x620] sm:$0xff] %vm1232_vm3, %v6160_v47  ;;  %1378 = vrot.lane.b32.xlu1 %v1307_v0, %s4494_s26  ;;  %1376 = vrot.lane.b32.xlu0 %v1305_v34, %s4494_s26  ;;  %v7830_v17 = vrot.slane %v6017_v45, 2  ;;  %v7831_v26 = vrot.slane %v5333_v36, 5  ;;  %v7832_v42 = vrot.slane %v6017_v45, 5  ;;  %v7833_v34 = vrot.slane %v6017_v45, 1 }
 0x214   : > { %2130 = vst.msk [vmem:[#allocation2 + $0x568] sm:$0xff] %vm1232_vm3, %v6167_v9  ;;  %v7834_v57 = vrot.slane %v5333_v36, 2 }
 0x215   : > { %2489 = vst.msk [vmem:[#allocation2 + $0x2c8] sm:$0xff] %vm1232_vm3, %v2396_v20  ;;  %v6192_v55 = vsel %vm2138_vm11, %v7830_v17, %v2170_v53  ;;  %v1156_v4 = vsel %vm1121_vm8, %v1153_v40, %v7831_v26  ;;  %v1154_v16 = vsel %vm1121_vm8, %v7832_v42, %v1153_v40  ;;  %v6206_v20 = vsel %vm1836_vm9, %v7833_v34, %v1868_v1  ;;  %v7846_v42 = vld [vmem:[#allocation36_spill] sm:$0xff] }
 0x216   : > { %2490 = vst.msk [vmem:[#allocation2 + $0x2f0] sm:$0xff] %vm1232_vm3, %v2398_v31  ;;  %v6211_v0 = vsel %vm2138_vm11, %v2170_v53, %v7834_v57  ;;  %v7835_v17 = vrot.slane %v6017_v45, 7  ;;  %v6223_v31 = vsel %vm1836_vm9, %v1868_v1, %v7836_v54  ;;  %v7837_v53 = vrot.slane %v5333_v36, 7  ;;  %v7848_v34 = vld [vmem:[#allocation60_spill] sm:$0xff] }
 0x217   : > { %1249 = vst.msk [vmem:[#allocation2 + $0x398] sm:$0xff] %vm1232_vm3, %v1156_v4  ;;  %1912 = vrot.lane.b32.xlu2 %v4806_v28, %s4494_s26  ;;  %v4344_v4 = vld [vmem:[%s7511_s5 + $0xb8] sm:$0xff]  ;;  %vm2358_vm8 = vcmask 1046016  }
 0x218   : > { %v6217_v40 = vsel %vm1498_vm10, %v7835_v17, %v1530_v63  ;;  %1248 = vst.msk [vmem:[#allocation2 + $0x370] sm:$0xff] %vm1232_vm3, %v1154_v16  ;;  %v6230_v26 = vsel %vm1498_vm10, %v1530_v63, %v7837_v53  ;;  %v4336_v63 = vld [vmem:[%s7511_s5 + $0x78] sm:$0xff]  ;;  %3324 = vmatpush.bf16.msrb.mxu3 %v4344_v4  ;;  %v4335_v53 = vld [vmem:[%s7511_s5 + $0x70] sm:$0xff] }
 0x219   : > { %2113 = vst.msk [vmem:[#allocation2 + $0x2c0] sm:$0xff] %vm1232_vm3, %v6206_v20  ;;  %v1367_v36 = vpop.permute.xlu0 %1366  ;;  %3225 = vmatpush.bf16.msrb.mxu2 %v4336_v63  ;;  %v7847_v16 = vld [vmem:[#allocation37_spill] sm:$0xff]  ;;  %v4330_v63 = vld [vmem:[%s7511_s5 + $0x48] sm:$0xff] }
 0x21a   : > { %1624 = vst.msk [vmem:[#allocation2 + $0x378] sm:$0xff] %vm1232_vm3, %v6217_v40  ;;  %v1401_v45 = vpop.permute.xlu2 %1400  ;;  %v4348_v4 = vld [vmem:[%s7511_s5 + $0xd8] sm:$0xff] }
 0x21b   : > { %2114 = vst.msk [vmem:[#allocation2 + $0x2e8] sm:$0xff] %vm1232_vm3, %v6223_v31  ;;  %1910 = vrot.lane.b32.xlu1 %v4780_v10, %s4494_s26  ;;  %1651 = vrot.lane.b32.xlu0 %v4784_v11, %s4494_s26  ;;  %v2574_v10 = vld [vmem:[#allocation2 + $0x280] sm:$0xff] }
 0x21c   : > { %1625 = vst.msk [vmem:[#allocation2 + $0x3a0] sm:$0xff] %vm1232_vm3, %v6230_v26 }
 0x21d   : > { %1468 = vst.msk [vmem:[#allocation2 + $0x2a8] sm:$0xff] %vm1457_vm12, %v1367_v36  ;;  %v4343_v36 = vld [vmem:[%s7511_s5 + $0xb0] sm:$0xff]  ;;  %3226 = vmatpush.bf16.msrb.mxu2 %v4335_v53  ;;  %v4354_v53 = vld [vmem:[%s7511_s5 + $0x108] sm:$0xff] }
 0x21e   : > { %1485 = vst.msk [vmem:[#allocation2 + $0x550] sm:$0xff] %vm1457_vm12, %v1401_v45  ;;  %v4352_v45 = vld [vmem:[%s7511_s5 + $0xf8] sm:$0xff]  ;;  %3325 = vmatpush.bf16.msrb.mxu3 %v4343_v36 }
 0x21f   : > { %1653 = vrot.lane.b32.xlu2 %v4809_v29, %s4494_s26  ;;  %v7838_v29 = vld [vmem:[#allocation27_spill] sm:$0xff]  ;;  %3423 = vmatpush.bf16.msrb.mxu0 %v4352_v45 }
 0x223   : > { %2218 = vrot.lane.b32.xlu1 %v4865_v22, %s4494_s26  ;;  %2216 = vrot.lane.b32.xlu0 %v4833_v56, %s4494_s26  ;;  %v7841_v22 = vld [vmem:[#allocation34_spill] sm:$0xff] }
 0x224   : > { %v2579_v11 = vld [vmem:[#allocation2 + $0x2a8] sm:$0xff] }
 0x225   : > { %v2724_v28 = vpack.c.bf16 %v2579_v11, %v2574_v10  ;;  %v4334_v10 = vld [vmem:[%s7511_s5 + $0x68] sm:$0xff] }
 0x226   : > { %v4342_v11 = vld [vmem:[%s7511_s5 + $0xa8] sm:$0xff]  ;;  %3227 = vmatpush.bf16.msrb.mxu2 %v4334_v10 }
 0x227   : > { %1916 = vrot.lane.b32.xlu2 %v4868_v23, %s4494_s26  ;;  %3164 = vmatmul.bf16.gmra.mxu1 %v2724_v28  ;;  %v7849_v28 = vld [vmem:[#allocation61_spill] sm:$0xff] }
 0x228   : > { %3326 = vmatpush.bf16.msrb.mxu3 %v4342_v11 }
 0x22b   : > { %1914 = vrot.lane.b32.xlu1 %v4836_v58, %s4494_s26  ;;  %1655 = vrot.lane.b32.xlu0 %v4839_v60, %s4494_s26  ;;  %v7839_v58 = vld [vmem:[#allocation29_spill] sm:$0xff]  ;;  %v7840_v60 = vld [vmem:[#allocation30_spill] sm:$0xff] }
 0x22f   : > { %1657 = vrot.lane.b32.xlu2 %v4871_v24, %s4494_s26 }
 0x233   : > { %2222 = vrot.lane.b32.xlu1 %v4936_v46, %s4494_s26  ;;  %2220 = vrot.lane.b32.xlu0 %v4893_v51, %s4494_s26  ;;  %v7842_v51 = vmov 0.0   ;;  %v7845_v46 = vld [vmem:[#allocation35_spill] sm:$0xff] }
 0x234   : > { %1799 = vst.msk [vmem:[#allocation2 + $0xa8] sm:$0x1] %vm1797_vm2, %v7842_v51 }
 0x235   : > { %1648 = vst.msk [vmem:[#allocation2 + $0xf8] sm:$0x1] %vm1644_vm4, %v7842_v51 }
 0x237   : > { %1920 = vrot.lane.b32.xlu2 %v4939_v32, %s4494_s26 }
 0x23b   : > { %1918 = vrot.lane.b32.xlu1 %v4896_v52, %s4494_s26  ;;  %1659 = vrot.lane.b32.xlu0 %v4899_v61, %s4494_s26  ;;  %v7843_v52 = vld [vmem:[#allocation59_spill] sm:$0xff]  ;;  %v7844_v61 = vld [vmem:[#allocation33_spill] sm:$0xff] }
 0x23c   : > { %v1371_v56 = vpop.permute.xlu2 %1370 }
 0x23d   : > { %1470 = vst.msk [vmem:[#allocation2 + $0x2f8] sm:$0xff] %vm1457_vm12, %v1371_v56 }
 0x23f   : > { %1661 = vrot.lane.b32.xlu2 %v7838_v29, %s4494_s26  ;;  %v6328_v29 = vpop.f32.mrf.mxu1 }
 0x240   : > { %v1403_v23 = vpop.permute.xlu0 %1402 }
 0x241   : > { %1486 = vst.msk [vmem:[#allocation2 + $0x578] sm:$0xff] %vm1457_vm12, %v1403_v23  ;;  %v4318_v23 = vld [vmem:[%s4629_s23 + $0x88] sm:$0xff] }
 0x242   : > { %4134 = vmatmul.msk.bf16.gmra.mxu2 %vm595_vm1, %v4318_v23  ;;  %vm2509_vm1 = vcmask 520192  }
 0x243   : > { %2226 = vrot.lane.b32.xlu1 %v5033_v8, %s4494_s26  ;;  %2224 = vrot.lane.b32.xlu0 %v4984_v2, %s4494_s26  ;;  %v2664_v2 = vld [vmem:[#allocation2 + $0x550] sm:$0xff] }
 0x244   : > { %v2589_v17 = vld [vmem:[#allocation2 + $0x2f8] sm:$0xff] }
 0x247   : > { %1924 = vrot.lane.b32.xlu2 %v7841_v22, %s4494_s26  ;;  %v1373_v24 = vpop.permute.xlu2 %1372 }
 0x248   : > { %1471 = vst.msk [vmem:[#allocation2 + $0x320] sm:$0xff] %vm1457_vm12, %v1373_v24  ;;  %v2669_v8 = vld [vmem:[#allocation2 + $0x578] sm:$0xff] }
 0x249   : > { %v1369_v32 = vpop.permute.xlu1 %1368  ;;  %v2769_v1 = vpack.c.bf16 %v2669_v8, %v2664_v2  ;;  %v4332_v24 = vld [vmem:[%s7511_s5 + $0x58] sm:$0xff]  ;;  %v4349_v2 = vld [vmem:[%s7511_s5 + $0xe0] sm:$0xff] }
 0x24a   : > { %1469 = vst.msk [vmem:[#allocation2 + $0x2d0] sm:$0xff] %vm1457_vm12, %v1369_v32 }
 0x24b   : > { %1922 = vrot.lane.b32.xlu1 %v7839_v58, %s4494_s26  ;;  %1663 = vrot.lane.b32.xlu0 %v7840_v60, %s4494_s26  ;;  %v4333_v58 = vld [vmem:[%s7511_s5 + $0x60] sm:$0xff] }
 0x24c   : > { %3209 = vmatmul.bf16.gmra.mxu3 %v2769_v1  ;;  %3228 = vmatpush.bf16.msrb.mxu2 %v4333_v58  ;;  %v6368_v1 = vpop.f32.mrf.mxu1 }
 0x24f   : > { %1665 = vrot.lane.b32.xlu2 %v7845_v46, %s4494_s26  ;;  %v4331_v46 = vld [vmem:[%s7511_s5 + $0x50] sm:$0xff]  ;;  %v2594_v10 = vld [vmem:[#allocation2 + $0x320] sm:$0xff] }
 0x250   : > { %3229 = vmatpush.bf16.msrb.mxu2 %v4332_v24 }
 0x251   : > { %v2584_v57 = vld [vmem:[#allocation2 + $0x2d0] sm:$0xff] }
 0x252   : > { %v2729_v54 = vpack.c.bf16 %v2589_v17, %v2584_v57  ;;  %v4329_v57 = vld [vmem:[%s7511_s5 + $0x40] sm:$0xff] }
 0x253   : > { %2230 = vrot.lane.b32.xlu1 %v7843_v52, %s4494_s26  ;;  %2228 = vrot.lane.b32.xlu0 %v7844_v61, %s4494_s26  ;;  %v4340_v52 = vld [vmem:[%s7511_s5 + $0x98] sm:$0xff]  ;;  %v4350_v61 = vld [vmem:[%s7511_s5 + $0xe8] sm:$0xff] }
 0x254   : > { %3169 = vmatmul.bf16.gmra.mxu1 %v2729_v54  ;;  %3230 = vmatpush.bf16.msrb.mxu2 %v4331_v46  ;;  %v4346_v54 = vld [vmem:[%s7511_s5 + $0xc8] sm:$0xff]  ;;  %v6408_v36 = vpop.f32.mrf.mxu1 }
 0x257   : > { %1928 = vrot.lane.b32.xlu2 %v7848_v34, %s4494_s26 }
 0x258   : > { %3231 = vmatpush.bf16.msrb.mxu2 %v4330_v63 }
 0x25b   : > { %1926 = vrot.lane.b32.xlu1 %v7846_v42, %s4494_s26  ;;  %1667 = vrot.lane.b32.xlu0 %v7847_v16, %s4494_s26  ;;  %v1405_v56 = vpop.permute.xlu0 %1404  ;;  %v4338_v42 = vld [vmem:[%s7511_s5 + $0x88] sm:$0xff]  ;;  %v4356_v16 = vld [vmem:[%s7511_s5 + $0x118] sm:$0xff] }
 0x25c   : > { %1487 = vst.msk [vmem:[#allocation2 + $0x5a0] sm:$0xff] %vm1457_vm12, %v1405_v56  ;;  %3526 = vmatpush.bf16.msrb.mxu1 %v4356_v16  ;;  %3232 = vmatpush.bf16.msrb.mxu2 %v4329_v57  ;;  %v4345_v56 = vld [vmem:[%s7511_s5 + $0xc0] sm:$0xff]  ;;  %v6430_v58 = vpop.f32.mrf.mxu1 }
 0x25e   : > { %v1407_v60 = vpop.permute.xlu1 %1406 }
 0x25f   : > { %1669 = vrot.lane.b32.xlu2 %v7849_v28, %s4494_s26  ;;  %1488 = vst.msk [vmem:[#allocation2 + $0x5c8] sm:$0xff] %vm1457_vm12, %v1407_v60 }
 0x261   : > { %v1411_v22 = vpop.permute.xlu2 %1410 }
 0x262   : > { %1490 = vst.msk [vmem:[#allocation2 + $0x618] sm:$0xff] %vm1457_vm12, %v1411_v22 }
 0x263   : > { %2234 = vrot.lane.b32.xlu1 %v5846_v59, %s4494_s26  ;;  %2232 = vrot.lane.b32.xlu0 %v5679_v33, %s4494_s26  ;;  %v4341_v59 = vld [vmem:[%s7511_s5 + $0xa0] sm:$0xff]  ;;  %v4351_v33 = vld [vmem:[%s7511_s5 + $0xf0] sm:$0xff] }
 0x264   : > { %3424 = vmatpush.bf16.msrb.mxu0 %v4351_v33  ;;  %3327 = vmatpush.bf16.msrb.mxu3 %v4341_v59  ;;  %v2674_v32 = vld [vmem:[#allocation2 + $0x5a0] sm:$0xff] }
 0x266   : > { %v2679_v8 = vld [vmem:[#allocation2 + $0x5c8] sm:$0xff] }
 0x267   : > { %1932 = vrot.lane.b32.xlu2 %v5853_v48, %s4494_s26  ;;  %v2774_v48 = vpack.c.bf16 %v2679_v8, %v2674_v32 }
 0x268   : > { %3328 = vmatpush.bf16.msrb.mxu3 %v4340_v52  ;;  %3425 = vmatpush.bf16.msrb.mxu0 %v4350_v61 }
 0x269   : > { %3214 = vmatmul.bf16.gmra.mxu3 %v2774_v48  ;;  %v2689_v33 = vld [vmem:[#allocation2 + $0x618] sm:$0xff] }
 0x26b   : > { %1930 = vrot.lane.b32.xlu1 %v5686_v27, %s4494_s26  ;;  %1671 = vrot.lane.b32.xlu0 %v5693_v12, %s4494_s26  ;;  %v1650_v27 = vpop.permute.xlu2 %1649  ;;  %v4339_v12 = vld [vmem:[%s7511_s5 + $0x90] sm:$0xff] }
 0x26c   : > { %1761 = vst.msk [vmem:[#allocation2 + $0xa8] sm:$0xfe] %vm1760_vm5, %v1650_v27  ;;  %3426 = vmatpush.bf16.msrb.mxu0 %v4349_v2  ;;  %3329 = vmatpush.bf16.msrb.mxu3 %v4339_v12 }
 0x26e   : > { %v1375_v34 = vpop.permute.xlu0 %1374 }
 0x26f   : > { %1673 = vrot.lane.b32.xlu2 %v5864_v25, %s4494_s26  ;;  %1472 = vst.msk [vmem:[#allocation2 + $0x348] sm:$0xff] %vm1457_vm12, %v1375_v34  ;;  %v4337_v25 = vld [vmem:[%s7511_s5 + $0x80] sm:$0xff]  ;;  %v2523_v34 = vld [vmem:[#allocation2 + $0xe8] sm:$0xff] }
 0x270   : > { %3427 = vmatpush.bf16.msrb.mxu0 %v4348_v4  ;;  %3330 = vmatpush.bf16.msrb.mxu3 %v4338_v42 }
 0x273   : > { %2238 = vrot.lane.b32.xlu1 %v5901_v50, %s4494_s26  ;;  %2236 = vrot.lane.b32.xlu0 %v5907_v62, %s4494_s26  ;;  %v4347_v50 = vld [vmem:[%s7511_s5 + $0xd0] sm:$0xff]  ;;  %v1913_v17 = vpop.permute.xlu2 %1912  ;;  %v2515_v48 = vld [vmem:[#allocation2 + $0xa8] sm:$0xff] }
 0x274   : > { %v4355_v62 = vld [vmem:[%s7511_s5 + $0x110] sm:$0xff]  ;;  %2022 = vst.msk [vmem:[#allocation2 + $0xd8] sm:$0xff] %vm1457_vm12, %v1913_v17  ;;  %3428 = vmatpush.bf16.msrb.mxu0 %v4347_v50  ;;  %3331 = vmatpush.bf16.msrb.mxu3 %v4337_v25 }
 0x275   : > { %3527 = vmatpush.bf16.msrb.mxu1 %v4355_v62 }
 0x276   : > { %v2599_v11 = vld [vmem:[#allocation2 + $0x348] sm:$0xff] }
 0x277   : > { %1936 = vrot.lane.b32.xlu2 %v5993_v18, %s4494_s26  ;;  %v2734_v28 = vpack.c.bf16 %v2599_v11, %v2594_v10  ;;  %v6424_v18 = vpop.f32.mrf.mxu3  ;;  %v7852_v10 = vld [vmem:[#allocation62_spill] sm:$0xff]  ;;  %v7853_v11 = vld [vmem:[#allocation57_spill] sm:$0xff] }
 0x278   : > { %3429 = vmatpush.bf16.msrb.mxu0 %v4346_v54  ;;  %v2518_v54 = vld [vmem:[#allocation2 + $0xc0] sm:$0xff] }
 0x279   : > { %v1409_v45 = vpop.permute.xlu1 %1408  ;;  %3528 = vmatpush.bf16.msrb.mxu1 %v4354_v53 }
 0x27a   : > { %1489 = vst.msk [vmem:[#allocation2 + $0x5f0] sm:$0xff] %vm1457_vm12, %v1409_v45  ;;  %3174 = vmatmul.bf16.gmra.mxu1 %v2734_v28  ;;  %v2698_v45 = vpack.c.bf16 %v2523_v34, %v2518_v54 }
 0x27b   : > { %1934 = vrot.lane.b32.xlu1 %v5923_v49, %s4494_s26  ;;  %1675 = vrot.lane.b32.xlu0 %v5986_v37, %s4494_s26  ;;  %v4353_v49 = vld [vmem:[%s7511_s5 + $0x100] sm:$0xff]  ;;  %v1654_v37 = vpop.permute.xlu2 %1653  ;;  %v2521_v27 = vld [vmem:[#allocation2 + $0xd8] sm:$0xff] }
 0x27c   : > { %1763 = vst.msk [vmem:[#allocation2 + $0xf8] sm:$0xff] %vm1457_vm12, %v1654_v37  ;;  %3430 = vmatpush.bf16.msrb.mxu0 %v4345_v56 }
 0x27d   : > { %3529 = vmatpush.bf16.msrb.mxu1 %v4353_v49 }
 0x27f   : > { %1677 = vrot.lane.b32.xlu2 %v5997_v19, %s4494_s26  ;;  %v6441_v19 = vpop.f32.mrf.mxu1 }
 0x281   : > { %v2684_v59 = vld [vmem:[#allocation2 + $0x5f0] sm:$0xff] }
 0x282   : > { %v2779_v22 = vpack.c.bf16 %v2689_v33, %v2684_v59 }
 0x283   : > { %2242 = vrot.lane.b32.xlu1 %v6192_v55, %s4494_s26  ;;  %2240 = vrot.lane.b32.xlu0 %v6064_v21, %s4494_s26  ;;  %v1917_v24 = vpop.permute.xlu2 %1916  ;;  %v6445_v21 = vpop.f32.mrf.mxu3  ;;  %v2525_v33 = vld [vmem:[#allocation2 + $0xf8] sm:$0xff] }
 0x284   : > { %3219 = vmatmul.bf16.gmra.mxu3 %v2779_v22  ;;  %2024 = vst.msk [vmem:[#allocation2 + $0x128] sm:$0xff] %vm1457_vm12, %v1917_v24 }
 0x285   : > { %v1379_v60 = vpop.permute.xlu1 %1378  ;;  %v1377_v23 = vpop.permute.xlu0 %1376 }
 0x286   : > { %1474 = vst.msk [vmem:[#allocation2 + $0x398] sm:$0xff] %vm1457_vm12, %v1379_v60 }
 0x287   : > { %1473 = vst.msk [vmem:[#allocation2 + $0x370] sm:$0xff] %vm1457_vm12, %v1377_v23  ;;  %1940 = vrot.lane.b32.xlu2 %v6206_v20, %s4494_s26  ;;  %v6457_v42 = vpop.f32.mrf.mxu1 }
 0x28b   : > { %1938 = vrot.lane.b32.xlu1 %v6077_v38, %s4494_s26  ;;  %1679 = vrot.lane.b32.xlu0 %v6082_v39, %s4494_s26  ;;  %v1658_v46 = vpop.permute.xlu2 %1657  ;;  %v7850_v39 = vld [vmem:[#allocation55_spill] sm:$0xff]  ;;  %v6459_v16 = vpop.f32.mrf.mxu3 }
 0x28c   : > { %1765 = vst.msk [vmem:[#allocation2 + $0x148] sm:$0xff] %vm1457_vm12, %v1658_v46  ;;  %v2531_v49 = vld [vmem:[#allocation2 + $0x128] sm:$0xff] }
 0x28d   : > { %v1911_v55 = vpop.permute.xlu1 %1910  ;;  %v2609_v52 = vld [vmem:[#allocation2 + $0x398] sm:$0xff]  ;;  %v1652_v61 = vpop.permute.xlu0 %1651 }
 0x28e   : > { %2021 = vst.msk [vmem:[#allocation2 + $0xb0] sm:$0xff] %vm1457_vm12, %v1911_v55  ;;  %v2604_v32 = vld [vmem:[#allocation2 + $0x370] sm:$0xff]  ;;  %v7854_v55 = vld [vmem:[#allocation63_spill] sm:$0xff] }
 0x28f   : > { %1762 = vst.msk [vmem:[#allocation2 + $0xd0] sm:$0xff] %vm1457_vm12, %v1652_v61  ;;  %v2739_v38 = vpack.c.bf16 %v2609_v52, %v2604_v32  ;;  %1681 = vrot.lane.b32.xlu2 %v6217_v40, %s4494_s26  ;;  %v7851_v40 = vld [vmem:[#allocation56_spill] sm:$0xff]  ;;  %v6470_v53 = vpop.f32.mrf.mxu1  ;;  %v2533_v52 = vld [vmem:[#allocation2 + $0x138] sm:$0xff] }
 0x291   : > { %3179 = vmatmul.bf16.gmra.mxu1 %v2739_v38 }
 0x293   : > { %2246 = vrot.lane.b32.xlu1 %v7850_v39, %s4494_s26  ;;  %2244 = vrot.lane.b32.xlu0 %v6211_v0, %s4494_s26  ;;  %v1921_v12 = vpop.permute.xlu2 %1920 }
 0x294   : > { %2026 = vst.msk [vmem:[#allocation2 + $0x178] sm:$0xff] %vm1457_vm12, %v1921_v12 }
 0x295   : > { %v2219_v20 = vpop.permute.xlu1 %2218  ;;  %v2516_v2 = vld [vmem:[#allocation2 + $0xb0] sm:$0xff]  ;;  %v2217_v8 = vpop.permute.xlu0 %2216 }
 0x296   : > { %2326 = vst.msk [vmem:[#allocation2 + $0xe0] sm:$0xff] %vm1457_vm12, %v2219_v20  ;;  %v2520_v63 = vld [vmem:[#allocation2 + $0xd0] sm:$0xff]  ;;  %v2696_v4 = vpack.c.bf16 %v2521_v27, %v2516_v2 }
 0x297   : > { %2325 = vst.msk [vmem:[#allocation2 + $0xb8] sm:$0xff] %vm1457_vm12, %v2217_v8  ;;  %v2695_v0 = vpack.c.bf16 %v2520_v63, %v2515_v48  ;;  %1944 = vrot.lane.b32.xlu2 %v7851_v40, %s4494_s26  ;;  %v2528_v20 = vld [vmem:[#allocation2 + $0x110] sm:$0xff]  ;;  %v2535_v40 = vld [vmem:[#allocation2 + $0x148] sm:$0xff] }
 0x298   : > { %3332 = vmatmul.bf16.vlgmr.msrb.gmra.mxu3 %v2696_v4  ;;  %v2703_v27 = vpack.c.bf16 %v2533_v52, %v2528_v20  ;;  %v7861_v20 = vld [vmem:[#allocation42_spill] sm:$0xff] }
 0x299   : > { %3233 = vmatmul.bf16.vlgmr.msrb.gmra.mxu2 %v2695_v0 }
 0x29b   : > { %1942 = vrot.lane.b32.xlu1 %v6223_v31, %s4494_s26  ;;  %1683 = vrot.lane.b32.xlu0 %v6230_v26, %s4494_s26  ;;  %v1662_v17 = vpop.permute.xlu2 %1661  ;;  %v6474_v26 = vpop.f32.mrf.mxu3  ;;  %v2541_v63 = vld [vmem:[#allocation2 + $0x178] sm:$0xff] }
 0x29c   : > { %1767 = vst.msk [vmem:[#allocation2 + $0x198] sm:$0xff] %vm1457_vm12, %v1662_v17 }
 0x29d   : > { %v1915_v57 = vpop.permute.xlu1 %1914  ;;  %v2522_v50 = vld [vmem:[#allocation2 + $0xe0] sm:$0xff]  ;;  %v1656_v62 = vpop.permute.xlu0 %1655 }
 0x29e   : > { %2023 = vst.msk [vmem:[#allocation2 + $0x100] sm:$0xff] %vm1457_vm12, %v1915_v57  ;;  %v2517_v25 = vld [vmem:[#allocation2 + $0xb8] sm:$0xff] }
 0x29f   : > { %1764 = vst.msk [vmem:[#allocation2 + $0x120] sm:$0xff] %vm1457_vm12, %v1656_v62  ;;  %v2697_v31 = vpack.c.bf16 %v2522_v50, %v2517_v25  ;;  %1685 = vrot.lane.b32.xlu2 %v7853_v11, %s4494_s26  ;;  %v7857_v50 = vld [vmem:[#allocation66_spill] sm:$0xff]  ;;  %v2543_v62 = vld [vmem:[#allocation2 + $0x188] sm:$0xff] }
 0x2a0   : > { %v2538_v11 = vld [vmem:[#allocation2 + $0x160] sm:$0xff] }
 0x2a1   : > { %3431 = vmatmul.bf16.vlgmr.msrb.gmra.mxu0 %v2697_v31  ;;  %4279 = vmatmul.msk.bf16.vlgmr.msrb.gmra.mxu1 %vm1232_vm3, %v2698_v45 }
 0x2a3   : > { %2250 = vrot.lane.b32.xlu1 %v5520_v43, %s4494_s26  ;;  %2248 = vrot.lane.b32.xlu0 %v7852_v10, %s4494_s26  ;;  %v1925_v59 = vpop.permute.xlu2 %1924  ;;  %v6486_v43 = vpop.f32.mrf.mxu1 }
 0x2a4   : > { %2028 = vst.msk [vmem:[#allocation2 + $0x1c8] sm:$0xff] %vm1457_vm12, %v1925_v59  ;;  %v6488_v24 = vpop.f32.mrf.mxu3  ;;  %v7860_v59 = vld [vmem:[#allocation67_spill] sm:$0xff] }
 0x2a5   : > { %v2223_v28 = vpop.permute.xlu1 %2222  ;;  %v2526_v56 = vld [vmem:[#allocation2 + $0x100] sm:$0xff]  ;;  %v2221_v37 = vpop.permute.xlu0 %2220 }
 0x2a6   : > { %2328 = vst.msk [vmem:[#allocation2 + $0x130] sm:$0xff] %vm1457_vm12, %v2223_v28  ;;  %v2530_v60 = vld [vmem:[#allocation2 + $0x120] sm:$0xff]  ;;  %v2701_v22 = vpack.c.bf16 %v2531_v49, %v2526_v56  ;;  %v2708_v56 = vpack.c.bf16 %v2543_v62, %v2538_v11  ;;  %v7858_v49 = vld [vmem:[#allocation41_spill] sm:$0xff]  ;;  %v7865_v62 = vld [vmem:[#allocation51_spill] sm:$0xff] }
 0x2a7   : > { %2327 = vst.msk [vmem:[#allocation2 + $0x108] sm:$0xff] %vm1457_vm12, %v2221_v37  ;;  %v2700_v23 = vpack.c.bf16 %v2530_v60, %v2525_v33  ;;  %1948 = vrot.lane.b32.xlu2 %v7854_v55, %s4494_s26  ;;  %v7859_v37 = vld [vmem:[#allocation40_spill] sm:$0xff] }
 0x2a8   : > { %3337 = vmatmul.bf16.gmra.mxu3 %v2701_v22 }
 0x2a9   : > { %3238 = vmatmul.bf16.gmra.mxu2 %v2700_v23 }
 0x2ab   : > { %1946 = vrot.lane.b32.xlu1 %v5488_v41, %s4494_s26  ;;  %1687 = vrot.lane.b32.xlu0 %v5502_v7, %s4494_s26  ;;  %v1666_v38 = vpop.permute.xlu2 %1665  ;;  %v6500_v41 = vpop.f32.mrf.mxu1  ;;  %v7855_v7 = vld [vmem:[#allocation64_spill] sm:$0xff]  ;;  %v2551_v23 = vld [vmem:[#allocation2 + $0x1c8] sm:$0xff] }
 0x2ac   : > { %1769 = vst.msk [vmem:[#allocation2 + $0x1e8] sm:$0xff] %vm1457_vm12, %v1666_v38  ;;  %v6508_v8 = vpop.f32.mrf.mxu3 }
 0x2ad   : > { %v1919_v61 = vpop.permute.xlu1 %1918  ;;  %v2532_v46 = vld [vmem:[#allocation2 + $0x130] sm:$0xff]  ;;  %v1660_v32 = vpop.permute.xlu0 %1659 }
 0x2ae   : > { %2025 = vst.msk [vmem:[#allocation2 + $0x150] sm:$0xff] %vm1457_vm12, %v1919_v61  ;;  %v2527_v39 = vld [vmem:[#allocation2 + $0x108] sm:$0xff]  ;;  %v2545_v61 = vld [vmem:[#allocation2 + $0x198] sm:$0xff] }
 0x2af   : > { %1766 = vst.msk [vmem:[#allocation2 + $0x170] sm:$0xff] %vm1457_vm12, %v1660_v32  ;;  %v2702_v2 = vpack.c.bf16 %v2532_v46, %v2527_v39  ;;  %1689 = vrot.lane.b32.xlu2 %v7855_v7, %s4494_s26  ;;  %v2553_v7 = vld [vmem:[#allocation2 + $0x1d8] sm:$0xff] }
 0x2b1   : > { %3436 = vmatmul.bf16.gmra.mxu0 %v2702_v2  ;;  %4280 = vmatmul.msk.bf16.gmra.mxu1 %vm1232_vm3, %v2703_v27  ;;  %v7862_v2 = vld [vmem:[#allocation43_spill] sm:$0xff]  ;;  %v7863_v27 = vld [vmem:[#allocation44_spill] sm:$0xff] }
 0x2b3   : > { %2254 = vrot.lane.b32.xlu1 %v5555_v3, %s4494_s26  ;;  %2252 = vrot.lane.b32.xlu0 %v5560_v44, %s4494_s26  ;;  %v1929_v0 = vpop.permute.xlu2 %1928  ;;  %v7856_v44 = vld [vmem:[#allocation65_spill] sm:$0xff]  ;;  %v6519_v17 = vpop.f32.mrf.mxu1 }
 0x2b4   : > { %2030 = vst.msk [vmem:[#allocation2 + $0x218] sm:$0xff] %vm1457_vm12, %v1929_v0  ;;  %v6522_v28 = vpop.f32.mrf.mxu3 }
 0x2b5   : > { %v2227_v12 = vpop.permute.xlu1 %2226  ;;  %v2536_v48 = vld [vmem:[#allocation2 + $0x150] sm:$0xff]  ;;  %v2225_v4 = vpop.permute.xlu0 %2224 }
 0x2b6   : > { %2330 = vst.msk [vmem:[#allocation2 + $0x180] sm:$0xff] %vm1457_vm12, %v2227_v12  ;;  %v2540_v34 = vld [vmem:[#allocation2 + $0x170] sm:$0xff]  ;;  %v2706_v57 = vpack.c.bf16 %v2541_v63, %v2536_v48 }
 0x2b7   : > { %2329 = vst.msk [vmem:[#allocation2 + $0x158] sm:$0xff] %vm1457_vm12, %v2225_v4  ;;  %v2705_v3 = vpack.c.bf16 %v2540_v34, %v2535_v40  ;;  %1952 = vrot.lane.b32.xlu2 %v7857_v50, %s4494_s26  ;;  %v2548_v40 = vld [vmem:[#allocation2 + $0x1b0] sm:$0xff]  ;;  %v7864_v50 = vld [vmem:[#allocation45_spill] sm:$0xff] }
 0x2b8   : > { %3342 = vmatmul.bf16.gmra.mxu3 %v2706_v57  ;;  %v2713_v57 = vpack.c.bf16 %v2553_v7, %v2548_v40 }
 0x2b9   : > { %3243 = vmatmul.bf16.gmra.mxu2 %v2705_v3 }
 0x2bb   : > { %1950 = vrot.lane.b32.xlu1 %v5563_v30, %s4494_s26  ;;  %1691 = vrot.lane.b32.xlu0 %v7856_v44, %s4494_s26  ;;  %v1670_v45 = vpop.permute.xlu2 %1669  ;;  %v6533_v33 = vpop.f32.mrf.mxu1 }
 0x2bc   : > { %1771 = vst.msk [vmem:[#allocation2 + $0x238] sm:$0xff] %vm1457_vm12, %v1670_v45  ;;  %v6538_v39 = vpop.f32.mrf.mxu3  ;;  %v2561_v45 = vld [vmem:[#allocation2 + $0x218] sm:$0xff] }
 0x2bd   : > { %v1923_v25 = vpop.permute.xlu1 %1922  ;;  %v2542_v54 = vld [vmem:[#allocation2 + $0x180] sm:$0xff]  ;;  %v1664_v31 = vpop.permute.xlu0 %1663 }
 0x2be   : > { %2027 = vst.msk [vmem:[#allocation2 + $0x1a0] sm:$0xff] %vm1457_vm12, %v1923_v25  ;;  %v2537_v10 = vld [vmem:[#allocation2 + $0x158] sm:$0xff]  ;;  %v7866_v25 = vld [vmem:[#allocation46_spill] sm:$0xff] }
 0x2bf   : > { %1768 = vst.msk [vmem:[#allocation2 + $0x1c0] sm:$0xff] %vm1457_vm12, %v1664_v31  ;;  %v2707_v30 = vpack.c.bf16 %v2542_v54, %v2537_v10  ;;  %1693 = vrot.lane.b32.xlu2 %v7860_v59, %s4494_s26 }
 0x2c1   : > { %3441 = vmatmul.bf16.gmra.mxu0 %v2707_v30  ;;  %4281 = vmatmul.msk.bf16.gmra.mxu1 %vm1232_vm3, %v2708_v56  ;;  %v2555_v30 = vld [vmem:[#allocation2 + $0x1e8] sm:$0xff] }
 0x2c3   : > { %2258 = vrot.lane.b32.xlu1 %v7858_v49, %s4494_s26  ;;  %2256 = vrot.lane.b32.xlu0 %v7859_v37, %s4494_s26  ;;  %v1933_v52 = vpop.permute.xlu2 %1932  ;;  %v6548_v3 = vpop.f32.mrf.mxu1 }
 0x2c4   : > { %2032 = vst.msk [vmem:[#allocation2 + $0x268] sm:$0xff] %vm1457_vm12, %v1933_v52  ;;  %v6552_v44 = vpop.f32.mrf.mxu3 }
 0x2c5   : > { %v2231_v60 = vpop.permute.xlu1 %2230  ;;  %v2546_v22 = vld [vmem:[#allocation2 + $0x1a0] sm:$0xff]  ;;  %v2229_v55 = vpop.permute.xlu0 %2228 }
 0x2c6   : > { %2332 = vst.msk [vmem:[#allocation2 + $0x1d0] sm:$0xff] %vm1457_vm12, %v2231_v60  ;;  %v2550_v46 = vld [vmem:[#allocation2 + $0x1c0] sm:$0xff]  ;;  %v2711_v32 = vpack.c.bf16 %v2551_v23, %v2546_v22  ;;  %v7867_v60 = vld [vmem:[#allocation52_spill] sm:$0xff]  ;;  %v7868_v22 = vld [vmem:[#allocation53_spill] sm:$0xff] }
 0x2c7   : > { %2331 = vst.msk [vmem:[#allocation2 + $0x1a8] sm:$0xff] %vm1457_vm12, %v2229_v55  ;;  %v2710_v38 = vpack.c.bf16 %v2550_v46, %v2545_v61  ;;  %1956 = vrot.lane.b32.xlu2 %v7863_v27, %s4494_s26  ;;  %v7869_v23 = vld [vmem:[#allocation47_spill] sm:$0xff] }
 0x2c8   : > { %3347 = vmatmul.bf16.gmra.mxu3 %v2711_v32  ;;  %v2563_v55 = vld [vmem:[#allocation2 + $0x228] sm:$0xff] }
 0x2c9   : > { %3248 = vmatmul.bf16.gmra.mxu2 %v2710_v38 }
 0x2cb   : > { %1954 = vrot.lane.b32.xlu1 %v7861_v20, %s4494_s26  ;;  %1695 = vrot.lane.b32.xlu0 %v7862_v2, %s4494_s26  ;;  %v1674_v4 = vpop.permute.xlu2 %1673  ;;  %v6562_v59 = vpop.f32.mrf.mxu1  ;;  %v2558_v2 = vld [vmem:[#allocation2 + $0x200] sm:$0xff] }
 0x2cc   : > { %1773 = vst.msk [vmem:[#allocation2 + $0x288] sm:$0xff] %vm1457_vm12, %v1674_v4  ;;  %v6571_v52 = vpop.f32.mrf.mxu3  ;;  %v2718_v7 = vpack.c.bf16 %v2563_v55, %v2558_v2  ;;  %v7871_v4 = vld [vmem:[#allocation48_spill] sm:$0xff]  ;;  %v7876_v2 = vld [vmem:[#allocation71_spill] sm:$0xff] }
 0x2cd   : > { %v1927_v12 = vpop.permute.xlu1 %1926  ;;  %v2552_v48 = vld [vmem:[#allocation2 + $0x1d0] sm:$0xff]  ;;  %v1668_v63 = vpop.permute.xlu0 %1667 }
 0x2ce   : > { %2029 = vst.msk [vmem:[#allocation2 + $0x1f0] sm:$0xff] %vm1457_vm12, %v1927_v12  ;;  %v2547_v0 = vld [vmem:[#allocation2 + $0x1a8] sm:$0xff]  ;;  %v447_v12 = vld [vmem:[%s7507_s1 + $0x110] sm:$0xff] }
 0x2cf   : > { %1770 = vst.msk [vmem:[#allocation2 + $0x210] sm:$0xff] %vm1457_vm12, %v1668_v63  ;;  %v2712_v34 = vpack.c.bf16 %v2552_v48, %v2547_v0  ;;  %1697 = vrot.lane.b32.xlu2 %v7866_v25, %s4494_s26  ;;  %v7870_v63 = vld [vmem:[#allocation70_spill] sm:$0xff]  ;;  %v2565_v25 = vld [vmem:[#allocation2 + $0x238] sm:$0xff] }
 0x2d1   : > { %3446 = vmatmul.bf16.gmra.mxu0 %v2712_v34  ;;  %4282 = vmatmul.msk.bf16.gmra.mxu1 %vm1232_vm3, %v2713_v57  ;;  %v2571_v57 = vld [vmem:[#allocation2 + $0x268] sm:$0xff] }
 0x2d3   : > { %2262 = vrot.lane.b32.xlu1 %v7864_v50, %s4494_s26  ;;  %2260 = vrot.lane.b32.xlu0 %v7865_v62, %s4494_s26  ;;  %v1937_v11 = vpop.permute.xlu2 %1936  ;;  %v6580_v48 = vpop.f32.mrf.mxu1 }
 0x2d4   : > { %2034 = vst.msk [vmem:[#allocation2 + $0x2b8] sm:$0xff] %vm1457_vm12, %v1937_v11  ;;  %v6586_v0 = vpop.f32.mrf.mxu3  ;;  %v7872_v11 = vld [vmem:[#allocation50_spill] sm:$0xff] }
 0x2d5   : > { %v2235_v54 = vpop.permute.xlu1 %2234  ;;  %v2556_v31 = vld [vmem:[#allocation2 + $0x1f0] sm:$0xff]  ;;  %v2233_v10 = vpop.permute.xlu0 %2232 }
 0x2d6   : > { %2334 = vst.msk [vmem:[#allocation2 + $0x220] sm:$0xff] %vm1457_vm12, %v2235_v54  ;;  %v2560_v56 = vld [vmem:[#allocation2 + $0x210] sm:$0xff]  ;;  %v2716_v49 = vpack.c.bf16 %v2561_v45, %v2556_v31 }
 0x2d7   : > { %2333 = vst.msk [vmem:[#allocation2 + $0x1f8] sm:$0xff] %vm1457_vm12, %v2233_v10  ;;  %v2715_v37 = vpack.c.bf16 %v2560_v56, %v2555_v30  ;;  %1960 = vrot.lane.b32.xlu2 %v7869_v23, %s4494_s26  ;;  %v7873_v30 = vld [vmem:[#allocation49_spill] sm:$0xff]  ;;  %v7874_v56 = vld [vmem:[#allocation54_spill] sm:$0xff] }
 0x2d8   : > { %3352 = vmatmul.bf16.gmra.mxu3 %v2716_v49  ;;  %v2568_v49 = vld [vmem:[#allocation2 + $0x250] sm:$0xff] }
 0x2d9   : > { %3253 = vmatmul.bf16.gmra.mxu2 %v2715_v37  ;;  %v2573_v37 = vld [vmem:[#allocation2 + $0x278] sm:$0xff] }
 0x2db   : > { %1958 = vrot.lane.b32.xlu1 %v7867_v60, %s4494_s26  ;;  %1699 = vrot.lane.b32.xlu0 %v7868_v22, %s4494_s26  ;;  %v1678_v38 = vpop.permute.xlu2 %1677  ;;  %v6591_v10 = vpop.f32.mrf.mxu1 }
 0x2dc   : > { %1775 = vst.msk [vmem:[#allocation2 + $0x2d8] sm:$0xff] %vm1457_vm12, %v1678_v38  ;;  %v6601_v38 = vpop.f32.mrf.mxu3 }
 0x2dd   : > { %v1931_v61 = vpop.permute.xlu1 %1930  ;;  %v2562_v46 = vld [vmem:[#allocation2 + $0x220] sm:$0xff]  ;;  %v1672_v32 = vpop.permute.xlu0 %1671 }
 0x2de   : > { %2031 = vst.msk [vmem:[#allocation2 + $0x240] sm:$0xff] %vm1457_vm12, %v1931_v61  ;;  %v2557_v20 = vld [vmem:[#allocation2 + $0x1f8] sm:$0xff] }
 0x2df   : > { %1772 = vst.msk [vmem:[#allocation2 + $0x260] sm:$0xff] %vm1457_vm12, %v1672_v32  ;;  %v2717_v27 = vpack.c.bf16 %v2562_v46, %v2557_v20  ;;  %1041 = vperm.xlu2 %4415, %v447_v12   ;;  %v2723_v32 = vpack.c.bf16 %v2573_v37, %v2568_v49  ;;  %v7875_v20 = vld [vmem:[#allocation74_spill] sm:$0xff] }
 0x2e1   : > { %3451 = vmatmul.bf16.gmra.mxu0 %v2717_v27  ;;  %4283 = vmatmul.msk.bf16.gmra.mxu1 %vm1232_vm3, %v2718_v7  ;;  %v7877_v7 = vld [vmem:[#allocation82_spill] sm:$0xff] }
 0x2e3   : > { %2266 = vrot.lane.b32.xlu1 %v7870_v63, %s4494_s26  ;;  %2264 = vrot.lane.b32.xlu0 %v7871_v4, %s4494_s26  ;;  %v1941_v62 = vpop.permute.xlu2 %1940  ;;  %v6609_v27 = vpop.f32.mrf.mxu1  ;;  %v2581_v4 = vld [vmem:[#allocation2 + $0x2b8] sm:$0xff] }
 0x2e4   : > { %2036 = vst.msk [vmem:[#allocation2 + $0x308] sm:$0xff] %vm1457_vm12, %v1941_v62 }
 0x2e5   : > { %v2239_v40 = vpop.permute.xlu1 %2238  ;;  %v2566_v34 = vld [vmem:[#allocation2 + $0x240] sm:$0xff]  ;;  %v2237_v50 = vpop.permute.xlu0 %2236 }
 0x2e6   : > { %2336 = vst.msk [vmem:[#allocation2 + $0x270] sm:$0xff] %vm1457_vm12, %v2239_v40  ;;  %v2570_v54 = vld [vmem:[#allocation2 + $0x260] sm:$0xff]  ;;  %v2721_v31 = vpack.c.bf16 %v2571_v57, %v2566_v34  ;;  %v2575_v57 = vld [vmem:[#allocation2 + $0x288] sm:$0xff] }
 0x2e7   : > { %2335 = vst.msk [vmem:[#allocation2 + $0x248] sm:$0xff] %vm1457_vm12, %v2237_v50  ;;  %v2720_v45 = vpack.c.bf16 %v2570_v54, %v2565_v25  ;;  %1962 = vrot.lane.b32.xlu2 %v7874_v56, %s4494_s26  ;;  %v2583_v56 = vld [vmem:[#allocation2 + $0x2c8] sm:$0xff] }
 0x2e8   : > { %3357 = vmatmul.bf16.gmra.mxu3 %v2721_v31  ;;  %v448_v31 = vld [vmem:[%s7507_s1 + $0x118] sm:$0xff] }
 0x2e9   : > { %3258 = vmatmul.bf16.gmra.mxu2 %v2720_v45  ;;  %v7879_v45 = vld [vmem:[#allocation72_spill] sm:$0xff] }
 0x2eb   : > { %1703 = vrot.lane.b32.xlu1 %v7872_v11, %s4494_s26  ;;  %1701 = vrot.lane.b32.xlu0 %v7873_v30, %s4494_s26  ;;  %v1682_v55 = vpop.permute.xlu2 %1681  ;;  %v7880_v11 = vld [vmem:[#allocation75_spill] sm:$0xff] }
 0x2ec   : > { %1777 = vst.msk [vmem:[#allocation2 + $0x328] sm:$0xff] %vm1457_vm12, %v1682_v55  ;;  %v6615_v54 = vpop.f32.mrf.mxu3  ;;  %v2578_v55 = vld [vmem:[#allocation2 + $0x2a0] sm:$0xff] }
 0x2ed   : > { %v1935_v60 = vpop.permute.xlu1 %1934  ;;  %v2572_v22 = vld [vmem:[#allocation2 + $0x270] sm:$0xff]  ;;  %v1676_v23 = vpop.permute.xlu0 %1675  ;;  %7878 = vst [vmem:[#allocation27_spill] sm:$0xff] %v6615_v54  ;;  %v7917_v54 = vld [vmem:[#allocation13_spill] sm:$0xff] }
 0x2ee   : > { %2033 = vst.msk [vmem:[#allocation2 + $0x290] sm:$0xff] %vm1457_vm12, %v1935_v60  ;;  %v2567_v61 = vld [vmem:[#allocation2 + $0x248] sm:$0xff] }
 0x2ef   : > { %1774 = vst.msk [vmem:[#allocation2 + $0x2b0] sm:$0xff] %vm1457_vm12, %v1676_v23  ;;  %v2722_v46 = vpack.c.bf16 %v2572_v22, %v2567_v61  ;;  %2270 = vrot.lane.b32.xlu2 %v7877_v7, %s4494_s26  ;;  %v7884_v7 = vld [vmem:[#allocation83_spill] sm:$0xff] }
 0x2f1   : > { %3456 = vmatmul.bf16.gmra.mxu0 %v2722_v46  ;;  %4284 = vmatmul.msk.bf16.gmra.mxu1 %vm1232_vm3, %v2723_v32  ;;  %v2728_v46 = vpack.c.bf16 %v2583_v56, %v2578_v55  ;;  %v7886_v56 = vld [vmem:[#allocation86_spill] sm:$0xff] }
 0x2f3   : > { %2268 = vrot.lane.b32.xlu1 %v7875_v20, %s4494_s26  ;;  %1964 = vrot.lane.b32.xlu0 %v7876_v2, %s4494_s26  ;;  %v1945_v34 = vpop.permute.xlu2 %1944  ;;  %v7882_v20 = vld [vmem:[#allocation84_spill] sm:$0xff] }
 0x2f4   : > { %2038 = vst.msk [vmem:[#allocation2 + $0x358] sm:$0xff] %vm1457_vm12, %v1945_v34  ;;  %v6631_v32 = vpop.f32.mrf.mxu3  ;;  %v7883_v2 = vld [vmem:[#allocation76_spill] sm:$0xff] }
 0x2f5   : > { %v2243_v12 = vpop.permute.xlu1 %2242  ;;  %v2576_v63 = vld [vmem:[#allocation2 + $0x290] sm:$0xff]  ;;  %v2241_v40 = vpop.permute.xlu0 %2240  ;;  %7881 = vst [vmem:[#allocation29_spill] sm:$0xff] %v6631_v32 }
 0x2f6   : > { %2338 = vst.msk [vmem:[#allocation2 + $0x2c0] sm:$0xff] %vm1457_vm12, %v2243_v12  ;;  %v2580_v50 = vld [vmem:[#allocation2 + $0x2b0] sm:$0xff]  ;;  %v2726_v62 = vpack.c.bf16 %v2581_v4, %v2576_v63 }
 0x2f7   : > { %2337 = vst.msk [vmem:[#allocation2 + $0x298] sm:$0xff] %vm1457_vm12, %v2241_v40  ;;  %v2725_v25 = vpack.c.bf16 %v2580_v50, %v2575_v57  ;;  %1707 = vrot.lane.b32.xlu2 %v7880_v11, %s4494_s26  ;;  %v6625_v30 = vpop.f32.mrf.mxu1  ;;  %v2591_v40 = vld [vmem:[#allocation2 + $0x308] sm:$0xff]  ;;  %v2585_v50 = vld [vmem:[#allocation2 + $0x2d8] sm:$0xff] }
 0x2f8   : > { %3362 = vmatmul.bf16.gmra.mxu3 %v2726_v62 }
 0x2f9   : > { %3263 = vmatmul.bf16.gmra.mxu2 %v2725_v25 }
 0x2fb   : > { %1705 = vrot.lane.b32.xlu1 %v7879_v45, %s4494_s26  ;;  %1046 = vperm.xlu0 %4413, %v448_v31   ;;  %v1686_v22 = vpop.permute.xlu2 %1685  ;;  %v6644_v45 = vpop.f32.mrf.mxu2 }
 0x2fc   : > { %1779 = vst.msk [vmem:[#allocation2 + $0x378] sm:$0xff] %vm1457_vm12, %v1686_v22 }
 0x2fd   : > { %v1939_v49 = vpop.permute.xlu1 %1938  ;;  %v2582_v37 = vld [vmem:[#allocation2 + $0x2c0] sm:$0xff]  ;;  %v1680_v60 = vpop.permute.xlu0 %1679 }
 0x2fe   : > { %2035 = vst.msk [vmem:[#allocation2 + $0x2e0] sm:$0xff] %vm1457_vm12, %v1939_v49  ;;  %v2577_v23 = vld [vmem:[#allocation2 + $0x298] sm:$0xff]  ;;  %v7887_v49 = vld [vmem:[#allocation91_spill] sm:$0xff] }
 0x2ff   : > { %1776 = vst.msk [vmem:[#allocation2 + $0x300] sm:$0xff] %vm1457_vm12, %v1680_v60  ;;  %v2727_v61 = vpack.c.bf16 %v2582_v37, %v2577_v23  ;;  %2272 = vrot.lane.b32.xlu2 %v7884_v7, %s4494_s26  ;;  %v6639_v12 = vpop.f32.mrf.mxu1  ;;  %v7888_v37 = vld [vmem:[#allocation87_spill] sm:$0xff]  ;;  %v2588_v60 = vld [vmem:[#allocation2 + $0x2f0] sm:$0xff] }
 0x301   : > { %3461 = vmatmul.bf16.gmra.mxu0 %v2727_v61  ;;  %4285 = vmatmul.msk.bf16.gmra.mxu1 %vm1232_vm3, %v2728_v46 }
 0x303   : > { %1968 = vrot.lane.b32.xlu1 %v7882_v20, %s4494_s26  ;;  %1966 = vrot.lane.b32.xlu0 %v7883_v2, %s4494_s26  ;;  %v1949_v57 = vpop.permute.xlu2 %1948  ;;  %v2593_v20 = vld [vmem:[#allocation2 + $0x318] sm:$0xff] }
 0x304   : > { %2040 = vst.msk [vmem:[#allocation2 + $0x3a8] sm:$0xff] %vm1457_vm12, %v1949_v57 }
 0x305   : > { %v2247_v63 = vpop.permute.xlu1 %2246  ;;  %v2586_v4 = vld [vmem:[#allocation2 + $0x2e0] sm:$0xff]  ;;  %v2245_v34 = vpop.permute.xlu0 %2244 }
 0x306   : > { %2340 = vst.msk [vmem:[#allocation2 + $0x310] sm:$0xff] %vm1457_vm12, %v2247_v63  ;;  %v2590_v62 = vld [vmem:[#allocation2 + $0x300] sm:$0xff]  ;;  %v2731_v25 = vpack.c.bf16 %v2591_v40, %v2586_v4  ;;  %v2733_v63 = vpack.c.bf16 %v2593_v20, %v2588_v60  ;;  %v6660_v4 = vpop.f32.mrf.mxu2 }
 0x307   : > { %2339 = vst.msk [vmem:[#allocation2 + $0x2e8] sm:$0xff] %vm1457_vm12, %v2245_v34  ;;  %v2730_v31 = vpack.c.bf16 %v2590_v62, %v2585_v50  ;;  %v6646_v11 = vpop.f32.mrf.mxu3  ;;  %1711 = vrot.lane.b32.xlu2 %v7888_v37, %s4494_s26  ;;  %v7890_v34 = vld [vmem:[#allocation88_spill] sm:$0xff]  ;;  %v2601_v62 = vld [vmem:[#allocation2 + $0x358] sm:$0xff] }
 0x308   : > { %3367 = vmatmul.bf16.gmra.mxu3 %v2731_v25  ;;  %7885 = vst [vmem:[#allocation30_spill] sm:$0xff] %v6646_v11  ;;  %v7915_v11 = vld [vmem:[#allocation8_spill] sm:$0xff] }
 0x309   : > { %3268 = vmatmul.bf16.gmra.mxu2 %v2730_v31 }
 0x30b   : > { %1709 = vrot.lane.b32.xlu1 %v7886_v56, %s4494_s26  ;;  %2274 = vrot.lane.b32.xlu0 %v7887_v49, %s4494_s26  ;;  %v1690_v2 = vpop.permute.xlu2 %1689  ;;  %v2595_v56 = vld [vmem:[#allocation2 + $0x328] sm:$0xff] }
 0x30c   : > { %1781 = vst.msk [vmem:[#allocation2 + $0x3c8] sm:$0xff] %vm1457_vm12, %v1690_v2 }
 0x30d   : > { %v1943_v22 = vpop.permute.xlu1 %1942  ;;  %v2592_v23 = vld [vmem:[#allocation2 + $0x310] sm:$0xff]  ;;  %v1684_v55 = vpop.permute.xlu0 %1683 }
 0x30e   : > { %2037 = vst.msk [vmem:[#allocation2 + $0x330] sm:$0xff] %vm1457_vm12, %v1943_v22  ;;  %v6655_v61 = vpop.f32.mrf.mxu1  ;;  %v2587_v46 = vld [vmem:[#allocation2 + $0x2e8] sm:$0xff] }
 0x30f   : > { %1778 = vst.msk [vmem:[#allocation2 + $0x350] sm:$0xff] %vm1457_vm12, %v1684_v55  ;;  %v2732_v7 = vpack.c.bf16 %v2592_v23, %v2587_v46  ;;  %v6662_v40 = vpop.f32.mrf.mxu3  ;;  %2276 = vrot.lane.b32.xlu2 %v6144_v13, %s4494_s26  ;;  %v2603_v23 = vld [vmem:[#allocation2 + $0x368] sm:$0xff] }
 0x310   : > { %7889 = vst [vmem:[#allocation34_spill] sm:$0xff] %v6662_v40 }
 0x311   : > { %3466 = vmatmul.bf16.gmra.mxu0 %v2732_v7  ;;  %4286 = vmatmul.msk.bf16.gmra.mxu1 %vm1232_vm3, %v2733_v63 }
 0x313   : > { %1972 = vrot.lane.b32.xlu1 %v6136_v6, %s4494_s26  ;;  %1970 = vrot.lane.b32.xlu0 %v7890_v34, %s4494_s26  ;;  %v1953_v6 = vpop.permute.xlu2 %1952  ;;  %v2598_v34 = vld [vmem:[#allocation2 + $0x340] sm:$0xff] }
 0x314   : > { %2042 = vst.msk [vmem:[#allocation2 + $0x3f8] sm:$0xff] %vm1457_vm12, %v1953_v6 }
 0x315   : > { %v2251_v57 = vpop.permute.xlu1 %2250  ;;  %v2596_v50 = vld [vmem:[#allocation2 + $0x330] sm:$0xff]  ;;  %v2249_v25 = vpop.permute.xlu0 %2248 }
 0x316   : > { %2342 = vst.msk [vmem:[#allocation2 + $0x360] sm:$0xff] %vm1457_vm12, %v2251_v57  ;;  %v6671_v31 = vpop.f32.mrf.mxu1  ;;  %v2600_v49 = vld [vmem:[#allocation2 + $0x350] sm:$0xff]  ;;  %v2736_v37 = vpack.c.bf16 %v2601_v62, %v2596_v50 }
 0x317   : > { %2341 = vst.msk [vmem:[#allocation2 + $0x338] sm:$0xff] %vm1457_vm12, %v2249_v25  ;;  %v2735_v60 = vpack.c.bf16 %v2600_v49, %v2595_v56  ;;  %1715 = vrot.lane.b32.xlu2 %v6160_v47, %s4494_s26  ;;  %v2738_v25 = vpack.c.bf16 %v2603_v23, %v2598_v34  ;;  %v2605_v23 = vld [vmem:[#allocation2 + $0x378] sm:$0xff] }
 0x318   : > { %3372 = vmatmul.bf16.gmra.mxu3 %v2736_v37 }
 0x319   : > { %3273 = vmatmul.bf16.gmra.mxu2 %v2735_v60 }
 0x31b   : > { %1713 = vrot.lane.b32.xlu1 %v6152_v35, %s4494_s26  ;;  %v3333_v13 = vpop.f32.mrf.mxu3  ;;  %v1694_v50 = vpop.permute.xlu2 %1693 }
 0x31c   : > { %v3234_v22 = vpop.f32.mrf.mxu2  ;;  %1783 = vst.msk [vmem:[#allocation2 + $0x418] sm:$0xff] %vm1457_vm12, %v1694_v50 }
 0x31d   : > { %v3235_v55 = vadd.f32 %v3234_v22, %v6328_v29  ;;  %v1947_v46 = vpop.permute.xlu1 %1946  ;;  %v2602_v20 = vld [vmem:[#allocation2 + $0x360] sm:$0xff]  ;;  %v1688_v7 = vpop.permute.xlu0 %1687 }
 0x31e   : > { %2039 = vst.msk [vmem:[#allocation2 + $0x380] sm:$0xff] %vm1457_vm12, %v1947_v46  ;;  %v3432_v2 = vpop.f32.mrf.mxu0  ;;  %v2597_v63 = vld [vmem:[#allocation2 + $0x338] sm:$0xff]  ;;  %v3531_v35 = vpop.f32.mrf.mxu1 }
 0x31f   : > { %v3334_v57 = vadd.f32 %v3333_v13, %v3235_v55  ;;  %1780 = vst.msk [vmem:[#allocation2 + $0x3a0] sm:$0xff] %vm1457_vm12, %v1688_v7  ;;  %v2737_v62 = vpack.c.bf16 %v2602_v20, %v2597_v63  ;;  %v2611_v13 = vld [vmem:[#allocation2 + $0x3a8] sm:$0xff] }
 0x321   : > { %v3433_v47 = vadd.f32 %v3432_v2, %v3334_v57  ;;  %3471 = vmatmul.bf16.gmra.mxu0 %v2737_v62  ;;  %4287 = vmatmul.msk.bf16.gmra.mxu1 %vm1232_vm3, %v2738_v25  ;;  %v2608_v62 = vld [vmem:[#allocation2 + $0x390] sm:$0xff]  ;;  %v2613_v25 = vld [vmem:[#allocation2 + $0x3b8] sm:$0xff] }
 0x323   : > { %v6684_v29 = vadd.f32 %v3531_v35, %v3433_v47  ;;  %v3335_v56 = vpop.f32.mrf.mxu3  ;;  %v1957_v63 = vpop.permute.xlu2 %1956 }
 0x324   : > { %v3236_v49 = vpop.f32.mrf.mxu2  ;;  %2044 = vst.msk [vmem:[#allocation2 + $0x448] sm:$0xff] %vm1457_vm12, %v1957_v63 }
 0x325   : > { %v3237_v37 = vadd.f32 %v3236_v49, %v6368_v1  ;;  %v2255_v6 = vpop.permute.xlu1 %2254  ;;  %v2606_v60 = vld [vmem:[#allocation2 + $0x380] sm:$0xff]  ;;  %v2253_v55 = vpop.permute.xlu0 %2252 }
 0x326   : > { %2344 = vst.msk [vmem:[#allocation2 + $0x3b0] sm:$0xff] %vm1457_vm12, %v2255_v6  ;;  %v3434_v22 = vpop.f32.mrf.mxu0  ;;  %v2610_v46 = vld [vmem:[#allocation2 + $0x3a0] sm:$0xff]  ;;  %v2741_v20 = vpack.c.bf16 %v2611_v13, %v2606_v60  ;;  %v3533_v7 = vpop.f32.mrf.mxu1 }
 0x327   : > { %v3336_v2 = vadd.f32 %v3335_v56, %v3237_v37  ;;  %2343 = vst.msk [vmem:[#allocation2 + $0x388] sm:$0xff] %vm1457_vm12, %v2253_v55  ;;  %v2740_v34 = vpack.c.bf16 %v2610_v46, %v2605_v23  ;;  %v2743_v46 = vpack.c.bf16 %v2613_v25, %v2608_v62  ;;  %v2621_v62 = vld [vmem:[#allocation2 + $0x3f8] sm:$0xff] }
 0x328   : > { %3377 = vmatmul.bf16.gmra.mxu3 %v2741_v20 }
 0x329   : > { %v3435_v1 = vadd.f32 %v3434_v22, %v3336_v2  ;;  %3278 = vmatmul.bf16.gmra.mxu2 %v2740_v34 }
 0x32b   : > { %v6690_v57 = vadd.f32 %v3533_v7, %v3435_v1  ;;  %v3338_v35 = vpop.f32.mrf.mxu3  ;;  %v1698_v55 = vpop.permute.xlu2 %1697  ;;  %v6702_v7 = vld [vmem:[%s7509_s3] ss:$0 sm:$0xff] }
 0x32c   : > { %v3239_v50 = vpop.f32.mrf.mxu2  ;;  %1785 = vst.msk [vmem:[#allocation2 + $0x468] sm:$0xff] %vm1457_vm12, %v1698_v55  ;;  %v791_v63 = vmul.f32 %v6702_v7, %v6644_v45 }
 0x32d   : > { %v3240_v47 = vadd.f32 %v3239_v50, %v6408_v36  ;;  %v1951_v49 = vpop.permute.xlu1 %1950  ;;  %v2612_v56 = vld [vmem:[#allocation2 + $0x3b0] sm:$0xff]  ;;  %v1692_v6 = vpop.permute.xlu0 %1691 }
 0x32e   : > { %2041 = vst.msk [vmem:[#allocation2 + $0x3d0] sm:$0xff] %vm1457_vm12, %v1951_v49  ;;  %v3437_v37 = vpop.f32.mrf.mxu0  ;;  %v2607_v60 = vld [vmem:[#allocation2 + $0x388] sm:$0xff]  ;;  %v3536_v22 = vpop.f32.mrf.mxu1 }
 0x32f   : > { %v3339_v13 = vadd.f32 %v3338_v35, %v3240_v47  ;;  %1782 = vst.msk [vmem:[#allocation2 + $0x3f0] sm:$0xff] %vm1457_vm12, %v1692_v6  ;;  %v2742_v23 = vpack.c.bf16 %v2612_v56, %v2607_v60  ;;  %v2615_v49 = vld [vmem:[#allocation2 + $0x3c8] sm:$0xff] }
 0x331   : > { %v3438_v20 = vadd.f32 %v3437_v37, %v3339_v13  ;;  %3476 = vmatmul.bf16.gmra.mxu0 %v2742_v23  ;;  %4288 = vmatmul.msk.bf16.gmra.mxu1 %vm1232_vm3, %v2743_v46 }
 0x333   : > { %v6697_v36 = vadd.f32 %v3536_v22, %v3438_v20  ;;  %v3340_v2 = vpop.f32.mrf.mxu3  ;;  %v1961_v13 = vpop.permute.xlu2 %1960 }
 0x334   : > { %v3241_v34 = vpop.f32.mrf.mxu2  ;;  %2046 = vst.msk [vmem:[#allocation2 + $0x498] sm:$0xff] %vm1457_vm12, %v1961_v13 }
 0x335   : > { %v3242_v1 = vadd.f32 %v3241_v34, %v6430_v58  ;;  %v2259_v35 = vpop.permute.xlu1 %2258  ;;  %v2616_v50 = vld [vmem:[#allocation2 + $0x3d0] sm:$0xff]  ;;  %v2257_v47 = vpop.permute.xlu0 %2256  ;;  %v6712_v58 = vld [vmem:[%s7510_s4] ss:$0 sm:$0xff] }
 0x336   : > { %2346 = vst.msk [vmem:[#allocation2 + $0x400] sm:$0xff] %vm1457_vm12, %v2259_v35  ;;  %v3439_v25 = vpop.f32.mrf.mxu0  ;;  %v2620_v56 = vld [vmem:[#allocation2 + $0x3f0] sm:$0xff]  ;;  %v2746_v37 = vpack.c.bf16 %v2621_v62, %v2616_v50  ;;  %v3538_v60 = vpop.f32.mrf.mxu1  ;;  %v831_v45 = vadd.f32 %v6712_v58, %v791_v63  ;;  %v2618_v34 = vld [vmem:[#allocation2 + $0x3e0] sm:$0xff] }
 0x337   : > { %v3341_v6 = vadd.f32 %v3340_v2, %v3242_v1  ;;  %2345 = vst.msk [vmem:[#allocation2 + $0x3d8] sm:$0xff] %vm1457_vm12, %v2257_v47  ;;  %v2745_v22 = vpack.c.bf16 %v2620_v56, %v2615_v49  ;;  %v2623_v1 = vld [vmem:[#allocation2 + $0x408] sm:$0xff] }
 0x338   : > { %3382 = vmatmul.bf16.gmra.mxu3 %v2746_v37  ;;  %v867_v20 = vmax.f32 %v831_v45, 0.0 }
 0x339   : > { %v3440_v55 = vadd.f32 %v3439_v25, %v3341_v6  ;;  %3283 = vmatmul.bf16.gmra.mxu2 %v2745_v22 }
 0x33b   : > { %v6716_v23 = vadd.f32 %v3538_v60, %v3440_v55  ;;  %v3343_v46 = vpop.f32.mrf.mxu3  ;;  %v6721_v37 = vpop.permute.xlu2 %1041  ;;  %v2748_v60 = vpack.c.bf16 %v2623_v1, %v2618_v34 }
 0x33c   : > { %v3244_v2 = vpop.f32.mrf.mxu2  ;;  %7891 = vst [vmem:[#allocation59_spill] sm:$0xff] %v6721_v37  ;;  %v6724_v13 = vmul.f32 %v6721_v37, %v867_v20  ;;  %v7892_v20 = vrot.slane %v6099_v14, 3  ;;  %v7912_v37 = vld [vmem:[#allocation11_spill] sm:$0xff] }
 0x33d   : > { %v3245_v35 = vadd.f32 %v3244_v2, %v6441_v19  ;;  %v1955_v50 = vpop.permute.xlu1 %1954  ;;  %v2622_v62 = vld [vmem:[#allocation2 + $0x400] sm:$0xff]  ;;  %v1696_v63 = vpop.permute.xlu0 %1695 }
 0x33e   : > { %2043 = vst.msk [vmem:[#allocation2 + $0x420] sm:$0xff] %vm1457_vm12, %v1955_v50  ;;  %v3442_v47 = vpop.f32.mrf.mxu0  ;;  %v2617_v49 = vld [vmem:[#allocation2 + $0x3d8] sm:$0xff]  ;;  %v3541_v25 = vpop.f32.mrf.mxu1  ;;  %v2431_v19 = vrot.slane %v6724_v13, 3  ;;  %v7634_v45 = vrot.slane %v6724_v13, 2  ;;  %v7636_v55 = vrot.slane %v6724_v13, 1  ;;  %v7635_v34 = vrot.slane %v6724_v13, 7 }
 0x33f   : > { %v3344_v56 = vadd.f32 %v3343_v46, %v3245_v35  ;;  %1784 = vst.msk [vmem:[#allocation2 + $0x440] sm:$0xff] %vm1457_vm12, %v1696_v63  ;;  %v2747_v6 = vpack.c.bf16 %v2622_v62, %v2617_v49  ;;  %v7893_v62 = vrot.slane %v6099_v14, 1 }
 0x340   : > { %1834 = vst.msk [vmem:[#allocation2 + $0x600] sm:$0xff] %vm1232_vm3, %v6724_v13  ;;  %v2432_v1 = vsel %vm2363_vm7, %v7892_v20, %v2431_v19  ;;  %v2207_v50 = vsel %vm2138_vm11, %v2204_v5, %v7634_v45 }
 0x341   : > { %v3443_v22 = vadd.f32 %v3442_v47, %v3344_v56  ;;  %3481 = vmatmul.bf16.gmra.mxu0 %v2747_v6  ;;  %4289 = vmatmul.msk.bf16.gmra.mxu1 %vm1232_vm3, %v2748_v60  ;;  %v1905_v47 = vsel %vm1836_vm9, %v7893_v62, %v7636_v55  ;;  %2507 = vst.msk [vmem:[#allocation2 + $0x598] sm:$0xff] %vm1232_vm3, %v2432_v1  ;;  %v2625_v60 = vld [vmem:[#allocation2 + $0x418] sm:$0xff] }
 0x342   : > { %2278 = vrot.lane.b32.xlu0 %v2207_v50, %s4494_s26  ;;  %1976 = vrot.lane.b32.xlu1 %v1905_v47, %s4494_s26  ;;  %2131 = vst.msk [vmem:[#allocation2 + $0x590] sm:$0xff] %vm1232_vm3, %v1905_v47 }
 0x343   : > { %v6732_v46 = vadd.f32 %v3541_v25, %v3443_v22  ;;  %v3345_v2 = vpop.f32.mrf.mxu3  ;;  %v2631_v25 = vld [vmem:[#allocation2 + $0x448] sm:$0xff]  ;;  %v1963_v62 = vpop.permute.xlu2 %1962 }
 0x344   : > { %v3246_v35 = vpop.f32.mrf.mxu2  ;;  %2047 = vst.msk [vmem:[#allocation2 + $0x4c0] sm:$0xff] %vm1457_vm12, %v1963_v62 }
 0x345   : > { %v3247_v63 = vadd.f32 %v3246_v35, %v6457_v42  ;;  %v2263_v49 = vpop.permute.xlu1 %2262  ;;  %v2626_v56 = vld [vmem:[#allocation2 + $0x420] sm:$0xff]  ;;  %v2261_v6 = vpop.permute.xlu0 %2260  ;;  %v7894_v35 = vrot.slane %v6099_v14, 7 }
 0x346   : > { %v3444_v5 = vpop.f32.mrf.mxu0  ;;  %v2630_v22 = vld [vmem:[#allocation2 + $0x440] sm:$0xff]  ;;  %v2751_v20 = vpack.c.bf16 %v2631_v25, %v2626_v56  ;;  %2348 = vst.msk [vmem:[#allocation2 + $0x450] sm:$0xff] %vm1457_vm12, %v2263_v49  ;;  %v3543_v1 = vpop.f32.mrf.mxu1  ;;  %v2628_v49 = vld [vmem:[#allocation2 + $0x430] sm:$0xff]  ;;  %v2633_v25 = vld [vmem:[#allocation2 + $0x458] sm:$0xff] }
 0x347   : > { %v3346_v45 = vadd.f32 %v3345_v2, %v3247_v63  ;;  %v2750_v42 = vpack.c.bf16 %v2630_v22, %v2625_v60  ;;  %v1567_v50 = vsel %vm1498_vm10, %v7894_v35, %v7635_v34  ;;  %2347 = vst.msk [vmem:[#allocation2 + $0x428] sm:$0xff] %vm1457_vm12, %v2261_v6  ;;  %v2753_v35 = vpack.c.bf16 %v2633_v25, %v2628_v49  ;;  %v2635_v25 = vld [vmem:[#allocation2 + $0x468] sm:$0xff] }
 0x348   : > { %3387 = vmatmul.bf16.gmra.mxu3 %v2751_v20 }
 0x349   : > { %v3445_v47 = vadd.f32 %v3444_v5, %v3346_v45  ;;  %3288 = vmatmul.bf16.gmra.mxu2 %v2750_v42 }
 0x34a   : > { %1974 = vrot.lane.b32.xlu0 %v6167_v9, %s4494_s26  ;;  %1717 = vrot.lane.b32.xlu1 %v1567_v50, %s4494_s26 }
 0x34b   : > { %v6763_v56 = vadd.f32 %v3543_v1, %v3445_v47  ;;  %v3348_v2 = vpop.f32.mrf.mxu3  ;;  %v2271_v62 = vpop.permute.xlu2 %2270 }
 0x34c   : > { %v3249_v63 = vpop.f32.mrf.mxu2  ;;  %2352 = vst.msk [vmem:[#allocation2 + $0x4f0] sm:$0xff] %vm1457_vm12, %v2271_v62 }
 0x34d   : > { %v3250_v60 = vadd.f32 %v3249_v63, %v6470_v53  ;;  %v1959_v22 = vpop.permute.xlu1 %1958  ;;  %v1700_v5 = vpop.permute.xlu0 %1699  ;;  %v2632_v6 = vld [vmem:[#allocation2 + $0x450] sm:$0xff] }
 0x34e   : > { %2045 = vst.msk [vmem:[#allocation2 + $0x470] sm:$0xff] %vm1457_vm12, %v1959_v22  ;;  %v3447_v45 = vpop.f32.mrf.mxu0  ;;  %v3546_v1 = vpop.f32.mrf.mxu1  ;;  %v2627_v42 = vld [vmem:[#allocation2 + $0x428] sm:$0xff] }
 0x34f   : > { %v3349_v20 = vadd.f32 %v3348_v2, %v3250_v60  ;;  %1786 = vst.msk [vmem:[#allocation2 + $0x490] sm:$0xff] %vm1457_vm12, %v1700_v5  ;;  %v2752_v53 = vpack.c.bf16 %v2632_v6, %v2627_v42  ;;  %v2641_v5 = vld [vmem:[#allocation2 + $0x498] sm:$0xff] }
 0x351   : > { %v3448_v47 = vadd.f32 %v3447_v45, %v3349_v20  ;;  %4290 = vmatmul.msk.bf16.gmra.mxu1 %vm1232_vm3, %v2753_v35  ;;  %3486 = vmatmul.bf16.gmra.mxu0 %v2752_v53 }
 0x353   : > { %v6773_v9 = vadd.f32 %v3546_v1, %v3448_v47  ;;  %v3350_v50 = vpop.f32.mrf.mxu3  ;;  %v1708_v1 = vpop.permute.xlu2 %1707 }
 0x354   : > { %v3251_v63 = vpop.f32.mrf.mxu2  ;;  %1790 = vst.msk [vmem:[#allocation2 + $0x530] sm:$0xff] %vm1457_vm12, %v1708_v1 }
 0x355   : > { %v3252_v22 = vadd.f32 %v3251_v63, %v6486_v43  ;;  %v2267_v2 = vpop.permute.xlu1 %2266  ;;  %v2636_v60 = vld [vmem:[#allocation2 + $0x470] sm:$0xff]  ;;  %v2265_v49 = vpop.permute.xlu0 %2264  ;;  %v2643_v63 = vld [vmem:[#allocation2 + $0x4a8] sm:$0xff] }
 0x356   : > { %2350 = vst.msk [vmem:[#allocation2 + $0x4a0] sm:$0xff] %vm1457_vm12, %v2267_v2  ;;  %v3449_v34 = vpop.f32.mrf.mxu0  ;;  %v2640_v62 = vld [vmem:[#allocation2 + $0x490] sm:$0xff]  ;;  %v2756_v6 = vpack.c.bf16 %v2641_v5, %v2636_v60  ;;  %v3548_v20 = vpop.f32.mrf.mxu1 }
 0x357   : > { %v3351_v45 = vadd.f32 %v3350_v50, %v3252_v22  ;;  %2349 = vst.msk [vmem:[#allocation2 + $0x478] sm:$0xff] %vm1457_vm12, %v2265_v49  ;;  %v2755_v42 = vpack.c.bf16 %v2640_v62, %v2635_v25  ;;  %v2638_v49 = vld [vmem:[#allocation2 + $0x480] sm:$0xff] }
 0x358   : > { %3392 = vmatmul.bf16.gmra.mxu3 %v2756_v6 }
 0x359   : > { %v3450_v43 = vadd.f32 %v3449_v34, %v3351_v45  ;;  %3293 = vmatmul.bf16.gmra.mxu2 %v2755_v42  ;;  %v2758_v45 = vpack.c.bf16 %v2643_v63, %v2638_v49  ;;  %v792_v42 = vmul.f32 %v6702_v7, %v6660_v4 }
 0x35b   : > { %v6779_v35 = vadd.f32 %v3548_v20, %v3450_v43  ;;  %v3353_v53 = vpop.f32.mrf.mxu3  ;;  %v2273_v62 = vpop.permute.xlu2 %2272 }
 0x35c   : > { %v3254_v47 = vpop.f32.mrf.mxu2  ;;  %2353 = vst.msk [vmem:[#allocation2 + $0x518] sm:$0xff] %vm1457_vm12, %v2273_v62  ;;  %v2653_v62 = vld [vmem:[#allocation2 + $0x4f8] sm:$0xff] }
 0x35d   : > { %v3255_v2 = vadd.f32 %v3254_v47, %v6500_v41  ;;  %v1704_v55 = vpop.permute.xlu1 %1703  ;;  %v2642_v60 = vld [vmem:[#allocation2 + $0x4a0] sm:$0xff]  ;;  %v1702_v22 = vpop.permute.xlu0 %1701 }
 0x35e   : > { %1788 = vst.msk [vmem:[#allocation2 + $0x4e0] sm:$0xff] %vm1457_vm12, %v1704_v55  ;;  %v3452_v50 = vpop.f32.mrf.mxu0  ;;  %v2637_v5 = vld [vmem:[#allocation2 + $0x478] sm:$0xff]  ;;  %v3551_v34 = vpop.f32.mrf.mxu1 }
 0x35f   : > { %v3354_v25 = vadd.f32 %v3353_v53, %v3255_v2  ;;  %1787 = vst.msk [vmem:[#allocation2 + $0x4b8] sm:$0xff] %vm1457_vm12, %v1702_v22  ;;  %v2757_v6 = vpack.c.bf16 %v2642_v60, %v2637_v5 }
 0x361   : > { %v3453_v20 = vadd.f32 %v3452_v50, %v3354_v25  ;;  %4291 = vmatmul.msk.bf16.gmra.mxu1 %vm1232_vm3, %v2758_v45  ;;  %3491 = vmatmul.bf16.gmra.mxu0 %v2757_v6  ;;  %v832_v25 = vadd.f32 %v6712_v58, %v792_v42 }
 0x363   : > { %v6786_v41 = vadd.f32 %v3551_v34, %v3453_v20  ;;  %v3355_v55 = vpop.f32.mrf.mxu3  ;;  %v1712_v5 = vpop.permute.xlu2 %1711  ;;  %v868_v20 = vmax.f32 %v832_v25, 0.0 }
 0x364   : > { %v3256_v1 = vpop.f32.mrf.mxu2  ;;  %1792 = vst.msk [vmem:[#allocation2 + $0x580] sm:$0xff] %vm1457_vm12, %v1712_v5 }
 0x365   : > { %v3257_v43 = vadd.f32 %v3256_v1, %v6519_v17  ;;  %v2269_v53 = vpop.permute.xlu1 %2268  ;;  %v2650_v47 = vld [vmem:[#allocation2 + $0x4e0] sm:$0xff]  ;;  %v1965_v2 = vpop.permute.xlu0 %1964  ;;  %v2652_v1 = vld [vmem:[#allocation2 + $0x4f0] sm:$0xff] }
 0x366   : > { %2351 = vst.msk [vmem:[#allocation2 + $0x4c8] sm:$0xff] %vm1457_vm12, %v2269_v53  ;;  %v3454_v63 = vpop.f32.mrf.mxu0  ;;  %v2645_v60 = vld [vmem:[#allocation2 + $0x4b8] sm:$0xff]  ;;  %v3553_v22 = vpop.f32.mrf.mxu1 }
 0x367   : > { %v3356_v50 = vadd.f32 %v3355_v55, %v3257_v43  ;;  %2048 = vst.msk [vmem:[#allocation2 + $0x4e8] sm:$0xff] %vm1457_vm12, %v1965_v2  ;;  %v2760_v49 = vpack.c.bf16 %v2650_v47, %v2645_v60  ;;  %v2646_v47 = vld [vmem:[#allocation2 + $0x4c0] sm:$0xff] }
 0x369   : > { %v3455_v4 = vadd.f32 %v3454_v63, %v3356_v50  ;;  %3298 = vmatmul.bf16.gmra.mxu2 %v2760_v49  ;;  %v2648_v63 = vld [vmem:[#allocation2 + $0x4d0] sm:$0xff] }
 0x36a   : > { %v2763_v5 = vpack.c.bf16 %v2653_v62, %v2648_v63 }
 0x36b   : > { %v6795_v17 = vadd.f32 %v3553_v22, %v3455_v4  ;;  %v3358_v7 = vpop.f32.mrf.mxu3  ;;  %v2277_v22 = vpop.permute.xlu2 %2276 }
 0x36c   : > { %v3259_v34 = vpop.f32.mrf.mxu2  ;;  %2355 = vst.msk [vmem:[#allocation2 + $0x568] sm:$0xff] %vm1457_vm12, %v2277_v22 }
 0x36d   : > { %v3260_v6 = vadd.f32 %v3259_v34, %v6533_v33  ;;  %v1706_v45 = vpop.permute.xlu1 %1705  ;;  %v2647_v55 = vld [vmem:[#allocation2 + $0x4c8] sm:$0xff]  ;;  %v6799_v53 = vpop.permute.xlu0 %1046 }
 0x36e   : > { %1789 = vst.msk [vmem:[#allocation2 + $0x508] sm:$0xff] %vm1457_vm12, %v1706_v45  ;;  %v3457_v43 = vpop.f32.mrf.mxu0  ;;  %v2651_v58 = vld [vmem:[#allocation2 + $0x4e8] sm:$0xff]  ;;  %v2762_v42 = vpack.c.bf16 %v2652_v1, %v2647_v55  ;;  %v6802_v60 = vmul.f32 %v6799_v53, %v868_v20  ;;  %v3556_v50 = vpop.f32.mrf.mxu1  ;;  %v7896_v55 = vrot.slane %v6724_v13, 2 }
 0x36f   : > { %7895 = vst [vmem:[#allocation33_spill] sm:$0xff] %v6799_v53  ;;  %v3359_v2 = vadd.f32 %v3358_v7, %v3260_v6  ;;  %v2761_v33 = vpack.c.bf16 %v2651_v58, %v2646_v47 }
 0x370   : > { %v2433_v25 = vrot.slane %v6802_v60, 3  ;;  %1835 = vst.msk [vmem:[#allocation2 + $0x628] sm:$0xff] %vm1232_vm3, %v6802_v60  ;;  %v2208_v4 = vrot.slane %v6802_v60, 2  ;;  %v1906_v7 = vrot.slane %v6802_v60, 1  ;;  %v1568_v45 = vrot.slane %v6802_v60, 7 }
 0x371   : > { %v3458_v49 = vadd.f32 %v3457_v43, %v3359_v2  ;;  %3397 = vmatmul.bf16.gmra.mxu3 %v2761_v33  ;;  %4292 = vmatmul.msk.bf16.gmra.mxu1 %vm1232_vm3, %v2763_v5  ;;  %2058 = vst.msk [vmem:[#allocation2 + $0x62f] sm:$0x1] %vm1797_vm2, %v7842_v51  ;;  %v1340_v5 = vrot.slane %v6724_v13, 6 }
 0x372   : > { %3496 = vmatmul.bf16.gmra.mxu0 %v2762_v42  ;;  %v2434_v34 = vsel %vm2363_vm7, %v2431_v19, %v2433_v25  ;;  %2510 = vst.msk [vmem:[#allocation2 + $0x5e8] sm:$0x1f] %vm2509_vm1, %v2433_v25  ;;  %2282 = vrot.lane.b32.xlu0 %v2208_v4, %s4494_s26  ;;  %v2209_v1 = vsel %vm2138_vm11, %v7896_v55, %v2208_v4  ;;  %v7897_v19 = vrot.slane %v6724_v13, 1  ;;  %v2660_v42 = vld [vmem:[#allocation2 + $0x530] sm:$0xff]  ;;  %v7899_v4 = vrot.slane %v6099_v14, 6  ;;  %v2658_v14 = vld [vmem:[#allocation2 + $0x520] sm:$0xff] }
 0x373   : > { %v6816_v62 = vadd.f32 %v3556_v50, %v3458_v49  ;;  %v6819_v6 = vpop.f32.mrf.mxu3  ;;  %2508 = vst.msk [vmem:[#allocation2 + $0x5c0] sm:$0xff] %vm1232_vm3, %v2434_v34  ;;  %1980 = vrot.lane.b32.xlu1 %v1906_v7, %s4494_s26  ;;  %2280 = vrot.lane.b32.xlu2 %v2209_v1, %s4494_s26  ;;  %v1716_v33 = vpop.permute.xlu2 %1715  ;;  %v7898_v49 = vrot.slane %v6724_v13, 7  ;;  %vm2321_vm7 = vcmask 1048070  }
 0x374   : > { %v6824_v20 = vpop.f32.mrf.mxu2  ;;  %v1907_v43 = vsel %vm1836_vm9, %v7897_v19, %v1906_v7  ;;  %1794 = vst.msk [vmem:[#allocation2 + $0x5d0] sm:$0xff] %vm1457_vm12, %v1716_v33  ;;  %v1341_v34 = vsel %vm650_vm0, %v7899_v4, %v1340_v5  ;;  %v2663_v19 = vld [vmem:[#allocation2 + $0x548] sm:$0xff]  ;;  %vm2056_vm9 = vcmask 1047040  }
 0x375   : > { %v1969_v47 = vpop.permute.xlu1 %1968  ;;  %v2655_v58 = vld [vmem:[#allocation2 + $0x508] sm:$0xff]  ;;  %2132 = vst.msk [vmem:[#allocation2 + $0x5b8] sm:$0xff] %vm1232_vm3, %v1907_v43  ;;  %v1967_v2 = vpop.permute.xlu0 %1966  ;;  %v1569_v25 = vsel %vm1498_vm10, %v7898_v49, %v1568_v45  ;;  %v2768_v49 = vpack.c.bf16 %v2663_v19, %v2658_v14  ;;  %v2657_v14 = vld [vmem:[#allocation2 + $0x518] sm:$0xff] }
 0x376   : > { %2050 = vst.msk [vmem:[#allocation2 + $0x538] sm:$0xff] %vm1457_vm12, %v1969_v47  ;;  %v6835_v63 = vpop.f32.mrf.mxu0  ;;  %v2765_v50 = vpack.c.bf16 %v2660_v42, %v2655_v58  ;;  %v6838_v22 = vpop.f32.mrf.mxu1 }
 0x377   : > { %2049 = vst.msk [vmem:[#allocation2 + $0x510] sm:$0xff] %vm1457_vm12, %v1967_v2 }
 0x378   : > { %2134 = vst.msk [vmem:[#allocation2 + $0x5e0] sm:$0x7f] %vm2133_vm6, %v1906_v7 }
 0x379   : > { %3303 = vmatmul.bf16.gmra.mxu2 %v2765_v50  ;;  %2360 = vst.msk [vmem:[#allocation2 + $0x5e0] sm:$0xc0] %vm2321_vm7, %v7842_v51 }
 0x37a   : > { %1978 = vrot.lane.b32.xlu0 %v1907_v43, %s4494_s26 }
 0x37b   : > { %v3363_v55 = vpop.f32.mrf.mxu3  ;;  %1412 = vrot.lane.b32.xlu1 %v1341_v34, %s4494_s26  ;;  %1719 = vrot.lane.b32.xlu2 %v1569_v25, %s4494_s26  ;;  %v1342_v25 = vrot.slane %v6802_v60, 6 }
 0x37c   : > { %v3264_v1 = vpop.f32.mrf.mxu2 }
 0x37d   : > { %v3265_v13 = vadd.f32 %v3264_v1, %v6562_v59  ;;  %v1710_v47 = vpop.permute.xlu1 %1709  ;;  %v2661_v58 = vld [vmem:[#allocation2 + $0x538] sm:$0xff]  ;;  %v2275_v43 = vpop.permute.xlu0 %2274  ;;  %v3886_v59 = vld [vmem:[%s7517_s11] sm:$0xff] }
 0x37e   : > { %1791 = vst.msk [vmem:[#allocation2 + $0x558] sm:$0xff] %vm1457_vm12, %v1710_v47  ;;  %v3462_v42 = vpop.f32.mrf.mxu0  ;;  %v2656_v2 = vld [vmem:[#allocation2 + $0x510] sm:$0xff]  ;;  %v3561_v7 = vpop.f32.mrf.mxu1 }
 0x37f   : > { %v3364_v50 = vadd.f32 %v3363_v55, %v3265_v13  ;;  %2354 = vst.msk [vmem:[#allocation2 + $0x540] sm:$0xff] %vm1457_vm12, %v2275_v43  ;;  %v2766_v33 = vpack.c.bf16 %v2661_v58, %v2656_v2  ;;  %v2670_v58 = vld [vmem:[#allocation2 + $0x580] sm:$0xff] }
 0x381   : > { %v3463_v4 = vadd.f32 %v3462_v42, %v3364_v50  ;;  %3402 = vmatmul.bf16.gmra.mxu3 %v2766_v33  ;;  %4293 = vmatmul.msk.bf16.gmra.mxu1 %vm1232_vm3, %v2768_v49 }
 0x382   : > { %3889 = vperm.xlu0 %4413, %v3886_v59  }
 0x383   : > { %v6861_v34 = vadd.f32 %v3561_v7, %v3463_v4  ;;  %v3365_v1 = vpop.f32.mrf.mxu3  ;;  %1416 = vrot.lane.b32.xlu1 %v1342_v25, %s4494_s26 }
 0x384   : > { %v3266_v55 = vpop.f32.mrf.mxu2 }
 0x385   : > { %v3267_v13 = vadd.f32 %v3266_v55, %v6580_v48  ;;  %v1973_v19 = vpop.permute.xlu1 %1972  ;;  %v2665_v47 = vld [vmem:[#allocation2 + $0x558] sm:$0xff]  ;;  %v1971_v43 = vpop.permute.xlu0 %1970  ;;  %v1343_v48 = vsel %vm650_vm0, %v1340_v5, %v1342_v25  ;;  %v2668_v5 = vld [vmem:[#allocation2 + $0x570] sm:$0xff] }
 0x386   : > { %2052 = vst.msk [vmem:[#allocation2 + $0x588] sm:$0xff] %vm1457_vm12, %v1973_v19  ;;  %v3464_v42 = vpop.f32.mrf.mxu0  ;;  %v2770_v2 = vpack.c.bf16 %v2670_v58, %v2665_v47  ;;  %v2662_v50 = vld [vmem:[#allocation2 + $0x540] sm:$0xff]  ;;  %v3563_v7 = vpop.f32.mrf.mxu1  ;;  %v7900_v19 = vld [vmem:[#allocation9_spill] sm:$0xff] }
 0x387   : > { %v3366_v33 = vadd.f32 %v3365_v1, %v3267_v13  ;;  %2051 = vst.msk [vmem:[#allocation2 + $0x560] sm:$0xff] %vm1457_vm12, %v1971_v43  ;;  %v2767_v49 = vpack.c.bf16 %v2662_v50, %v2657_v14  ;;  %v7901_v47 = vrot.slane %v7900_v19, 1  ;;  %v2673_v1 = vld [vmem:[#allocation2 + $0x598] sm:$0xff]  ;;  %v7903_v60 = vrot.slane %v7900_v19, 2 }
 0x389   : > { %v3465_v59 = vadd.f32 %v3464_v42, %v3366_v33  ;;  %3308 = vmatmul.bf16.gmra.mxu2 %v2770_v2  ;;  %3501 = vmatmul.bf16.gmra.mxu0 %v2767_v49 }
 0x38a   : > { %1414 = vrot.lane.b32.xlu0 %v1343_v48, %s4494_s26  ;;  %v7902_v48 = vld [vmem:[#allocation14_spill] sm:$0xff] }
 0x38b   : > { %v6868_v4 = vadd.f32 %v3563_v7, %v3465_v59  ;;  %v3368_v55 = vpop.f32.mrf.mxu3  ;;  %1908 = vrot.lane.b32.xlu1 %v7901_v47, %s4494_s26  ;;  %v2773_v7 = vpack.c.bf16 %v2673_v1, %v2668_v5 }
 0x38c   : > { %v3269_v58 = vpop.f32.mrf.mxu2 }
 0x38d   : > { %v3270_v13 = vadd.f32 %v3269_v58, %v6591_v10  ;;  %v1714_v43 = vpop.permute.xlu1 %1713  ;;  %v2671_v14 = vld [vmem:[#allocation2 + $0x588] sm:$0xff] }
 0x38e   : > { %1793 = vst.msk [vmem:[#allocation2 + $0x5a8] sm:$0xff] %vm1457_vm12, %v1714_v43  ;;  %v3467_v42 = vpop.f32.mrf.mxu0  ;;  %v2666_v2 = vld [vmem:[#allocation2 + $0x560] sm:$0xff]  ;;  %v3566_v50 = vpop.f32.mrf.mxu1 }
 0x38f   : > { %v3369_v25 = vadd.f32 %v3368_v55, %v3270_v13  ;;  %v2771_v33 = vpack.c.bf16 %v2671_v14, %v2666_v2  ;;  %v2680_v13 = vld [vmem:[#allocation2 + $0x5d0] sm:$0xff] }
 0x391   : > { %v3468_v49 = vadd.f32 %v3467_v42, %v3369_v25  ;;  %3407 = vmatmul.bf16.gmra.mxu3 %v2771_v33  ;;  %4294 = vmatmul.msk.bf16.gmra.mxu1 %vm1232_vm3, %v2773_v7  ;;  %v2683_v33 = vld [vmem:[#allocation2 + $0x5e8] sm:$0xff] }
 0x392   : > { %1721 = vrot.lane.b32.xlu0 %v1568_v45, %s4494_s26 }
 0x393   : > { %v6877_v59 = vadd.f32 %v3566_v50, %v3468_v49  ;;  %v3370_v10 = vpop.f32.mrf.mxu3  ;;  %2212 = vrot.lane.b32.xlu1 %v7902_v48, %s4494_s26  ;;  %v2678_v50 = vld [vmem:[#allocation2 + $0x5c0] sm:$0xff] }
 0x394   : > { %v3271_v47 = vpop.f32.mrf.mxu2 }
 0x395   : > { %v3272_v55 = vadd.f32 %v3271_v47, %v6609_v27  ;;  %v2675_v58 = vld [vmem:[#allocation2 + $0x5a8] sm:$0xff]  ;;  %v2778_v47 = vpack.c.bf16 %v2683_v33, %v2678_v50 }
 0x396   : > { %v3469_v1 = vpop.f32.mrf.mxu0  ;;  %v2775_v43 = vpack.c.bf16 %v2680_v13, %v2675_v58  ;;  %v3568_v42 = vpop.f32.mrf.mxu1  ;;  %v7904_v58 = vld [vmem:[#allocation17_spill] sm:$0xff] }
 0x397   : > { %v3371_v14 = vadd.f32 %v3370_v10, %v3272_v55 }
 0x399   : > { %v3470_v2 = vadd.f32 %v3469_v1, %v3371_v14  ;;  %3313 = vmatmul.bf16.gmra.mxu2 %v2775_v43 }
 0x39a   : > { %2210 = vrot.lane.b32.xlu0 %v7903_v60, %s4494_s26 }
 0x39b   : > { %v6885_v5 = vadd.f32 %v3568_v42, %v3470_v2  ;;  %v3373_v45 = vpop.f32.mrf.mxu3 }
 0x39c   : > { %v3274_v25 = vpop.f32.mrf.mxu2 }
 0x39d   : > { %v3275_v27 = vadd.f32 %v3274_v25, %v6625_v30 }
 0x39e   : > { %v3472_v7 = vpop.f32.mrf.mxu0  ;;  %v3571_v48 = vpop.f32.mrf.mxu1 }
 0x39f   : > { %v3374_v49 = vadd.f32 %v3373_v45, %v3275_v27 }
 0x3a1   : > { %v3473_v10 = vadd.f32 %v3472_v7, %v3374_v49  ;;  %4295 = vmatmul.msk.bf16.gmra.mxu1 %vm1232_vm3, %v2778_v47 }
 0x3a2   : > { %2214 = vrot.lane.b32.xlu0 %v7904_v58, %s4494_s26  ;;  %s4368_s26 = smul.u32 24, %s404_s20 }
 0x3a3   : > { %v6892_v55 = vadd.f32 %v3571_v48, %v3473_v10  ;;  %v3375_v19 = vpop.f32.mrf.mxu3 }
 0x3a4   : > { %v3276_v13 = vpop.f32.mrf.mxu2  ;;  %s406_s23 = scalar_lea.vmem [#allocation3], %s4368_s26  ;;  %s4444_s26 = scalar_lea.hbm %s4443_s19, 24 }
 0x3a5   : > { %v3277_v1 = vadd.f32 %v3276_v13, %v6639_v12  ;;  %s3970_s16 = sshll.u32 %s406_s23, 4  ;;  %p4445_p11 = scmp.ne.s32.totalorder %s4443_s19, %s4444_s26  ;;  %s3971_s16 = int_to_ptr.vmem [resolvable:$true] %s3970_s16 }
 0x3a6   : > { %v3474_v43 = vpop.f32.mrf.mxu0  ;;  %v3573_v42 = vpop.f32.mrf.mxu1  ;;  %p4450_p1 = scmp.lt.s32.totalorder %s4448_s29, %s4444_s26 }
 0x3a7   : > { %v3376_v14 = vadd.f32 %v3375_v19, %v3277_v1  ;;  %p4446_p12 = pnand %p4445_p11, %p4598_p5 }
 0x3a8   : > { %p4451_p2 = por %p4450_p1, %p4449_p0 }
 0x3a9   : > { %v3475_v30 = vadd.f32 %v3474_v43, %v3376_v14  ;;  %p4447_p13 = pneg %p4446_p12 }
 0x3ab   : > { %v6897_v2 = vadd.f32 %v3573_v42, %v3475_v30  ;;  %v3378_v60 = vpop.f32.mrf.mxu3  ;;  %p4452_p3 = pnand %p4451_p2, %p4447_p13 }
 0x3ac   : > { %v3279_v45 = vpop.f32.mrf.mxu2 }
 0x3ad   : > { %v3280_v25 = vadd.f32 %v3279_v45, %v6655_v61 }
 0x3ae   : > { %v3477_v50 = vpop.f32.mrf.mxu0  ;;  %v3576_v27 = vpop.f32.mrf.mxu1 }
 0x3af   : > { %v3379_v33 = vadd.f32 %v3378_v60, %v3280_v25 }
 0x3b1   : > { %v3478_v7 = vadd.f32 %v3477_v50, %v3379_v33  ;;  %v2667_v50 = vld [vmem:[#allocation2 + $0x568] sm:$0xff] }
 0x3b3   : > { %v6900_v49 = vadd.f32 %v3576_v27, %v3478_v7  ;;  %v3380_v48 = vpop.f32.mrf.mxu3 }
 0x3b4   : > { %v3281_v47 = vpop.f32.mrf.mxu2  ;;  %v2279_v13 = vpop.permute.xlu0 %2278 }
 0x3b5   : > { %v3282_v12 = vadd.f32 %v3281_v47, %v6671_v31  ;;  %2356 = vst.msk [vmem:[#allocation2 + $0x590] sm:$0xff] %vm1457_vm12, %v2279_v13  ;;  %v1977_v1 = vpop.permute.xlu1 %1976 }
 0x3b6   : > { %v3479_v10 = vpop.f32.mrf.mxu0  ;;  %v3578_v19 = vpop.f32.mrf.mxu1  ;;  %2054 = vst.msk [vmem:[#allocation2 + $0x5d8] sm:$0xff] %vm1457_vm12, %v1977_v1 }
 0x3b7   : > { %v3381_v58 = vadd.f32 %v3380_v48, %v3282_v12 }
 0x3b9   : > { %v3480_v43 = vadd.f32 %v3479_v10, %v3381_v58 }
 0x3bb   : > { %v6905_v61 = vadd.f32 %v3578_v19, %v3480_v43  ;;  %v3383_v14 = vpop.f32.mrf.mxu3 }
 0x3bc   : > { %v3284_v42 = vpop.f32.mrf.mxu2  ;;  %v1975_v31 = vpop.permute.xlu0 %1974  ;;  %v2672_v33 = vld [vmem:[#allocation2 + $0x590] sm:$0xff] }
 0x3bd   : > { %v3285_v30 = vadd.f32 %v3284_v42, %v6424_v18  ;;  %2053 = vst.msk [vmem:[#allocation2 + $0x5b0] sm:$0xff] %vm1457_vm12, %v1975_v31  ;;  %v1718_v27 = vpop.permute.xlu1 %1717  ;;  %v2772_v7 = vpack.c.bf16 %v2672_v33, %v2667_v50  ;;  %v2681_v43 = vld [vmem:[#allocation2 + $0x5d8] sm:$0xff] }
 0x3be   : > { %v3482_v60 = vpop.f32.mrf.mxu0  ;;  %v3581_v25 = vpop.f32.mrf.mxu1  ;;  %1795 = vst.msk [vmem:[#allocation2 + $0x5f8] sm:$0xff] %vm1457_vm12, %v1718_v27 }
 0x3bf   : > { %v3384_v45 = vadd.f32 %v3383_v14, %v3285_v30  ;;  %3506 = vmatmul.bf16.gmra.mxu0 %v2772_v7 }
 0x3c1   : > { %v3483_v48 = vadd.f32 %v3482_v60, %v3384_v45 }
 0x3c3   : > { %v6910_v47 = vadd.f32 %v3581_v25, %v3483_v48  ;;  %v3385_v12 = vpop.f32.mrf.mxu3 }
 0x3c4   : > { %v3286_v10 = vpop.f32.mrf.mxu2  ;;  %v2676_v1 = vld [vmem:[#allocation2 + $0x5b0] sm:$0xff] }
 0x3c5   : > { %v3287_v18 = vadd.f32 %v3286_v10, %v6445_v21  ;;  %v2776_v14 = vpack.c.bf16 %v2681_v43, %v2676_v1 }
 0x3c6   : > { %v3484_v58 = vpop.f32.mrf.mxu0  ;;  %v3583_v13 = vpop.f32.mrf.mxu1 }
 0x3c7   : > { %v3386_v19 = vadd.f32 %v3385_v12, %v3287_v18  ;;  %3412 = vmatmul.bf16.gmra.mxu3 %v2776_v14 }
 0x3c9   : > { %v3485_v42 = vadd.f32 %v3484_v58, %v3386_v19 }
 0x3cb   : > { %v6913_v30 = vadd.f32 %v3583_v13, %v3485_v42  ;;  %v3388_v60 = vpop.f32.mrf.mxu3 }
 0x3cc   : > { %v3289_v45 = vpop.f32.mrf.mxu2 }
 0x3cd   : > { %v3290_v31 = vadd.f32 %v3289_v45, %v6459_v16  ;;  %v2281_v33 = vpop.permute.xlu2 %2280  ;;  %v2685_v45 = vld [vmem:[#allocation2 + $0x5f8] sm:$0xff] }
 0x3ce   : > { %v3487_v50 = vpop.f32.mrf.mxu0  ;;  %v3586_v21 = vpop.f32.mrf.mxu1  ;;  %2357 = vst.msk [vmem:[#allocation2 + $0x5b8] sm:$0xff] %vm1457_vm12, %v2281_v33  ;;  %v2688_v33 = vld [vmem:[#allocation2 + $0x610] sm:$0xff] }
 0x3cf   : > { %v3389_v25 = vadd.f32 %v3388_v60, %v3290_v31 }
 0x3d1   : > { %v3488_v27 = vadd.f32 %v3487_v50, %v3389_v25 }
 0x3d3   : > { %v6918_v7 = vadd.f32 %v3586_v21, %v3488_v27  ;;  %v3390_v12 = vpop.f32.mrf.mxu3  ;;  %v2693_v27 = vld [vmem:[#allocation2 + $0x638] sm:$0xff] }
 0x3d4   : > { %v3291_v48 = vpop.f32.mrf.mxu2 }
 0x3d5   : > { %v3292_v10 = vadd.f32 %v3291_v48, %v6474_v26  ;;  %v1720_v16 = vpop.permute.xlu2 %1719  ;;  %v2783_v48 = vpack.c.bf16 %v2693_v27, %v2688_v33 }
 0x3d6   : > { %v3489_v58 = vpop.f32.mrf.mxu0  ;;  %v3588_v19 = vpop.f32.mrf.mxu1  ;;  %1796 = vst.msk [vmem:[#allocation2 + $0x620] sm:$0xff] %vm1457_vm12, %v1720_v16 }
 0x3d7   : > { %v3391_v18 = vadd.f32 %v3390_v12, %v3292_v10  ;;  %4296 = vmatmul.msk.bf16.gmra.mxu1 %vm1232_vm3, %v2783_v48 }
 0x3d9   : > { %v3490_v13 = vadd.f32 %v3489_v58, %v3391_v18  ;;  %v2677_v18 = vld [vmem:[#allocation2 + $0x5b8] sm:$0xff] }
 0x3db   : > { %v6922_v51 = vadd.f32 %v3588_v19, %v3490_v13  ;;  %v3393_v14 = vpop.f32.mrf.mxu3 }
 0x3dc   : > { %v3294_v1 = vpop.f32.mrf.mxu2 }
 0x3dd   : > { %v3295_v43 = vadd.f32 %v3294_v1, %v6488_v24  ;;  %v2690_v31 = vld [vmem:[#allocation2 + $0x620] sm:$0xff] }
 0x3de   : > { %v3492_v60 = vpop.f32.mrf.mxu0  ;;  %v2780_v50 = vpack.c.bf16 %v2690_v31, %v2685_v45  ;;  %v3591_v26 = vpop.f32.mrf.mxu1  ;;  %v2692_v45 = vld [vmem:[#allocation2 + $0x630] sm:$0xff] }
 0x3df   : > { %v3394_v42 = vadd.f32 %v3393_v14, %v3295_v43 }
 0x3e0   : > { %3318 = vmatmul.bf16.gmra.mxu2 %v2780_v50 }
 0x3e1   : > { %v3493_v25 = vadd.f32 %v3492_v60, %v3394_v42  ;;  %v2687_v60 = vld [vmem:[#allocation2 + $0x608] sm:$0xff] }
 0x3e2   : > { %v2782_v31 = vpack.c.bf16 %v2692_v45, %v2687_v60 }
 0x3e3   : > { %v6925_v21 = vadd.f32 %v3591_v26, %v3493_v25 }
 0x3e4   : > { %v2283_v12 = vpop.permute.xlu0 %2282 }
 0x3e5   : > { %2359 = vst.msk [vmem:[#allocation2 + $0x5e0] sm:$0x3f] %vm2358_vm8, %v2283_v12  ;;  %v1981_v10 = vpop.permute.xlu1 %1980  ;;  %v6931_v12 = vpop.f32.mrf.mxu2 }
 0x3e6   : > { %2057 = vst.msk [vmem:[#allocation2 + $0x628] sm:$0x7f] %vm2056_vm9, %v1981_v10  ;;  %v6933_v10 = vpop.f32.mrf.mxu1 }
 0x3ec   : > { %v1979_v24 = vpop.permute.xlu0 %1978  ;;  %v2682_v58 = vld [vmem:[#allocation2 + $0x5e0] sm:$0xff] }
 0x3ed   : > { %2055 = vst.msk [vmem:[#allocation2 + $0x600] sm:$0xff] %vm1457_vm12, %v1979_v24  ;;  %v1413_v19 = vpop.permute.xlu1 %1412  ;;  %v2777_v16 = vpack.c.bf16 %v2682_v58, %v2677_v18  ;;  %v2691_v43 = vld [vmem:[#allocation2 + $0x628] sm:$0xff]  ;;  %v6935_v24 = vpop.f32.mrf.mxu3  ;;  %vm3954_vm12 = vcmask 261120  }
 0x3ee   : > { %v6937_v18 = vpop.f32.mrf.mxu2  ;;  %v6939_v58 = vpop.f32.mrf.mxu0 }
 0x3ef   : > { %3511 = vmatmul.bf16.gmra.mxu0 %v2777_v16  ;;  %v6943_v16 = vpop.f32.mrf.mxu1 }
 0x3f4   : > { %v6929_v13 = vpop.permute.xlu0 %3889  ;;  %v2686_v1 = vld [vmem:[#allocation2 + $0x600] sm:$0xff] }
 0x3f5   : > { %7905 = vst [vmem:[#allocation35_spill] sm:$0xff] %v6929_v13  ;;  %v1417_v14 = vpop.permute.xlu1 %1416  ;;  %v2781_v42 = vpack.c.bf16 %v2691_v43, %v2686_v1  ;;  %v6941_v19 = vpop.f32.mrf.mxu3  ;;  %v6950_v43 = vld [vmem:[%s7512_s6] ss:$0 sm:$0xff] }
 0x3f6   : > { %v6945_v1 = vpop.f32.mrf.mxu2  ;;  %v6952_v14 = vpop.f32.mrf.mxu0  ;;  %v3626_v60 = vmul.f32 %v6950_v43, %v6690_v57  ;;  %v3628_v57 = vmul.f32 %v6950_v43, %v6716_v23  ;;  %v3630_v23 = vmul.f32 %v6950_v43, %v6763_v56 }
 0x3f7   : > { %3417 = vmatmul.bf16.gmra.mxu3 %v2781_v42  ;;  %v6958_v45 = vpop.f32.mrf.mxu1 }
 0x3fc   : > { %v1415_v25 = vpop.permute.xlu0 %1414 }
 0x3fd   : > { %v1909_v50 = vpop.permute.xlu1 %1908  ;;  %v6954_v42 = vpop.f32.mrf.mxu3  ;;  %v6965_v25 = vld [vmem:[%s7513_s7] ss:$0 sm:$0xff] }
 0x3fe   : > { %v3627_v50 = vmul.f32 %v6950_v43, %v6697_v36  ;;  %v3629_v36 = vmul.f32 %v6950_v43, %v6732_v46  ;;  %v7011_v40 = vadd.f32 %v6965_v25, %v3630_v23 }
 0x3ff   : > { %3516 = vmatmul.bf16.gmra.mxu0 %v2782_v31  ;;  %v3625_v31 = vmul.f32 %v6950_v43, %v6684_v29  ;;  %v7002_v13 = vpop.f32.mrf.mxu1 }
 0x400   : > { %v7000_v46 = vadd.f32 %v6965_v25, %v3629_v36  ;;  %7911 = vst [vmem:[#allocation56_spill] sm:$0xff] %v7002_v13 }
 0x401   : > { %v6979_v29 = vadd.f32 %v6965_v25, %v3625_v31  ;;  %7914 = vst [vmem:[#allocation62_spill] sm:$0xff] %v7011_v40 }
 0x402   : > { %7910 = vst [vmem:[#allocation55_spill] sm:$0xff] %v7000_v46 }
 0x403   : > { %7907 = vst [vmem:[#allocation37_spill] sm:$0xff] %v6979_v29  ;;  %v7916_v32 = vmax.f32 %v6979_v29, 0.0  ;;  %v7926_v29 = vld [vmem:[#allocation22_spill] sm:$0xff] }
 0x404   : > { %v1722_v26 = vpop.permute.xlu0 %1721 }
 0x405   : > { %v2213_v33 = vpop.permute.xlu1 %2212  ;;  %v6969_v26 = vpop.f32.mrf.mxu2 }
 0x406   : > { %v6972_v33 = vadd.f32 %v6965_v25, %v3626_v60  ;;  %v6988_v60 = vadd.f32 %v6965_v25, %v3628_v57  ;;  %v3631_v57 = vmul.f32 %v6950_v43, %v6773_v9  ;;  %v3737_v9 = vmul.f32 %v7916_v32, %v7915_v11 }
 0x408   : > { %7906 = vst [vmem:[#allocation36_spill] sm:$0xff] %v6972_v33  ;;  %v7913_v56 = vmax.f32 %v6972_v33, 0.0  ;;  %v7026_v23 = vadd.f32 %v6965_v25, %v3631_v57 }
 0x409   : > { %7909 = vst [vmem:[#allocation61_spill] sm:$0xff] %v6988_v60 }
 0x40a   : > { %7919 = vst [vmem:[#allocation57_spill] sm:$0xff] %v7026_v23 }
 0x40c   : > { %v2211_v27 = vpop.permute.xlu0 %2210 }
 0x40d   : > { %v3262_v27 = vadd.f32 %v6824_v20, %v6548_v3  ;;  %v6993_v3 = vpop.f32.mrf.mxu0  ;;  %v6995_v20 = vpop.f32.mrf.mxu3 }
 0x40e   : > { %v7016_v31 = vpop.f32.mrf.mxu2 }
 0x40f   : > { %v3361_v53 = vadd.f32 %v6819_v6, %v3262_v27  ;;  %v3738_v6 = vmul.f32 %v7913_v56, %v7912_v37  ;;  %v7923_v56 = vld [vmem:[#allocation18_spill] sm:$0xff] }
 0x411   : > { %v3460_v36 = vadd.f32 %v6835_v63, %v3361_v53  ;;  %v3773_v27 = vadd.f32 %v3738_v6, %v3737_v9  ;;  %v7920_v53 = vld [vmem:[#allocation15_spill] sm:$0xff]  ;;  %v7921_v63 = vmax.f32 %v6988_v60, 0.0  ;;  %v7929_v9 = vld [vmem:[#allocation24_spill] sm:$0xff] }
 0x413   : > { %v3740_v13 = vmul.f32 %v7921_v63, %v7920_v53  ;;  %v3559_v11 = vadd.f32 %v6838_v22, %v3460_v36  ;;  %v7927_v22 = vmax.f32 %v7011_v40, 0.0  ;;  %v7935_v40 = vld [vmem:[#allocation58_spill] sm:$0xff] }
 0x414   : > { %v2215_v48 = vpop.permute.xlu0 %2214 }
 0x415   : > { %v6982_v48 = vadd.f32 %v6965_v25, %v3627_v50  ;;  %v3632_v50 = vmul.f32 %v6950_v43, %v6779_v35  ;;  %v3633_v35 = vmul.f32 %v6950_v43, %v6786_v41  ;;  %v7924_v41 = vmax.f32 %v7000_v46, 0.0  ;;  %v7051_v63 = vpop.f32.mrf.mxu3 }
 0x416   : > { %v3742_v36 = vmul.f32 %v7927_v22, %v7926_v29  ;;  %v3637_v29 = vmul.f32 %v6950_v43, %v6861_v34  ;;  %v7072_v22 = vpop.f32.mrf.mxu2 }
 0x417   : > { %7908 = vst [vmem:[#allocation60_spill] sm:$0xff] %v6982_v48  ;;  %v7918_v33 = vmax.f32 %v6982_v48, 0.0  ;;  %v7035_v32 = vadd.f32 %v6965_v25, %v3632_v50  ;;  %v3741_v6 = vmul.f32 %v7924_v41, %v7923_v56  ;;  %v7047_v53 = vadd.f32 %v6965_v25, %v3633_v35 }
 0x418   : > { %v3635_v50 = vmul.f32 %v6950_v43, %v6816_v62  ;;  %v3636_v35 = vmul.f32 %v6950_v43, %v3559_v11  ;;  %v7930_v62 = vmax.f32 %v7026_v23, 0.0 }
 0x419   : > { %v3739_v37 = vmul.f32 %v7918_v33, %v7917_v54  ;;  %7922 = vst [vmem:[#allocation63_spill] sm:$0xff] %v7035_v32  ;;  %v3634_v54 = vmul.f32 %v6950_v43, %v6795_v17  ;;  %v7040_v33 = vpop.f32.mrf.mxu0  ;;  %v7932_v60 = vmax.f32 %v7035_v32, 0.0  ;;  %v7940_v32 = vld [vmem:[#allocation79_spill] sm:$0xff] }
 0x41a   : > { %7925 = vst [vmem:[#allocation64_spill] sm:$0xff] %v7047_v53  ;;  %v3743_v48 = vmul.f32 %v7930_v62, %v7929_v9  ;;  %v3638_v9 = vmul.f32 %v6950_v43, %v6868_v4  ;;  %v7933_v62 = vld [vmem:[#allocation28_spill] sm:$0xff] }
 0x41b   : > { %v3774_v57 = vadd.f32 %v3773_v27, %v3739_v37  ;;  %v7056_v27 = vpop.f32.mrf.mxu1  ;;  %v7060_v56 = vadd.f32 %v6965_v25, %v3634_v54  ;;  %v7931_v54 = vld [vmem:[#allocation26_spill] sm:$0xff] }
 0x41c   : > { %v3744_v11 = vmul.f32 %v7932_v60, %v7931_v54  ;;  %v3639_v60 = vmul.f32 %v6950_v43, %v6877_v59  ;;  %v7934_v54 = vld [vmem:[#allocation31_spill] sm:$0xff] }
 0x41d   : > { %v3775_v17 = vadd.f32 %v3774_v57, %v3740_v13  ;;  %7928 = vst [vmem:[#allocation65_spill] sm:$0xff] %v7060_v56  ;;  %v7645_v13 = vmax.f32 %v7047_v53, 0.0  ;;  %v7068_v57 = vadd.f32 %v6965_v25, %v3635_v50 }
 0x41f   : > { %v3776_v41 = vadd.f32 %v3775_v17, %v3741_v6  ;;  %v7647_v6 = vmax.f32 %v7060_v56, 0.0  ;;  %v7079_v17 = vadd.f32 %v6965_v25, %v3636_v35  ;;  %v3745_v34 = vmul.f32 %v7645_v13, %v7933_v62  ;;  %v7101_v62 = vpop.f32.mrf.mxu3 }
 0x420   : > { %v7936_v59 = vmax.f32 %v7068_v57, 0.0 }
 0x421   : > { %v3777_v37 = vadd.f32 %v3776_v41, %v3742_v36  ;;  %v7088_v36 = vadd.f32 %v6965_v25, %v3637_v29  ;;  %v7090_v41 = vpop.f32.mrf.mxu0  ;;  %v3746_v4 = vmul.f32 %v7647_v6, %v7934_v54  ;;  %v3640_v29 = vmul.f32 %v6950_v43, %v6885_v5 }
 0x422   : > { %v7112_v54 = vadd.f32 %v6965_v25, %v3639_v60  ;;  %v7938_v23 = vmax.f32 %v7079_v17, 0.0 }
 0x423   : > { %v3778_v50 = vadd.f32 %v3777_v37, %v3743_v48  ;;  %v7099_v37 = vadd.f32 %v6965_v25, %v3638_v9  ;;  %v7105_v13 = vpop.f32.mrf.mxu1  ;;  %v3641_v9 = vmul.f32 %v6950_v43, %v6892_v55  ;;  %v7937_v48 = vld [vmem:[#allocation68_spill] sm:$0xff] }
 0x424   : > { %v3748_v5 = vmul.f32 %v7938_v23, %v7937_v48  ;;  %v3643_v48 = vmul.f32 %v6950_v43, %v6900_v49  ;;  %v7942_v49 = vld [vmem:[#allocation80_spill] sm:$0xff] }
 0x425   : > { %v3779_v35 = vadd.f32 %v3778_v50, %v3744_v11  ;;  %v3747_v11 = vmul.f32 %v7936_v59, %v7935_v40  ;;  %v7651_v50 = vmax.f32 %v7088_v36, 0.0  ;;  %v3642_v40 = vmul.f32 %v6950_v43, %v6897_v2  ;;  %v7939_v59 = vld [vmem:[#allocation77_spill] sm:$0xff] }
 0x426   : > { %v7134_v23 = vadd.f32 %v6965_v25, %v3641_v9  ;;  %v7941_v53 = vmax.f32 %v7099_v37, 0.0  ;;  %v3644_v9 = vmul.f32 %v6950_v43, %v6905_v61  ;;  %v3300_v61 = vadd.f32 %v6937_v18, %v6522_v28 }
 0x427   : > { %v3780_v46 = vadd.f32 %v3779_v35, %v3745_v34  ;;  %v7120_v34 = vpop.f32.mrf.mxu2  ;;  %v7123_v35 = vadd.f32 %v6965_v25, %v3640_v29  ;;  %v3749_v55 = vmul.f32 %v7651_v50, %v7939_v59  ;;  %v7145_v59 = vadd.f32 %v6965_v25, %v3642_v40 }
 0x428   : > { %v3750_v2 = vmul.f32 %v7941_v53, %v7940_v32  ;;  %v3717_v32 = vmax.f32 %v7134_v23, 0.0  ;;  %v7156_v53 = vadd.f32 %v6965_v25, %v3643_v48  ;;  %v3645_v48 = vmul.f32 %v6950_v43, %v6910_v47 }
 0x429   : > { %v3781_v6 = vadd.f32 %v3780_v46, %v3746_v4  ;;  %v7149_v4 = vpop.f32.mrf.mxu3  ;;  %v3718_v56 = vmax.f32 %v7145_v59, 0.0  ;;  %v3305_v47 = vadd.f32 %v6969_v26, %v6552_v44  ;;  %v3307_v44 = vadd.f32 %v7016_v31, %v6571_v52 }
 0x42a   : > { %v3753_v28 = vmul.f32 %v3717_v32, %v6146_v15  ;;  %v3719_v18 = vmax.f32 %v7156_v53, 0.0 }
 0x42b   : > { %v3782_v60 = vadd.f32 %v3781_v6, %v3747_v11  ;;  %v3297_v6 = vadd.f32 %v6931_v12, %v6508_v8  ;;  %v3716_v11 = vmax.f32 %v7123_v35, 0.0  ;;  %v7158_v8 = vpop.f32.mrf.mxu1  ;;  %v3406_v52 = vadd.f32 %v7051_v63, %v3307_v44 }
 0x42c   : > { %v3312_v44 = vadd.f32 %v7120_v34, %v6601_v38  ;;  %v7970_v35 = vmax.f32 %v7099_v37, 0.0  ;;  %v7972_v37 = vmax.f32 %v7079_v17, 0.0 }
 0x42d   : > { %v3783_v29 = vadd.f32 %v3782_v60, %v3748_v5  ;;  %v7943_v5 = vmax.f32 %v7112_v54, 0.0  ;;  %v3396_v40 = vadd.f32 %v6935_v24, %v3297_v6  ;;  %v3399_v24 = vadd.f32 %v6941_v19, %v3300_v61  ;;  %v7945_v61 = vld [vmem:[#allocation12_spill] sm:$0xff] }
 0x42f   : > { %v3784_v50 = vadd.f32 %v3783_v29, %v3749_v55  ;;  %v3751_v60 = vmul.f32 %v7943_v5, %v7942_v49  ;;  %v7944_v55 = vld [vmem:[#allocation85_spill] sm:$0xff]  ;;  %v7168_v49 = vadd.f32 %v6965_v25, %v3644_v9  ;;  %v3646_v9 = vmul.f32 %v6950_v43, %v6913_v30 }
 0x430   : > { %v3752_v29 = vmul.f32 %v3716_v11, %v7944_v55  ;;  %v3495_v5 = vadd.f32 %v6939_v58, %v3396_v40  ;;  %v3647_v30 = vmul.f32 %v6950_v43, %v6918_v7  ;;  %v3498_v58 = vadd.f32 %v6952_v14, %v3399_v24  ;;  %v7946_v55 = vld [vmem:[#allocation16_spill] sm:$0xff] }
 0x431   : > { %v3785_v12 = vadd.f32 %v3784_v50, %v3750_v2  ;;  %v3302_v50 = vadd.f32 %v6945_v1, %v6538_v39  ;;  %v3314_v2 = vpop.f32.mrf.mxu2  ;;  %v3720_v15 = vmax.f32 %v7168_v49, 0.0 }
 0x432   : > { %v3594_v7 = vadd.f32 %v6933_v10, %v3495_v5  ;;  %v3597_v10 = vadd.f32 %v6943_v16, %v3498_v58  ;;  %v7948_v58 = vld [vmem:[#allocation19_spill] sm:$0xff] }
 0x433   : > { %v3786_v6 = vadd.f32 %v3785_v12, %v3751_v60  ;;  %v3401_v39 = vadd.f32 %v6954_v42, %v3302_v50  ;;  %v3754_v60 = vmul.f32 %v3718_v56, %v7945_v61  ;;  %v7190_v12 = vadd.f32 %v6965_v25, %v3645_v48 }
 0x434   : > { %v3404_v42 = vadd.f32 %v6995_v20, %v3305_v47  ;;  %v7202_v50 = vadd.f32 %v6965_v25, %v3646_v9  ;;  %v3648_v48 = vmul.f32 %v6950_v43, %v6922_v51  ;;  %v7947_v20 = vld [vmem:[#allocation10_spill] sm:$0xff]  ;;  %v7214_v9 = vadd.f32 %v6965_v25, %v3647_v30 }
 0x435   : > { %v3787_v19 = vadd.f32 %v3786_v6, %v3752_v29  ;;  %v3755_v29 = vmul.f32 %v3719_v18, %v7946_v55  ;;  %v3500_v14 = vadd.f32 %v6993_v3, %v3401_v39  ;;  %v3756_v24 = vmul.f32 %v3720_v15, %v7947_v20  ;;  %v7950_v55 = vld [vmem:[#allocation20_spill] sm:$0xff] }
 0x436   : > { %v3721_v6 = vmax.f32 %v7190_v12, 0.0  ;;  %v3649_v51 = vmul.f32 %v6950_v43, %v6925_v21  ;;  %v3503_v3 = vadd.f32 %v7040_v33, %v3404_v42  ;;  %v3722_v63 = vmax.f32 %v7202_v50, 0.0 }
 0x437   : > { %v3788_v40 = vadd.f32 %v3787_v19, %v3753_v28  ;;  %v3611_v28 = vpop.f32.mrf.mxu1  ;;  %v3310_v47 = vadd.f32 %v7072_v22, %v6586_v0  ;;  %v7224_v39 = vadd.f32 %v6965_v25, %v3648_v48  ;;  %v3650_v19 = vmul.f32 %v6950_v43, %v3594_v7  ;;  %v7951_v48 = vld [vmem:[#allocation27_spill] sm:$0xff] }
 0x438   : > { %v3599_v61 = vadd.f32 %v6958_v45, %v3500_v14  ;;  %v3757_v33 = vmul.f32 %v3721_v6, %v7948_v58  ;;  %v3723_v22 = vmax.f32 %v7214_v9, 0.0  ;;  %v7237_v42 = vadd.f32 %v6965_v25, %v3649_v51  ;;  %v7952_v51 = vld [vmem:[#allocation29_spill] sm:$0xff] }
 0x439   : > { %v3789_v31 = vadd.f32 %v3788_v40, %v3754_v60  ;;  %v3505_v60 = vadd.f32 %v7090_v41, %v3406_v52  ;;  %v3316_v21 = vpop.f32.mrf.mxu2  ;;  %v3409_v0 = vadd.f32 %v7101_v62, %v3310_v47  ;;  %v3651_v45 = vmul.f32 %v6950_v43, %v3597_v10  ;;  %v7949_v41 = vld [vmem:[#allocation56_spill] sm:$0xff] }
 0x43a   : > { %v3602_v40 = vadd.f32 %v7949_v41, %v3503_v3  ;;  %v3315_v7 = vadd.f32 %v3314_v2, %v7951_v48  ;;  %v3411_v14 = vadd.f32 %v7149_v4, %v3312_v44  ;;  %v3724_v62 = vmax.f32 %v7224_v39, 0.0  ;;  %v7953_v2 = vld [vmem:[#allocation23_spill] sm:$0xff] }
 0x43b   : > { %v3790_v5 = vadd.f32 %v3789_v31, %v3755_v29  ;;  %v3758_v29 = vmul.f32 %v3722_v63, %v7950_v55  ;;  %v7249_v34 = vadd.f32 %v6965_v25, %v3650_v19  ;;  %v3652_v52 = vmul.f32 %v6950_v43, %v3599_v61 }
 0x43c   : > { %v7130_v46 = vpop.f32.mrf.mxu0  ;;  %v3604_v31 = vadd.f32 %v7056_v27, %v3505_v60  ;;  %v3317_v10 = vadd.f32 %v3316_v21, %v7952_v51  ;;  %v3759_v4 = vmul.f32 %v3723_v22, %v7953_v2  ;;  %v7259_v47 = vadd.f32 %v6965_v25, %v3651_v45  ;;  %v7954_v21 = vld [vmem:[#allocation21_spill] sm:$0xff]  ;;  %v7957_v51 = vld [vmem:[#allocation30_spill] sm:$0xff] }
 0x43d   : > { %v3791_v16 = vadd.f32 %v3790_v5, %v3756_v24  ;;  %v3508_v38 = vadd.f32 %v7130_v46, %v3409_v0  ;;  %v3725_v46 = vmax.f32 %v7237_v42, 0.0  ;;  %v3653_v19 = vmul.f32 %v6950_v43, %v3602_v40  ;;  %v7958_v2 = vld [vmem:[#allocation38_spill] sm:$0xff] }
 0x43e   : > { %v3654_v44 = vmul.f32 %v6950_v43, %v3604_v31 }
 0x43f   : > { %v3792_v24 = vadd.f32 %v3791_v16, %v3757_v33  ;;  %v3613_v58 = vpop.f32.mrf.mxu1  ;;  %v3607_v27 = vadd.f32 %v7105_v13, %v3508_v38  ;;  %v7268_v33 = vadd.f32 %v6965_v25, %v3652_v52  ;;  %v7955_v13 = vld [vmem:[#allocation32_spill] sm:$0xff]  ;;  %v7277_v48 = vadd.f32 %v6965_v25, %v3653_v19  ;;  %v7956_v52 = vld [vmem:[#allocation25_spill] sm:$0xff] }
 0x441   : > { %v3793_v61 = vadd.f32 %v3792_v24, %v3758_v29  ;;  %v3727_v29 = vmax.f32 %v7259_v47, 0.0 }
 0x443   : > { %v3794_v55 = vadd.f32 %v3793_v61, %v3759_v4  ;;  %v3729_v4 = vmax.f32 %v7277_v48, 0.0 }
 0x444   : > { %v3509_v1 = vpop.f32.mrf.mxu0 }
 0x445   : > { %v3510_v3 = vadd.f32 %v3509_v1, %v3411_v14  ;;  %v3760_v1 = vmul.f32 %v3724_v62, %v7954_v21  ;;  %v7959_v21 = vld [vmem:[#allocation39_spill] sm:$0xff] }
 0x447   : > { %v3609_v41 = vadd.f32 %v7158_v8, %v3510_v3  ;;  %v3795_v38 = vadd.f32 %v3794_v55, %v3760_v1  ;;  %v3728_v8 = vmax.f32 %v7268_v33, 0.0 }
 0x449   : > { %v3656_v24 = vmul.f32 %v6950_v43, %v3609_v41  ;;  %v3764_v1 = vmul.f32 %v3728_v8, %v7959_v21 }
 0x44a   : > { %v3413_v26 = vpop.f32.mrf.mxu3 }
 0x44b   : > { %v3414_v5 = vadd.f32 %v3413_v26, %v3315_v7  ;;  %v3726_v26 = vmax.f32 %v7249_v34, 0.0  ;;  %v3655_v7 = vmul.f32 %v6950_v43, %v3607_v27 }
 0x44d   : > { %v3762_v31 = vmul.f32 %v3726_v26, %v7956_v52  ;;  %v7294_v61 = vadd.f32 %v6965_v25, %v3655_v7 }
 0x452   : > { %v3415_v20 = vpop.f32.mrf.mxu3 }
 0x453   : > { %v3416_v60 = vadd.f32 %v3415_v20, %v3317_v10  ;;  %v7285_v20 = vadd.f32 %v6965_v25, %v3654_v44 }
 0x454   : > { %v3616_v44 = vpop.f32.mrf.mxu1 }
 0x463   : > { %v3319_v0 = vpop.f32.mrf.mxu2 }
 0x464   : > { %v3320_v10 = vadd.f32 %v3319_v0, %v7957_v51  ;;  %v7961_v51 = vld [vmem:[#allocation73_spill] sm:$0xff] }
 0x46b   : > { %v3321_v7 = vpop.f32.mrf.mxu2 }
 0x46c   : > { %v3512_v30 = vpop.f32.mrf.mxu0 }
 0x46d   : > { %v3513_v16 = vadd.f32 %v3512_v30, %v3414_v5  ;;  %v3761_v30 = vmul.f32 %v3725_v46, %v7955_v13  ;;  %v7960_v13 = vld [vmem:[#allocation69_spill] sm:$0xff] }
 0x46f   : > { %v3612_v14 = vadd.f32 %v3611_v28, %v3513_v16  ;;  %v3796_v5 = vadd.f32 %v3795_v38, %v3761_v30  ;;  %v3763_v28 = vmul.f32 %v3727_v29, %v7958_v2  ;;  %v3765_v30 = vmul.f32 %v3729_v4, %v7960_v13 }
 0x471   : > { %v3657_v27 = vmul.f32 %v6950_v43, %v3612_v14  ;;  %v3797_v16 = vadd.f32 %v3796_v5, %v3762_v31  ;;  %v3731_v14 = vmax.f32 %v7294_v61, 0.0 }
 0x473   : > { %v3798_v55 = vadd.f32 %v3797_v16, %v3763_v28  ;;  %v7310_v38 = vadd.f32 %v6965_v25, %v3657_v27  ;;  %v7963_v16 = vld [vmem:[#allocation81_spill] sm:$0xff] }
 0x474   : > { %v3514_v45 = vpop.f32.mrf.mxu0  ;;  %v3767_v27 = vmul.f32 %v3731_v14, %v7963_v16 }
 0x475   : > { %v3515_v40 = vadd.f32 %v3514_v45, %v3416_v60  ;;  %v7302_v45 = vadd.f32 %v6965_v25, %v3656_v24  ;;  %v3799_v31 = vadd.f32 %v3798_v55, %v3764_v1  ;;  %v7653_v21 = vmax.f32 %v7310_v38, 0.0  ;;  %v7964_v55 = vld [vmem:[#allocation78_spill] sm:$0xff] }
 0x477   : > { %v3614_v3 = vadd.f32 %v3613_v58, %v3515_v40  ;;  %v3730_v58 = vmax.f32 %v7285_v20, 0.0 }
 0x479   : > { %v3658_v41 = vmul.f32 %v6950_v43, %v3614_v3  ;;  %v3766_v24 = vmul.f32 %v3730_v58, %v7961_v51  ;;  %v7962_v3 = vld [vmem:[#allocation34_spill] sm:$0xff] }
 0x47a   : > { %v3418_v19 = vpop.f32.mrf.mxu3  ;;  %v3322_v5 = vadd.f32 %v3321_v7, %v7962_v3  ;;  %v3618_v7 = vpop.f32.mrf.mxu1 }
 0x47b   : > { %v3419_v60 = vadd.f32 %v3418_v19, %v3320_v10  ;;  %v3732_v10 = vmax.f32 %v7302_v45, 0.0  ;;  %v7318_v2 = vadd.f32 %v6965_v25, %v3658_v41  ;;  %v3800_v19 = vadd.f32 %v3799_v31, %v3765_v30  ;;  %v7965_v31 = vld [vmem:[#allocation89_spill] sm:$0xff] }
 0x47c   : > { %v3517_v0 = vpop.f32.mrf.mxu0  ;;  %v3769_v51 = vmul.f32 %v7653_v21, %v7965_v31 }
 0x47d   : > { %v3518_v40 = vadd.f32 %v3517_v0, %v3419_v60  ;;  %v3768_v41 = vmul.f32 %v3732_v10, %v7964_v55  ;;  %v7654_v13 = vmax.f32 %v7318_v2, 0.0  ;;  %v7967_v55 = vld [vmem:[#allocation59_spill] sm:$0xff]  ;;  %v7994_v59 = vmax.f32 %v7318_v2, 0.0 }
 0x47f   : > { %v3617_v52 = vadd.f32 %v3616_v44, %v3518_v40  ;;  %v3801_v40 = vadd.f32 %v3800_v19, %v3766_v24 }
 0x481   : > { %v3659_v28 = vmul.f32 %v6950_v43, %v3617_v52  ;;  %v3802_v52 = vadd.f32 %v3801_v40, %v3767_v27 }
 0x482   : > { %v3420_v60 = vpop.f32.mrf.mxu3 }
 0x483   : > { %v7326_v1 = vadd.f32 %v6965_v25, %v3659_v28  ;;  %v3421_v44 = vadd.f32 %v3420_v60, %v3322_v5  ;;  %v3803_v16 = vadd.f32 %v3802_v52, %v3768_v41  ;;  %v7966_v5 = vld [vmem:[#allocation90_spill] sm:$0xff] }
 0x484   : > { %v3519_v0 = vpop.f32.mrf.mxu0  ;;  %v3770_v24 = vmul.f32 %v7654_v13, %v7966_v5 }
 0x485   : > { %v3520_v30 = vadd.f32 %v3519_v0, %v3421_v44  ;;  %v3735_v3 = vmax.f32 %v7326_v1, 0.0  ;;  %v3804_v60 = vadd.f32 %v3803_v16, %v3769_v51  ;;  %v7996_v1 = vld [vmem:[#allocation35_spill] sm:$0xff] }
 0x487   : > { %v3619_v28 = vadd.f32 %v3618_v7, %v3520_v30  ;;  %v3771_v44 = vmul.f32 %v3735_v3, %v7967_v55  ;;  %v3805_v0 = vadd.f32 %v3804_v60, %v3770_v24  ;;  %v7968_v30 = vld [vmem:[#allocation33_spill] sm:$0xff]  ;;  %v3821_v55 = vld [vmem:[%s7515_s9] sm:$0x3] }
 0x489   : > { %v3660_v19 = vmul.f32 %v6950_v43, %v3619_v28  ;;  %v3806_v31 = vadd.f32 %v3805_v0, %v3771_v44 }
 0x48b   : > { %v7344_v27 = vadd.f32 %v6965_v25, %v3660_v19  ;;  %v3815_v25 = vld [vmem:[%s7514_s8] sm:$0x3] }
 0x48d   : > { %v3736_v40 = vmax.f32 %v7344_v27, 0.0  ;;  %v7995_v27 = vmax.f32 %v7310_v38, 0.0 }
 0x48f   : > { %v3772_v41 = vmul.f32 %v3736_v40, %v7968_v30 }
 0x491   : > { %v3807_v7 = vadd.f32 %v3806_v31, %v3772_v41 }
 0x493   : > { %v3808_v52 = vrot.slane %v3807_v7, 4 }
 0x495   : > { %v3809_v5 = vadd.f32 %v3808_v52, %v3807_v7 }
 0x497   : > { %v3810_v43 = vrot.slane %v3809_v5, 2 }
 0x499   : > { %v3811_v51 = vadd.f32 %v3810_v43, %v3809_v5 }
 0x49b   : > { %v3812_v28 = vrot.slane %v3811_v51, 1 }
 0x49d   : > { %v3813_v16 = vadd.f32 %v3812_v28, %v3811_v51 }
 0x49f   : > { %v3814_v19 = vmul.f32 0.00390625, %v3813_v16 }
 0x4a1   : > { %v3816_v24 = vmul.f32 %v3815_v25, %v3814_v19 }
 0x4a3   : > { %v3817_v60 = vsel %vm650_vm0, %v3816_v24, 0.0 }
 0x4a4   : > { %3818 = vadd.xlane.f32.xlu2 %v3817_v60 }
 0x517   : > { %v3819_v44 = vpop.xlane.xlu2 %3818 }
 0x518   : > { %v3820_v0 = vmax.f32 %v3819_v44, 0.0 }
 0x51a   : > { %v3822_v31 = vmul.f32 %v3821_v55, %v3820_v0 }
 0x51c   : > { %v3823_v30 = vsel %vm650_vm0, %v3822_v31, 0.0 }
 0x51d   : > { %v3824_v41 = vrot.slane %v3823_v30, 4 }
 0x51f   : > { %v3825_v7 = vadd.f32 %v3824_v41, %v3823_v30 }
 0x521   : > { %v3826_v52 = vrot.slane %v3825_v7, 2 }
 0x523   : > { %v3827_v5 = vadd.f32 %v3826_v52, %v3825_v7  ;;  %v7969_v52 = vmax.f32 %v7112_v54, 0.0  ;;  %v7971_v54 = vmax.f32 %v7088_v36, 0.0  ;;  %v7973_v36 = vmax.f32 %v7068_v57, 0.0 }
 0x525   : > { %v3828_v43 = vrot.slane %v3827_v5, 1 }
 0x527   : > { %v3829_v51 = vadd.f32 %v3828_v43, %v3827_v5 }
 0x529   : > { %v4297_v28 = vmul.f32 -1.442695, %v3829_v51 }
 0x52b   : > { %4420 = vpow2.f32 %v4297_v28 }
 0x531   : > { %v4421_v16 = vpop.eup %4420 }
 0x532   : > { %v3833_v25 = vadd.f32 1.0, %v4421_v16 }
 0x534   : > { %4422 = vrcp.f32 %v3833_v25  ;;  %v3845_v21 = vand.u32 2147483648, %v3833_v25  ;;  %v3843_v55 = vand.u32 2147483647, %v3833_v25  ;;  %vm3839_vm0 = vweird.f32 %v3833_v25 }
 0x536   : > { %v3846_v0 = vor.u32 1.1754944e-38, %v3845_v21  ;;  %vm3844_vm11 = vcmp.eq.f32.partialorder %v3843_v55, 8.507059e+37 }
 0x53a   : > { %v4423_v19 = vpop.eup %4422 }
 0x53b   : > { %v3835_v24 = vmul.f32 %v4423_v19, %v3833_v25  ;;  %vm3840_vm3 = vweird.f32 %v4423_v19 }
 0x53c   : > { %vm3841_vm10 = vmor %vm3839_vm0, %vm3840_vm3 }
 0x53d   : > { %v3836_v60 = vsub.f32 1.0, %v3835_v24 }
 0x53f   : > { %v3837_v13 = vmul.f32 %v4423_v19, %v3836_v60 }
 0x541   : > { %v3838_v44 = vadd.f32 %v4423_v19, %v3837_v13 }
 0x543   : > { %v3842_v31 = vsel %vm3841_vm10, %v4423_v19, %v3838_v44 }
 0x544   : > { %v7358_v30 = vsel %vm3844_vm11, %v3846_v0, %v3842_v31 }
 0x545   : > { %v3864_v41 = vmul.f32 %v7358_v30, %v3716_v11  ;;  %v3880_v7 = vmul.f32 %v7358_v30, %v3732_v10  ;;  %v3863_v13 = vmul.f32 %v7358_v30, %v7969_v52  ;;  %v3879_v21 = vmul.f32 %v7358_v30, %v3731_v14 }
 0x546   : > { %v3862_v11 = vmul.f32 %v7358_v30, %v7970_v35  ;;  %v3878_v45 = vmul.f32 %v7358_v30, %v3730_v58  ;;  %v3861_v10 = vmul.f32 %v7358_v30, %v7971_v54  ;;  %v3877_v61 = vmul.f32 %v7358_v30, %v3729_v4  ;;  %v7974_v4 = vld [vmem:[#allocation65_spill] sm:$0xff] }
 0x547   : > { %3892 = vmatpush.xpose.msra.mxu2 %v3864_v41  ;;  %3912 = vmatpush.xpose.msra.mxu3 %v3880_v7  ;;  %v3860_v14 = vmul.f32 %v7358_v30, %v7972_v37  ;;  %v3876_v20 = vmul.f32 %v7358_v30, %v3728_v8  ;;  %v3859_v58 = vmul.f32 %v7358_v30, %v7973_v36  ;;  %v7975_v17 = vmax.f32 %v7974_v4, 0.0  ;;  %v7976_v8 = vld [vmem:[#allocation64_spill] sm:$0xff] }
 0x548   : > { %v3875_v48 = vmul.f32 %v7358_v30, %v3727_v29  ;;  %v3874_v33 = vmul.f32 %v7358_v30, %v3726_v26  ;;  %v7977_v57 = vmax.f32 %v7976_v8, 0.0  ;;  %v3873_v47 = vmul.f32 %v7358_v30, %v3725_v46  ;;  %v7978_v29 = vld [vmem:[#allocation63_spill] sm:$0xff]  ;;  %v7980_v26 = vld [vmem:[#allocation57_spill] sm:$0xff]  ;;  %v7982_v46 = vld [vmem:[#allocation62_spill] sm:$0xff] }
 0x549   : > { %v3858_v5 = vmul.f32 %v7358_v30, %v7975_v17  ;;  %v7979_v51 = vmax.f32 %v7978_v29, 0.0  ;;  %v3872_v34 = vmul.f32 %v7358_v30, %v3724_v62  ;;  %v7981_v16 = vmax.f32 %v7980_v26, 0.0  ;;  %v7984_v62 = vld [vmem:[#allocation55_spill] sm:$0xff] }
 0x54a   : > { %v3857_v43 = vmul.f32 %v7358_v30, %v7977_v57  ;;  %v3871_v42 = vmul.f32 %v7358_v30, %v3723_v22  ;;  %v7983_v19 = vmax.f32 %v7982_v46, 0.0  ;;  %v3870_v39 = vmul.f32 %v7358_v30, %v3722_v63  ;;  %v7986_v22 = vld [vmem:[#allocation61_spill] sm:$0xff]  ;;  %v7988_v63 = vld [vmem:[#allocation60_spill] sm:$0xff] }
 0x54b   : > { %3893 = vmatpush.xpose.msra.mxu2 %v3863_v13  ;;  %3913 = vmatpush.xpose.msra.mxu3 %v3879_v21  ;;  %v3856_v28 = vmul.f32 %v7358_v30, %v7979_v51  ;;  %v3855_v25 = vmul.f32 %v7358_v30, %v7981_v16  ;;  %v7985_v60 = vmax.f32 %v7984_v62, 0.0  ;;  %v3869_v9 = vmul.f32 %v7358_v30, %v3721_v6  ;;  %v7990_v6 = vld [vmem:[#allocation36_spill] sm:$0xff] }
 0x54c   : > { %v3854_v24 = vmul.f32 %v7358_v30, %v7983_v19  ;;  %v7987_v44 = vmax.f32 %v7986_v22, 0.0  ;;  %v3868_v50 = vmul.f32 %v7358_v30, %v3720_v15  ;;  %v7989_v31 = vmax.f32 %v7988_v63, 0.0  ;;  %v7992_v15 = vld [vmem:[#allocation37_spill] sm:$0xff] }
 0x54d   : > { %v3853_v55 = vmul.f32 %v7358_v30, %v7985_v60  ;;  %v3867_v12 = vmul.f32 %v7358_v30, %v3719_v18  ;;  %v7991_v7 = vmax.f32 %v7990_v6, 0.0  ;;  %v3866_v49 = vmul.f32 %v7358_v30, %v3718_v56  ;;  %v3885_v56 = vld [vmem:[%s7516_s10] sm:$0xff] }
 0x54e   : > { %v3852_v0 = vmul.f32 %v7358_v30, %v7987_v44  ;;  %v3851_v41 = vmul.f32 %v7358_v30, %v7989_v31  ;;  %v7993_v13 = vmax.f32 %v7992_v15, 0.0  ;;  %v3865_v53 = vmul.f32 %v7358_v30, %v3717_v32 }
 0x54f   : > { %3894 = vmatpush.xpose.msra.mxu2 %v3862_v11  ;;  %3914 = vmatpush.xpose.msra.mxu3 %v3878_v45  ;;  %v3850_v52 = vmul.f32 %v7358_v30, %v7991_v7  ;;  %v3884_v18 = vmul.f32 %v7358_v30, %v3736_v40  ;;  %v3883_v23 = vmul.f32 %v7358_v30, %v3735_v3 }
 0x550   : > { %v3849_v21 = vmul.f32 %v7358_v30, %v7993_v13  ;;  %v3882_v32 = vmul.f32 %v7358_v30, %v7994_v59  ;;  %v3881_v40 = vmul.f32 %v7358_v30, %v7995_v27 }
 0x553   : > { %3895 = vmatpush.xpose.msra.mxu2 %v3861_v10  ;;  %3915 = vmatpush.xpose.msra.mxu3 %v3877_v61 }
 0x557   : > { %3896 = vmatpush.xpose.msra.mxu2 %v3860_v14  ;;  %3916 = vmatpush.xpose.msra.mxu3 %v3876_v20 }
 0x55b   : > { %3897 = vmatpush.xpose.msra.mxu2 %v3859_v58  ;;  %3917 = vmatpush.xpose.msra.mxu3 %v3875_v48 }
 0x55f   : > { %3898 = vmatpush.xpose.msra.mxu2 %v3858_v5  ;;  %3918 = vmatpush.xpose.msra.mxu3 %v3874_v33 }
 0x563   : > { %3899 = vmatpush.xpose.msra.mxu2 %v3857_v43  ;;  %3919 = vmatpush.xpose.msra.mxu3 %v3873_v47 }
 0x567   : > { %3900 = vmatpush.xpose.msra.mxu2 %v3856_v28  ;;  %3920 = vmatpush.xpose.msra.mxu3 %v3872_v34 }
 0x56b   : > { %3901 = vmatpush.xpose.msra.mxu2 %v3855_v25  ;;  %3921 = vmatpush.xpose.msra.mxu3 %v3871_v42 }
 0x56f   : > { %3902 = vmatpush.xpose.msra.mxu2 %v3854_v24  ;;  %3922 = vmatpush.xpose.msra.mxu3 %v3870_v39 }
 0x573   : > { %3903 = vmatpush.xpose.msra.mxu2 %v3853_v55  ;;  %3923 = vmatpush.xpose.msra.mxu3 %v3869_v9 }
 0x577   : > { %3904 = vmatpush.xpose.msra.mxu2 %v3852_v0  ;;  %3924 = vmatpush.xpose.msra.mxu3 %v3868_v50 }
 0x57b   : > { %3905 = vmatpush.xpose.msra.mxu2 %v3851_v41  ;;  %3925 = vmatpush.xpose.msra.mxu3 %v3867_v12 }
 0x57f   : > { %3906 = vmatpush.xpose.msra.mxu2 %v3850_v52  ;;  %3926 = vmatpush.xpose.msra.mxu3 %v3866_v49 }
 0x583   : > { %3907 = vmatpush.xpose.msra.mxu2 %v3849_v21  ;;  %3927 = vmatpush.xpose.msra.mxu3 %v3865_v53 }
 0x586   : > { %3908 = vmatmul.f32.vlgmr.msra.gmra.mxu2 %v3885_v56  ;;  %3928 = vmatmul.f32.vlgmr.msra.gmra.mxu3 %v3885_v56 }
 0x587   : > { %3944 = vmatpush.xpose.msrb.mxu2 %v3884_v18 }
 0x58b   : > { %3945 = vmatpush.xpose.msrb.mxu2 %v3883_v23 }
 0x58f   : > { %3946 = vmatpush.xpose.msrb.mxu2 %v3882_v32 }
 0x593   : > { %3947 = vmatpush.xpose.msrb.mxu2 %v3881_v40 }
 0x596   : > { %3948 = vmatmul.f32.vlgmr.msrb.gmra.mxu2 %v3885_v56 }
 0x609   : > { %v3909_v35 = vpop.f32.mrf.mxu2  ;;  %v3929_v11 = vpop.f32.mrf.mxu3 }
 0x60a   : > { %v3910_v45 = vadd.f32 %v3909_v35, %v7996_v1  ;;  %v3930_v3 = vadd.f32 %v3929_v11, %v7996_v1 }
 0x60c   : > { %3952 = vst [vmem:[%s406_s23] sm:$0xff] %v3910_v45 }
 0x60d   : > { %3953 = vst [vmem:[%s406_s23 + $0x8] sm:$0xff] %v3930_v3 }
 0x619   : > { %v3949_v38 = vpop.f32.mrf.mxu2 }
 0x61a   : > { %v3950_v2 = vadd.f32 %v3949_v38, %v7996_v1 }
 0x61c   : > { %3955 = vst.msk [vmem:[%s406_s23 + $0x10] sm:$0xff] %vm3954_vm12, %v3950_v2 }
 0x61d   : > { %4455 = shalt.err (!%p4452_p3)
}
 0x61e   : > { %4371 = dma.vmem_to_hbm [thread:$0]  (%p4598_p5), %s3971_s16, 384, %s3973_s17, %s3957_s18  }
 0x61f PF: > { %p4377_p4 = scmp.ge.s32.totalorder %s4490_s24, 2  ;;  %s3984_s20 = sand.u32 1, %s4478_s21  }
 0x620   : > { %s3985_s23 = scalar_lea.sflag [#allocation4], %s3984_s20 }
 0x621   : > { %p4374_p7 = pnand %p4377_p4, %p4602_p6 }
 0x623   : > { %p4375_p8 = pneg %p4374_p7 }
 0x625   : > { %4473 = dma.done.wait (%p4375_p8), %s3985_s23, 384  }
 0x626   : > { %4475 = vsyncadd (%p4375_p8), %s3985_s23, 4294966912  ;;  %s7997_s19 = sld [smem:[#allocation6_spill]]  ;;  %p22_p9 = scmp.ge.s32.totalorder %s4585_s27, 4  }
 0x627   : > { %s7998_s23 = sld [smem:[#allocation7_spill]]  ;;  %s7999_s21 = smov %s4482_s22 }
 0x628   : > { %s8001_s24 = smov %s4585_s27  ;;  %24 = sbr.rel (!%p22_p9) target bundleno = 3 (0x3), region = 103 }
 0x62c   : > { %s8000_s22 = smov %s7997_s19 }
 0x62d   :  { %3991 = vsyncpa [#allocation4], 1 }
 0x62e   :  { %3993 = vsyncpa [#allocation4 + $0x1], 1 }

</bundles_post_ra>
